<compile_context>
chip_gen: v7x
topology: tpu7x:2x2x1
jax: 0.10.0
libtpu: 0.0.40
codegen_flags: <defaults>
</compile_context>

<pallas_src>
import functools

import jax
import jax.numpy as jnp
from jax.experimental import pallas as pl
from jax.experimental.pallas import tpu as pltpu


# ----------------------------------------------------------------------------
# in-kernel helpers (elementwise / lane-reduction only -> safe Mosaic lowering)
# ----------------------------------------------------------------------------
def _erf(x):
    # TODO(synk): lax.erf has no guaranteed Mosaic lowering; exact-GELU erf is
    # evaluated with the Abramowitz&Stegun 7.1.26 polynomial (|err| < 2.5e-7).
    p = 0.3275911
    a1, a2, a3, a4, a5 = (0.254829592, -0.284496736, 1.421413741,
                          -1.453152027, 1.061405429)
    ax = jnp.abs(x)
    t = 1.0 / (1.0 + p * ax)
    poly = ((((a5 * t + a4) * t + a3) * t + a2) * t + a1) * t
    y = 1.0 - poly * jnp.exp(-(ax * ax))
    return jnp.where(x < 0.0, -y, y)


def _gelu(x):
    # exact (erf-based) GELU, matching torch.nn.GELU() default
    return 0.5 * x * (1.0 + _erf(x * 0.7071067811865476))


def _instance_norm_lanes(y, eps=1e-5):
    """InstanceNorm over the spatial (lane/N) axis of a channels-first (C, N) slab."""
    mu = jnp.mean(y, axis=1, keepdims=True)
    d = y - mu
    var = jnp.mean(d * d, axis=1, keepdims=True)
    return d * jax.lax.rsqrt(var + eps)          # rsqrt on EUP; no per-element divide


def _sigmoid(x):
    # sigmoid(x) == 0.5*(1 + tanh(x/2)); tanh lives on the EUP slot (no VALU divide)
    return 0.5 * (1.0 + jnp.tanh(0.5 * x))


# ----------------------------------------------------------------------------
# fused Pallas kernel: whole PositionalProcessing forward for one batch element
# ----------------------------------------------------------------------------
def _pos_proc_kernel(x_ref, pe9_ref, w3_ref,
                     lp1_w_ref, lp1_b_ref,
                     m0_w_ref, m1_w_ref, m1_b_ref,
                     pa_w_ref,
                     xmod_ref, pa_ref, *, channels, depth, hw):
    """All slabs are channels-first: (C, N) with N = D*H*W on the lane axis.

    x_ref    : (1, C, N)      input
    pe9_ref  : (1, 9C, N)     pos_emb pre-shifted for the 9 (kh,kw) taps, packed
                              along the contraction dim; tap t = kh*3 + kw (t=4 is
                              the un-shifted center tap)
    w3_ref   : (3, C, 9C)     3x3x3 conv weights, one fused (Cout, 9*Cin) slab per kd
    lp1_w/b  : (C, C), (C, 1) local_processor 1x1 conv
    m0_w     : (C, C)         modulation conv #0 (its bias is cancelled by the IN)
    m1_w/b   : (C, C), (C, 1) modulation conv #1
    pa_w     : (nh, C)        pos_attention 1x1 conv (its bias is cancelled by the IN)
    xmod_ref : (1, C, N)      output x * modulation
    pa_ref   : (1, nh, N)     output pos_attention
    """
    f32 = jnp.float32
    c = channels

    # --- local_processor[0]: 3x3x3 circular conv ------------------------------
    # One K = 9*C matmul per kd (the 9 (kh,kw) taps are fused along the
    # contraction dim).  The depth shift commutes with the matmul, so it is
    # applied to the per-kd partial sum as a single static lane roll (XLU).
    acc = None
    for kd in range(3):
        z = jnp.dot(w3_ref[kd].astype(f32), pe9_ref[0].astype(f32),
                    preferred_element_type=f32)
        s = ((1 - kd) % depth) * hw              # static lane shift, multiple of H*W
        if s:
            z = pltpu.roll(z, s, axis=1)
        acc = z if acc is None else acc + z
    # conv bias b3 is dropped: exactly cancelled by the following InstanceNorm.

    # --- local_processor[1:]: InstanceNorm -> GELU -> 1x1 conv ----------------
    lf = _gelu(_instance_norm_lanes(acc))
    lf = jnp.dot(lp1_w_ref[...].astype(f32), lf,
                 preferred_element_type=f32) + lp1_b_ref[...].astype(f32)

    # --- modulation: 1x1 -> IN -> GELU -> 1x1 -> sigmoid -----------------------
    mod = jnp.dot(m0_w_ref[...].astype(f32), lf, preferred_element_type=f32)
    mod = _gelu(_instance_norm_lanes(mod))       # m0 bias cancelled by the IN
    mod = jnp.dot(m1_w_ref[...].astype(f32), mod,
                  preferred_element_type=f32) + m1_b_ref[...].astype(f32)
    mod = _sigmoid(mod)
    xmod_ref[0] = (x_ref[0].astype(f32) * mod).astype(xmod_ref.dtype)

    # --- pos_attention: 1x1 -> IN -> GELU (un-shifted center tap, read at use) -
    pe = pe9_ref[0, pl.ds(4 * c, c), :].astype(f32)
    pa = jnp.dot(pa_w_ref[...].astype(f32), pe, preferred_element_type=f32)
    pa = _gelu(_instance_norm_lanes(pa))         # pa bias cancelled by the IN
    pa_ref[0] = pa.astype(pa_ref.dtype)


# ----------------------------------------------------------------------------
# wrapper (layout prep + pallas_call); params kept in PyTorch layouts
# ----------------------------------------------------------------------------
def positional_processing(params, x, pos_emb):
    """x, pos_emb: (B, C, D, H, W) -> (x_mod (B,C,D,H,W), pos_attn (B,nh,D,H,W))."""
    B, C, D, H, W = x.shape
    nh = params['pa_w'].shape[0]
    N = D * H * W

    # channels-first with spatial flattened onto the lane axis: pure reshapes.
    x_cf = x.reshape(B, C, N)

    # 9 (kh, kw) circular shifts of pos_emb, packed along the contraction dim.
    # TODO(synk): the 9x pos_emb read could be removed entirely by doing the
    # (kh,kw) shifts in-kernel with masked lane rolls (matters on v5e BW / v7x
    # VMEM at large volumes); kept wrapper-side here for robustness.
    pe9 = jnp.concatenate(
        [jnp.roll(pos_emb, shift=(1 - kh, 1 - kw), axis=(3, 4))
         for kh in range(3) for kw in range(3)], axis=1).reshape(B, 9 * C, N)

    # 3x3x3 weights: (Cout, Cin, kd, kh, kw) -> [kd][Cout, (kh*3+kw)*Cin + cin]
    w3 = jnp.transpose(params['lp_w3'], (2, 0, 3, 4, 1)).reshape(3, C, 9 * C)
    lp1_w = params['lp_w1']                      # (Cout, Cin): channels-first, no transpose
    lp1_b = params['lp_b1'].reshape(C, 1)
    m0_w = params['mod_w0']
    m1_w = params['mod_w1']
    m1_b = params['mod_b1'].reshape(C, 1)
    pa_w = params['pa_w']                        # (nh, C)
    # lp_b3, mod_b0, pa_b are exactly cancelled by the InstanceNorms that follow
    # them, so they are not passed to the kernel at all.

    kernel = functools.partial(_pos_proc_kernel, channels=C, depth=D, hw=H * W)
    xmod, pa = pl.pallas_call(
        kernel,
        out_shape=(jax.ShapeDtypeStruct((B, C, N), x.dtype),
                   jax.ShapeDtypeStruct((B, nh, N), x.dtype)),
        grid=(B,),
        in_specs=[
            pl.BlockSpec((1, C, N), lambda b: (b, 0, 0)),
            pl.BlockSpec((1, 9 * C, N), lambda b: (b, 0, 0)),
            pl.BlockSpec((3, C, 9 * C), lambda b: (0, 0, 0)),
            pl.BlockSpec((C, C), lambda b: (0, 0)),
            pl.BlockSpec((C, 1), lambda b: (0, 0)),
            pl.BlockSpec((C, C), lambda b: (0, 0)),
            pl.BlockSpec((C, C), lambda b: (0, 0)),
            pl.BlockSpec((C, 1), lambda b: (0, 0)),
            pl.BlockSpec((nh, C), lambda b: (0, 0)),
        ],
        out_specs=(
            pl.BlockSpec((1, C, N), lambda b: (b, 0, 0)),
            pl.BlockSpec((1, nh, N), lambda b: (b, 0, 0)),
        ),
        compiler_params=pltpu.CompilerParams(
            dimension_semantics=("parallel",),
            vmem_limit_bytes=32 * 1024 * 1024),
    )(x_cf, pe9, w3, lp1_w, lp1_b, m0_w, m1_w, m1_b, pa_w)

    return xmod.reshape(B, C, D, H, W), pa.reshape(B, nh, D, H, W)


# ----------------------------------------------------------------------------
# pure-JAX reference (mirrors the PyTorch module) for a correctness check
# ----------------------------------------------------------------------------
def _reference(params, x, pos_emb):
    def inorm(y, eps=1e-5):
        mu = jnp.mean(y, axis=(2, 3, 4), keepdims=True)
        var = jnp.mean(jnp.square(y - mu), axis=(2, 3, 4), keepdims=True)
        return (y - mu) / jnp.sqrt(var + eps)

    gelu = lambda t: jax.nn.gelu(t, approximate=False)

    def conv1x1(y, w, b):                        # w: (Cout, Cin)
        return jnp.einsum('bcdhw,oc->bodhw', y, w) + b[None, :, None, None, None]

    xp = jnp.pad(pos_emb, ((0, 0), (0, 0), (1, 1), (1, 1), (1, 1)), mode='wrap')
    lf = jax.lax.conv_general_dilated(
        xp, params['lp_w3'], window_strides=(1, 1, 1), padding='VALID',
        dimension_numbers=('NCDHW', 'OIDHW', 'NCDHW'))
    lf = lf + params['lp_b3'][None, :, None, None, None]
    lf = conv1x1(gelu(inorm(lf)), params['lp_w1'], params['lp_b1'])

    mod = conv1x1(lf, params['mod_w0'], params['mod_b0'])
    mod = gelu(inorm(mod))
    mod = conv1x1(mod, params['mod_w1'], params['mod_b1'])
    mod = jax.nn.sigmoid(mod)
    x_mod = x * mod

    pa = gelu(inorm(conv1x1(pos_emb, params['pa_w'], params['pa_b'])))
    return x_mod, pa


# ----------------------------------------------------------------------------
if __name__ == "__main__":
    B, C, NH = 2, 24, 4
    D = H = W = 8

    key = jax.random.PRNGKey(0)
    ks = jax.random.split(key, 12)
    rnd = lambda k, shape, s: (s * jax.random.normal(k, shape)).astype(jnp.float32)
    params = {
        'lp_w3': rnd(ks[0], (C, C, 3, 3, 3), (27 * C) ** -0.5),
        'lp_b3': rnd(ks[1], (C,), 0.02),
        'lp_w1': rnd(ks[2], (C, C), C ** -0.5),
        'lp_b1': rnd(ks[3], (C,), 0.02),
        'mod_w0': rnd(ks[4], (C, C), C ** -0.5),
        'mod_b0': rnd(ks[5], (C,), 0.02),
        'mod_w1': rnd(ks[6], (C, C), C ** -0.5),
        'mod_b1': rnd(ks[7], (C,), 0.02),
        'pa_w': rnd(ks[8], (NH, C), C ** -0.5),
        'pa_b': rnd(ks[9], (NH,), 0.02),
    }
    x = jax.random.normal(ks[10], (B, C, D, H, W), jnp.float32)
    pos_emb = jax.random.normal(ks[11], (B, C, D, H, W), jnp.float32)

    fwd = jax.jit(positional_processing)
    x_mod, pos_attn = jax.block_until_ready(fwd(params, x, pos_emb))

    assert x_mod.shape == (B, C, D, H, W), x_mod.shape
    assert pos_attn.shape == (B, NH, D, H, W), pos_attn.shape
    assert bool(jnp.all(jnp.isfinite(x_mod)))
    assert bool(jnp.all(jnp.isfinite(pos_attn)))

    ref_xmod, ref_pa = _reference(params, x, pos_emb)
    err_x = float(jnp.max(jnp.abs(x_mod - ref_xmod)))
    err_p = float(jnp.max(jnp.abs(pos_attn - ref_pa)))
    # tolerance covers the erf polynomial (<2.5e-7) / tanh-sigmoid rewrites and
    # f32 summation-order differences; structural errors would be O(1).
    assert err_x < 1e-3 and err_p < 1e-3, (err_x, err_p)

    print("KERNEL_OK")
</pallas_src>

<mosaic_0001>
module attributes {stable_mosaic.version = 11 : i64} {
  func.func @_pos_proc_kernel(%arg0: i32, %arg1: memref<1x24x512xf32, #tpu.memory_space<vmem>>, %arg2: memref<1x216x512xf32, #tpu.memory_space<vmem>>, %arg3: memref<3x24x216xf32, #tpu.memory_space<vmem>>, %arg4: memref<24x24xf32, #tpu.memory_space<vmem>>, %arg5: memref<24x1xf32, #tpu.memory_space<vmem>>, %arg6: memref<24x24xf32, #tpu.memory_space<vmem>>, %arg7: memref<24x24xf32, #tpu.memory_space<vmem>>, %arg8: memref<24x1xf32, #tpu.memory_space<vmem>>, %arg9: memref<4x24xf32, #tpu.memory_space<vmem>>, %arg10: memref<1x24x512xf32, #tpu.memory_space<vmem>>, %arg11: memref<1x4x512xf32, #tpu.memory_space<vmem>>) attributes {dimension_semantics = [#tpu.dimension_semantics<parallel>], iteration_bounds = array<i64: 2>, scalar_prefetch = 0 : i64, scratch_operands = 0 : i64, tpu.core_type = #tpu.core_type<tc>, window_params = [{transform_indices = @transform_0, window_bounds = array<i64: 1, 24, 512>}, {transform_indices = @transform_1, window_bounds = array<i64: 1, 216, 512>}, {pipeline_mode = #tpu.pipeline_mode<synchronous>, transform_indices = @transform_2, window_bounds = array<i64: 3, 24, 216>}, {pipeline_mode = #tpu.pipeline_mode<synchronous>, transform_indices = @transform_3, window_bounds = array<i64: 24, 24>}, {pipeline_mode = #tpu.pipeline_mode<synchronous>, transform_indices = @transform_4, window_bounds = array<i64: 24, 1>}, {pipeline_mode = #tpu.pipeline_mode<synchronous>, transform_indices = @transform_5, window_bounds = array<i64: 24, 24>}, {pipeline_mode = #tpu.pipeline_mode<synchronous>, transform_indices = @transform_6, window_bounds = array<i64: 24, 24>}, {pipeline_mode = #tpu.pipeline_mode<synchronous>, transform_indices = @transform_7, window_bounds = array<i64: 24, 1>}, {pipeline_mode = #tpu.pipeline_mode<synchronous>, transform_indices = @transform_8, window_bounds = array<i64: 4, 24>}, {transform_indices = @transform_9, window_bounds = array<i64: 1, 24, 512>}, {transform_indices = @transform_10, window_bounds = array<i64: 1, 4, 512>}]} {
    %c0 = arith.constant 0 : index
    %c0_0 = arith.constant 0 : index
    %c0_1 = arith.constant 0 : index
    %0 = vector.load %arg3[%c0, %c0_0, %c0_1] : memref<3x24x216xf32, #tpu.memory_space<vmem>>, vector<1x24x216xf32>
    %1 = vector.shape_cast %0 : vector<1x24x216xf32> to vector<24x216xf32>
    %c0_2 = arith.constant 0 : index
    %c0_3 = arith.constant 0 : index
    %c0_4 = arith.constant 0 : index
    %2 = vector.load %arg2[%c0_2, %c0_3, %c0_4] : memref<1x216x512xf32, #tpu.memory_space<vmem>>, vector<1x216x512xf32>
    %3 = vector.shape_cast %2 : vector<1x216x512xf32> to vector<216x512xf32>
    %cst = arith.constant dense<0.000000e+00> : vector<24x512xf32>
    %4 = tpu.matmul %1, %3, %cst {dimension_numbers = #tpu.dot_dimension_numbers<[1], [0], [0], [1], [0, 0, 1, 1], [], []>} : vector<24x216xf32>, vector<216x512xf32>, vector<24x512xf32> -> vector<24x512xf32>
    %c64_i32 = arith.constant 64 : i32
    %5 = tpu.dynamic_rotate %4 by %c64_i32 dim 1 : vector<24x512xf32>, i32 -> vector<24x512xf32>
    %c1 = arith.constant 1 : index
    %c0_5 = arith.constant 0 : index
    %c0_6 = arith.constant 0 : index
    %6 = vector.load %arg3[%c1, %c0_5, %c0_6] : memref<3x24x216xf32, #tpu.memory_space<vmem>>, vector<1x24x216xf32>
    %7 = vector.shape_cast %6 : vector<1x24x216xf32> to vector<24x216xf32>
    %c0_7 = arith.constant 0 : index
    %c0_8 = arith.constant 0 : index
    %c0_9 = arith.constant 0 : index
    %8 = vector.load %arg2[%c0_7, %c0_8, %c0_9] : memref<1x216x512xf32, #tpu.memory_space<vmem>>, vector<1x216x512xf32>
    %9 = vector.shape_cast %8 : vector<1x216x512xf32> to vector<216x512xf32>
    %cst_10 = arith.constant dense<0.000000e+00> : vector<24x512xf32>
    %10 = tpu.matmul %7, %9, %cst_10 {dimension_numbers = #tpu.dot_dimension_numbers<[1], [0], [0], [1], [0, 0, 1, 1], [], []>} : vector<24x216xf32>, vector<216x512xf32>, vector<24x512xf32> -> vector<24x512xf32>
    %11 = arith.addf %5, %10 : vector<24x512xf32>
    %c2 = arith.constant 2 : index
    %c0_11 = arith.constant 0 : index
    %c0_12 = arith.constant 0 : index
    %12 = vector.load %arg3[%c2, %c0_11, %c0_12] : memref<3x24x216xf32, #tpu.memory_space<vmem>>, vector<1x24x216xf32>
    %13 = vector.shape_cast %12 : vector<1x24x216xf32> to vector<24x216xf32>
    %c0_13 = arith.constant 0 : index
    %c0_14 = arith.constant 0 : index
    %c0_15 = arith.constant 0 : index
    %14 = vector.load %arg2[%c0_13, %c0_14, %c0_15] : memref<1x216x512xf32, #tpu.memory_space<vmem>>, vector<1x216x512xf32>
    %15 = vector.shape_cast %14 : vector<1x216x512xf32> to vector<216x512xf32>
    %cst_16 = arith.constant dense<0.000000e+00> : vector<24x512xf32>
    %16 = tpu.matmul %13, %15, %cst_16 {dimension_numbers = #tpu.dot_dimension_numbers<[1], [0], [0], [1], [0, 0, 1, 1], [], []>} : vector<24x216xf32>, vector<216x512xf32>, vector<24x512xf32> -> vector<24x512xf32>
    %c448_i32 = arith.constant 448 : i32
    %17 = tpu.dynamic_rotate %16 by %c448_i32 dim 1 : vector<24x512xf32>, i32 -> vector<24x512xf32>
    %18 = arith.addf %11, %17 : vector<24x512xf32>
    %cst_17 = arith.constant dense<0.000000e+00> : vector<24xf32>
    %19 = vector.multi_reduction <add>, %18, %cst_17 [1] : vector<24x512xf32> to vector<24xf32>
    %20 = vector.shape_cast %19 : vector<24xf32> to vector<24x1xf32>
    %cst_18 = arith.constant 5.120000e+02 : f32
    %21 = vector.broadcast %cst_18 : f32 to vector<24x1xf32>
    %22 = arith.divf %20, %21 : vector<24x1xf32>
    %23 = vector.broadcast %22 : vector<24x1xf32> to vector<24x512xf32>
    %24 = arith.subf %18, %23 : vector<24x512xf32>
    %25 = arith.mulf %24, %24 : vector<24x512xf32>
    %cst_19 = arith.constant dense<0.000000e+00> : vector<24xf32>
    %26 = vector.multi_reduction <add>, %25, %cst_19 [1] : vector<24x512xf32> to vector<24xf32>
    %27 = vector.shape_cast %26 : vector<24xf32> to vector<24x1xf32>
    %cst_20 = arith.constant 5.120000e+02 : f32
    %28 = vector.broadcast %cst_20 : f32 to vector<24x1xf32>
    %29 = arith.divf %27, %28 : vector<24x1xf32>
    %cst_21 = arith.constant 9.99999974E-6 : f32
    %30 = vector.broadcast %cst_21 : f32 to vector<24x1xf32>
    %31 = arith.addf %29, %30 : vector<24x1xf32>
    %32 = math.rsqrt %31 : vector<24x1xf32>
    %33 = vector.broadcast %32 : vector<24x1xf32> to vector<24x512xf32>
    %34 = arith.mulf %24, %33 : vector<24x512xf32>
    %cst_22 = arith.constant 5.000000e-01 : f32
    %35 = vector.broadcast %cst_22 : f32 to vector<24x512xf32>
    %36 = arith.mulf %35, %34 : vector<24x512xf32>
    %cst_23 = arith.constant 0.707106769 : f32
    %37 = vector.broadcast %cst_23 : f32 to vector<24x512xf32>
    %38 = arith.mulf %34, %37 : vector<24x512xf32>
    %39 = math.absf %38 : vector<24x512xf32>
    %cst_24 = arith.constant 0.327591091 : f32
    %40 = vector.broadcast %cst_24 : f32 to vector<24x512xf32>
    %41 = arith.mulf %40, %39 : vector<24x512xf32>
    %cst_25 = arith.constant 1.000000e+00 : f32
    %42 = vector.broadcast %cst_25 : f32 to vector<24x512xf32>
    %43 = arith.addf %42, %41 : vector<24x512xf32>
    %cst_26 = arith.constant 1.000000e+00 : f32
    %44 = vector.broadcast %cst_26 : f32 to vector<24x512xf32>
    %45 = arith.divf %44, %43 : vector<24x512xf32>
    %cst_27 = arith.constant 1.06140542 : f32
    %46 = vector.broadcast %cst_27 : f32 to vector<24x512xf32>
    %47 = arith.mulf %46, %45 : vector<24x512xf32>
    %cst_28 = arith.constant -1.45315206 : f32
    %48 = vector.broadcast %cst_28 : f32 to vector<24x512xf32>
    %49 = arith.addf %47, %48 : vector<24x512xf32>
    %50 = arith.mulf %49, %45 : vector<24x512xf32>
    %cst_29 = arith.constant 1.42141378 : f32
    %51 = vector.broadcast %cst_29 : f32 to vector<24x512xf32>
    %52 = arith.addf %50, %51 : vector<24x512xf32>
    %53 = arith.mulf %52, %45 : vector<24x512xf32>
    %cst_30 = arith.constant -0.284496725 : f32
    %54 = vector.broadcast %cst_30 : f32 to vector<24x512xf32>
    %55 = arith.addf %53, %54 : vector<24x512xf32>
    %56 = arith.mulf %55, %45 : vector<24x512xf32>
    %cst_31 = arith.constant 0.254829586 : f32
    %57 = vector.broadcast %cst_31 : f32 to vector<24x512xf32>
    %58 = arith.addf %56, %57 : vector<24x512xf32>
    %59 = arith.mulf %58, %45 : vector<24x512xf32>
    %60 = arith.mulf %39, %39 : vector<24x512xf32>
    %cst_32 = arith.constant 0.000000e+00 : f32
    %61 = vector.broadcast %cst_32 : f32 to vector<24x512xf32>
    %62 = arith.subf %61, %60 : vector<24x512xf32>
    %63 = math.exp %62 : vector<24x512xf32>
    %64 = arith.mulf %59, %63 : vector<24x512xf32>
    %cst_33 = arith.constant 1.000000e+00 : f32
    %65 = vector.broadcast %cst_33 : f32 to vector<24x512xf32>
    %66 = arith.subf %65, %64 : vector<24x512xf32>
    %cst_34 = arith.constant 0.000000e+00 : f32
    %67 = vector.broadcast %cst_34 : f32 to vector<24x512xf32>
    %68 = arith.cmpf olt, %38, %67 : vector<24x512xf32>
    %cst_35 = arith.constant 0.000000e+00 : f32
    %69 = vector.broadcast %cst_35 : f32 to vector<24x512xf32>
    %70 = arith.subf %69, %66 : vector<24x512xf32>
    %71 = arith.select %68, %70, %66 : vector<24x512xi1>, vector<24x512xf32>
    %cst_36 = arith.constant 1.000000e+00 : f32
    %72 = vector.broadcast %cst_36 : f32 to vector<24x512xf32>
    %73 = arith.addf %72, %71 : vector<24x512xf32>
    %74 = arith.mulf %36, %73 : vector<24x512xf32>
    %c0_37 = arith.constant 0 : index
    %c0_38 = arith.constant 0 : index
    %75 = vector.load %arg4[%c0_37, %c0_38] : memref<24x24xf32, #tpu.memory_space<vmem>>, vector<24x24xf32>
    %cst_39 = arith.constant dense<0.000000e+00> : vector<24x512xf32>
    %76 = tpu.matmul %75, %74, %cst_39 {dimension_numbers = #tpu.dot_dimension_numbers<[1], [0], [0], [1], [0, 0, 1, 1], [], []>} : vector<24x24xf32>, vector<24x512xf32>, vector<24x512xf32> -> vector<24x512xf32>
    %c0_40 = arith.constant 0 : index
    %c0_41 = arith.constant 0 : index
    %77 = vector.load %arg5[%c0_40, %c0_41] : memref<24x1xf32, #tpu.memory_space<vmem>>, vector<24x1xf32>
    %78 = vector.broadcast %77 : vector<24x1xf32> to vector<24x512xf32>
    %79 = arith.addf %76, %78 : vector<24x512xf32>
    %c0_42 = arith.constant 0 : index
    %c0_43 = arith.constant 0 : index
    %80 = vector.load %arg6[%c0_42, %c0_43] : memref<24x24xf32, #tpu.memory_space<vmem>>, vector<24x24xf32>
    %cst_44 = arith.constant dense<0.000000e+00> : vector<24x512xf32>
    %81 = tpu.matmul %80, %79, %cst_44 {dimension_numbers = #tpu.dot_dimension_numbers<[1], [0], [0], [1], [0, 0, 1, 1], [], []>} : vector<24x24xf32>, vector<24x512xf32>, vector<24x512xf32> -> vector<24x512xf32>
    %cst_45 = arith.constant dense<0.000000e+00> : vector<24xf32>
    %82 = vector.multi_reduction <add>, %81, %cst_45 [1] : vector<24x512xf32> to vector<24xf32>
    %83 = vector.shape_cast %82 : vector<24xf32> to vector<24x1xf32>
    %cst_46 = arith.constant 5.120000e+02 : f32
    %84 = vector.broadcast %cst_46 : f32 to vector<24x1xf32>
    %85 = arith.divf %83, %84 : vector<24x1xf32>
    %86 = vector.broadcast %85 : vector<24x1xf32> to vector<24x512xf32>
    %87 = arith.subf %81, %86 : vector<24x512xf32>
    %88 = arith.mulf %87, %87 : vector<24x512xf32>
    %cst_47 = arith.constant dense<0.000000e+00> : vector<24xf32>
    %89 = vector.multi_reduction <add>, %88, %cst_47 [1] : vector<24x512xf32> to vector<24xf32>
    %90 = vector.shape_cast %89 : vector<24xf32> to vector<24x1xf32>
    %cst_48 = arith.constant 5.120000e+02 : f32
    %91 = vector.broadcast %cst_48 : f32 to vector<24x1xf32>
    %92 = arith.divf %90, %91 : vector<24x1xf32>
    %cst_49 = arith.constant 9.99999974E-6 : f32
    %93 = vector.broadcast %cst_49 : f32 to vector<24x1xf32>
    %94 = arith.addf %92, %93 : vector<24x1xf32>
    %95 = math.rsqrt %94 : vector<24x1xf32>
    %96 = vector.broadcast %95 : vector<24x1xf32> to vector<24x512xf32>
    %97 = arith.mulf %87, %96 : vector<24x512xf32>
    %cst_50 = arith.constant 5.000000e-01 : f32
    %98 = vector.broadcast %cst_50 : f32 to vector<24x512xf32>
    %99 = arith.mulf %98, %97 : vector<24x512xf32>
    %cst_51 = arith.constant 0.707106769 : f32
    %100 = vector.broadcast %cst_51 : f32 to vector<24x512xf32>
    %101 = arith.mulf %97, %100 : vector<24x512xf32>
    %102 = math.absf %101 : vector<24x512xf32>
    %cst_52 = arith.constant 0.327591091 : f32
    %103 = vector.broadcast %cst_52 : f32 to vector<24x512xf32>
    %104 = arith.mulf %103, %102 : vector<24x512xf32>
    %cst_53 = arith.constant 1.000000e+00 : f32
    %105 = vector.broadcast %cst_53 : f32 to vector<24x512xf32>
    %106 = arith.addf %105, %104 : vector<24x512xf32>
    %cst_54 = arith.constant 1.000000e+00 : f32
    %107 = vector.broadcast %cst_54 : f32 to vector<24x512xf32>
    %108 = arith.divf %107, %106 : vector<24x512xf32>
    %cst_55 = arith.constant 1.06140542 : f32
    %109 = vector.broadcast %cst_55 : f32 to vector<24x512xf32>
    %110 = arith.mulf %109, %108 : vector<24x512xf32>
    %cst_56 = arith.constant -1.45315206 : f32
    %111 = vector.broadcast %cst_56 : f32 to vector<24x512xf32>
    %112 = arith.addf %110, %111 : vector<24x512xf32>
    %113 = arith.mulf %112, %108 : vector<24x512xf32>
    %cst_57 = arith.constant 1.42141378 : f32
    %114 = vector.broadcast %cst_57 : f32 to vector<24x512xf32>
    %115 = arith.addf %113, %114 : vector<24x512xf32>
    %116 = arith.mulf %115, %108 : vector<24x512xf32>
    %cst_58 = arith.constant -0.284496725 : f32
    %117 = vector.broadcast %cst_58 : f32 to vector<24x512xf32>
    %118 = arith.addf %116, %117 : vector<24x512xf32>
    %119 = arith.mulf %118, %108 : vector<24x512xf32>
    %cst_59 = arith.constant 0.254829586 : f32
    %120 = vector.broadcast %cst_59 : f32 to vector<24x512xf32>
    %121 = arith.addf %119, %120 : vector<24x512xf32>
    %122 = arith.mulf %121, %108 : vector<24x512xf32>
    %123 = arith.mulf %102, %102 : vector<24x512xf32>
    %cst_60 = arith.constant 0.000000e+00 : f32
    %124 = vector.broadcast %cst_60 : f32 to vector<24x512xf32>
    %125 = arith.subf %124, %123 : vector<24x512xf32>
    %126 = math.exp %125 : vector<24x512xf32>
    %127 = arith.mulf %122, %126 : vector<24x512xf32>
    %cst_61 = arith.constant 1.000000e+00 : f32
    %128 = vector.broadcast %cst_61 : f32 to vector<24x512xf32>
    %129 = arith.subf %128, %127 : vector<24x512xf32>
    %cst_62 = arith.constant 0.000000e+00 : f32
    %130 = vector.broadcast %cst_62 : f32 to vector<24x512xf32>
    %131 = arith.cmpf olt, %101, %130 : vector<24x512xf32>
    %cst_63 = arith.constant 0.000000e+00 : f32
    %132 = vector.broadcast %cst_63 : f32 to vector<24x512xf32>
    %133 = arith.subf %132, %129 : vector<24x512xf32>
    %134 = arith.select %131, %133, %129 : vector<24x512xi1>, vector<24x512xf32>
    %cst_64 = arith.constant 1.000000e+00 : f32
    %135 = vector.broadcast %cst_64 : f32 to vector<24x512xf32>
    %136 = arith.addf %135, %134 : vector<24x512xf32>
    %137 = arith.mulf %99, %136 : vector<24x512xf32>
    %c0_65 = arith.constant 0 : index
    %c0_66 = arith.constant 0 : index
    %138 = vector.load %arg7[%c0_65, %c0_66] : memref<24x24xf32, #tpu.memory_space<vmem>>, vector<24x24xf32>
    %cst_67 = arith.constant dense<0.000000e+00> : vector<24x512xf32>
    %139 = tpu.matmul %138, %137, %cst_67 {dimension_numbers = #tpu.dot_dimension_numbers<[1], [0], [0], [1], [0, 0, 1, 1], [], []>} : vector<24x24xf32>, vector<24x512xf32>, vector<24x512xf32> -> vector<24x512xf32>
    %c0_68 = arith.constant 0 : index
    %c0_69 = arith.constant 0 : index
    %140 = vector.load %arg8[%c0_68, %c0_69] : memref<24x1xf32, #tpu.memory_space<vmem>>, vector<24x1xf32>
    %141 = vector.broadcast %140 : vector<24x1xf32> to vector<24x512xf32>
    %142 = arith.addf %139, %141 : vector<24x512xf32>
    %cst_70 = arith.constant 5.000000e-01 : f32
    %143 = vector.broadcast %cst_70 : f32 to vector<24x512xf32>
    %144 = arith.mulf %143, %142 : vector<24x512xf32>
    %145 = math.tanh %144 : vector<24x512xf32>
    %cst_71 = arith.constant 1.000000e+00 : f32
    %146 = vector.broadcast %cst_71 : f32 to vector<24x512xf32>
    %147 = arith.addf %146, %145 : vector<24x512xf32>
    %cst_72 = arith.constant 5.000000e-01 : f32
    %148 = vector.broadcast %cst_72 : f32 to vector<24x512xf32>
    %149 = arith.mulf %148, %147 : vector<24x512xf32>
    %c0_73 = arith.constant 0 : index
    %c0_74 = arith.constant 0 : index
    %c0_75 = arith.constant 0 : index
    %150 = vector.load %arg1[%c0_73, %c0_74, %c0_75] : memref<1x24x512xf32, #tpu.memory_space<vmem>>, vector<1x24x512xf32>
    %151 = vector.shape_cast %150 : vector<1x24x512xf32> to vector<24x512xf32>
    %152 = arith.mulf %151, %149 : vector<24x512xf32>
    %c0_76 = arith.constant 0 : index
    %c0_77 = arith.constant 0 : index
    %c0_78 = arith.constant 0 : index
    %153 = vector.load %arg10[%c0_76, %c0_77, %c0_78] : memref<1x24x512xf32, #tpu.memory_space<vmem>>, vector<1x24x512xf32>
    %154 = vector.shape_cast %153 : vector<1x24x512xf32> to vector<24x512xf32>
    %155 = vector.shape_cast %152 : vector<24x512xf32> to vector<1x24x512xf32>
    tpu.vector_store %arg10[%c0_76, %c0_77, %c0_78], %155 {strides = array<i32>} : memref<1x24x512xf32, #tpu.memory_space<vmem>>, vector<1x24x512xf32>,
    %c0_79 = arith.constant 0 : index
    %c96 = arith.constant 96 : index
    %c0_80 = arith.constant 0 : index
    %156 = vector.load %arg2[%c0_79, %c96, %c0_80] : memref<1x216x512xf32, #tpu.memory_space<vmem>>, vector<1x24x512xf32>
    %157 = vector.shape_cast %156 : vector<1x24x512xf32> to vector<24x512xf32>
    %c0_81 = arith.constant 0 : index
    %c0_82 = arith.constant 0 : index
    %158 = vector.load %arg9[%c0_81, %c0_82] : memref<4x24xf32, #tpu.memory_space<vmem>>, vector<4x24xf32>
    %cst_83 = arith.constant dense<0.000000e+00> : vector<4x512xf32>
    %159 = tpu.matmul %158, %157, %cst_83 {dimension_numbers = #tpu.dot_dimension_numbers<[1], [0], [0], [1], [0, 0, 1, 1], [], []>} : vector<4x24xf32>, vector<24x512xf32>, vector<4x512xf32> -> vector<4x512xf32>
    %cst_84 = arith.constant dense<0.000000e+00> : vector<4xf32>
    %160 = vector.multi_reduction <add>, %159, %cst_84 [1] : vector<4x512xf32> to vector<4xf32>
    %161 = vector.shape_cast %160 : vector<4xf32> to vector<4x1xf32>
    %cst_85 = arith.constant 5.120000e+02 : f32
    %162 = vector.broadcast %cst_85 : f32 to vector<4x1xf32>
    %163 = arith.divf %161, %162 : vector<4x1xf32>
    %164 = vector.broadcast %163 : vector<4x1xf32> to vector<4x512xf32>
    %165 = arith.subf %159, %164 : vector<4x512xf32>
    %166 = arith.mulf %165, %165 : vector<4x512xf32>
    %cst_86 = arith.constant dense<0.000000e+00> : vector<4xf32>
    %167 = vector.multi_reduction <add>, %166, %cst_86 [1] : vector<4x512xf32> to vector<4xf32>
    %168 = vector.shape_cast %167 : vector<4xf32> to vector<4x1xf32>
    %cst_87 = arith.constant 5.120000e+02 : f32
    %169 = vector.broadcast %cst_87 : f32 to vector<4x1xf32>
    %170 = arith.divf %168, %169 : vector<4x1xf32>
    %cst_88 = arith.constant 9.99999974E-6 : f32
    %171 = vector.broadcast %cst_88 : f32 to vector<4x1xf32>
    %172 = arith.addf %170, %171 : vector<4x1xf32>
    %173 = math.rsqrt %172 : vector<4x1xf32>
    %174 = vector.broadcast %173 : vector<4x1xf32> to vector<4x512xf32>
    %175 = arith.mulf %165, %174 : vector<4x512xf32>
    %cst_89 = arith.constant 5.000000e-01 : f32
    %176 = vector.broadcast %cst_89 : f32 to vector<4x512xf32>
    %177 = arith.mulf %176, %175 : vector<4x512xf32>
    %cst_90 = arith.constant 0.707106769 : f32
    %178 = vector.broadcast %cst_90 : f32 to vector<4x512xf32>
    %179 = arith.mulf %175, %178 : vector<4x512xf32>
    %180 = math.absf %179 : vector<4x512xf32>
    %cst_91 = arith.constant 0.327591091 : f32
    %181 = vector.broadcast %cst_91 : f32 to vector<4x512xf32>
    %182 = arith.mulf %181, %180 : vector<4x512xf32>
    %cst_92 = arith.constant 1.000000e+00 : f32
    %183 = vector.broadcast %cst_92 : f32 to vector<4x512xf32>
    %184 = arith.addf %183, %182 : vector<4x512xf32>
    %cst_93 = arith.constant 1.000000e+00 : f32
    %185 = vector.broadcast %cst_93 : f32 to vector<4x512xf32>
    %186 = arith.divf %185, %184 : vector<4x512xf32>
    %cst_94 = arith.constant 1.06140542 : f32
    %187 = vector.broadcast %cst_94 : f32 to vector<4x512xf32>
    %188 = arith.mulf %187, %186 : vector<4x512xf32>
    %cst_95 = arith.constant -1.45315206 : f32
    %189 = vector.broadcast %cst_95 : f32 to vector<4x512xf32>
    %190 = arith.addf %188, %189 : vector<4x512xf32>
    %191 = arith.mulf %190, %186 : vector<4x512xf32>
    %cst_96 = arith.constant 1.42141378 : f32
    %192 = vector.broadcast %cst_96 : f32 to vector<4x512xf32>
    %193 = arith.addf %191, %192 : vector<4x512xf32>
    %194 = arith.mulf %193, %186 : vector<4x512xf32>
    %cst_97 = arith.constant -0.284496725 : f32
    %195 = vector.broadcast %cst_97 : f32 to vector<4x512xf32>
    %196 = arith.addf %194, %195 : vector<4x512xf32>
    %197 = arith.mulf %196, %186 : vector<4x512xf32>
    %cst_98 = arith.constant 0.254829586 : f32
    %198 = vector.broadcast %cst_98 : f32 to vector<4x512xf32>
    %199 = arith.addf %197, %198 : vector<4x512xf32>
    %200 = arith.mulf %199, %186 : vector<4x512xf32>
    %201 = arith.mulf %180, %180 : vector<4x512xf32>
    %cst_99 = arith.constant 0.000000e+00 : f32
    %202 = vector.broadcast %cst_99 : f32 to vector<4x512xf32>
    %203 = arith.subf %202, %201 : vector<4x512xf32>
    %204 = math.exp %203 : vector<4x512xf32>
    %205 = arith.mulf %200, %204 : vector<4x512xf32>
    %cst_100 = arith.constant 1.000000e+00 : f32
    %206 = vector.broadcast %cst_100 : f32 to vector<4x512xf32>
    %207 = arith.subf %206, %205 : vector<4x512xf32>
    %cst_101 = arith.constant 0.000000e+00 : f32
    %208 = vector.broadcast %cst_101 : f32 to vector<4x512xf32>
    %209 = arith.cmpf olt, %179, %208 : vector<4x512xf32>
    %cst_102 = arith.constant 0.000000e+00 : f32
    %210 = vector.broadcast %cst_102 : f32 to vector<4x512xf32>
    %211 = arith.subf %210, %207 : vector<4x512xf32>
    %212 = arith.select %209, %211, %207 : vector<4x512xi1>, vector<4x512xf32>
    %cst_103 = arith.constant 1.000000e+00 : f32
    %213 = vector.broadcast %cst_103 : f32 to vector<4x512xf32>
    %214 = arith.addf %213, %212 : vector<4x512xf32>
    %215 = arith.mulf %177, %214 : vector<4x512xf32>
    %c0_104 = arith.constant 0 : index
    %c0_105 = arith.constant 0 : index
    %c0_106 = arith.constant 0 : index
    %216 = vector.load %arg11[%c0_104, %c0_105, %c0_106] : memref<1x4x512xf32, #tpu.memory_space<vmem>>, vector<1x4x512xf32>
    %217 = vector.shape_cast %216 : vector<1x4x512xf32> to vector<4x512xf32>
    %218 = vector.shape_cast %215 : vector<4x512xf32> to vector<1x4x512xf32>
    tpu.vector_store %arg11[%c0_104, %c0_105, %c0_106], %218 {strides = array<i32>} : memref<1x4x512xf32, #tpu.memory_space<vmem>>, vector<1x4x512xf32>,
    return
  }
  func.func @transform_0(%arg0: i32) -> (i32, i32, i32) {
    %c0_i32 = arith.constant 0 : i32
    %c0_i32_0 = arith.constant 0 : i32
    %c0_i32_1 = arith.constant 0 : i32
    return %arg0, %c0_i32, %c0_i32_0 : i32, i32, i32
  }
  func.func @transform_1(%arg0: i32) -> (i32, i32, i32) {
    %c0_i32 = arith.constant 0 : i32
    %c0_i32_0 = arith.constant 0 : i32
    %c0_i32_1 = arith.constant 0 : i32
    return %arg0, %c0_i32, %c0_i32_0 : i32, i32, i32
  }
  func.func @transform_2(%arg0: i32) -> (i32, i32, i32) {
    %c0_i32 = arith.constant 0 : i32
    %c0_i32_0 = arith.constant 0 : i32
    %c0_i32_1 = arith.constant 0 : i32
    %c0_i32_2 = arith.constant 0 : i32
    return %c0_i32, %c0_i32_0, %c0_i32_1 : i32, i32, i32
  }
  func.func @transform_3(%arg0: i32) -> (i32, i32) {
    %c0_i32 = arith.constant 0 : i32
    %c0_i32_0 = arith.constant 0 : i32
    %c0_i32_1 = arith.constant 0 : i32
    return %c0_i32, %c0_i32_0 : i32, i32
  }
  func.func @transform_4(%arg0: i32) -> (i32, i32) {
    %c0_i32 = arith.constant 0 : i32
    %c0_i32_0 = arith.constant 0 : i32
    %c0_i32_1 = arith.constant 0 : i32
    return %c0_i32, %c0_i32_0 : i32, i32
  }
  func.func @transform_5(%arg0: i32) -> (i32, i32) {
    %c0_i32 = arith.constant 0 : i32
    %c0_i32_0 = arith.constant 0 : i32
    %c0_i32_1 = arith.constant 0 : i32
    return %c0_i32, %c0_i32_0 : i32, i32
  }
  func.func @transform_6(%arg0: i32) -> (i32, i32) {
    %c0_i32 = arith.constant 0 : i32
    %c0_i32_0 = arith.constant 0 : i32
    %c0_i32_1 = arith.constant 0 : i32
    return %c0_i32, %c0_i32_0 : i32, i32
  }
  func.func @transform_7(%arg0: i32) -> (i32, i32) {
    %c0_i32 = arith.constant 0 : i32
    %c0_i32_0 = arith.constant 0 : i32
    %c0_i32_1 = arith.constant 0 : i32
    return %c0_i32, %c0_i32_0 : i32, i32
  }
  func.func @transform_8(%arg0: i32) -> (i32, i32) {
    %c0_i32 = arith.constant 0 : i32
    %c0_i32_0 = arith.constant 0 : i32
    %c0_i32_1 = arith.constant 0 : i32
    return %c0_i32, %c0_i32_0 : i32, i32
  }
  func.func @transform_9(%arg0: i32) -> (i32, i32, i32) {
    %c0_i32 = arith.constant 0 : i32
    %c0_i32_0 = arith.constant 0 : i32
    %c0_i32_1 = arith.constant 0 : i32
    return %arg0, %c0_i32, %c0_i32_0 : i32, i32, i32
  }
  func.func @transform_10(%arg0: i32) -> (i32, i32, i32) {
    %c0_i32 = arith.constant 0 : i32
    %c0_i32_0 = arith.constant 0 : i32
    %c0_i32_1 = arith.constant 0 : i32
    return %arg0, %c0_i32, %c0_i32_0 : i32, i32, i32
  }
}

</mosaic_0001>

<bundles_post_ra>
// kernel: positional_processing.1
= control target key start
LH: loop header
LB: loop body
LE: loop exit
PB: predicated region body
PF: predicated region fallthrough
CT: control target
= control target key end

     0   :  { %s3655_s13 = smov 0   ;;  %s4901_s0 = inlined_call_operand.vmem [shape: f32[2,24,512], index: 0, kind: input, shape index: {}]   ;;  %s4902_s1 = inlined_call_operand.vmem [shape: f32[2,216,512], index: 1, kind: input, shape index: {}]   ;;  %s4903_s2 = inlined_call_operand.vmem [shape: f32[3,24,216], index: 2, kind: input, shape index: {}]   ;;  %s4904_s3 = inlined_call_operand.vmem [shape: f32[24,24], index: 3, kind: input, shape index: {}]   ;;  %s4905_s4 = inlined_call_operand.vmem [shape: f32[24,1], index: 4, kind: input, shape index: {}]   ;;  %s4906_s5 = inlined_call_operand.vmem [shape: f32[24,24], index: 5, kind: input, shape index: {}]   ;;  %s4907_s6 = inlined_call_operand.vmem [shape: f32[24,24], index: 6, kind: input, shape index: {}]   ;;  %s4908_s7 = inlined_call_operand.vmem [shape: f32[24,1], index: 7, kind: input, shape index: {}]   ;;  %s4909_s8 = inlined_call_operand.vmem [shape: f32[4,24], index: 8, kind: input, shape index: {}]   ;;  %s4910_s9 = inlined_call_operand.vmem [shape: f32[2,24,512], index: 9, kind: output, shape index: {0}]   ;;  %s4911_s10 = inlined_call_operand.vmem [shape: f32[2,4,512], index: 10, kind: output, shape index: {1}]  }
   0x1 LB: > { %s3017_s14 = sadd.s32 4294967295, %s3595_s13   ;;  %p3021_p0 = scmp.ge.s32.totalorder %s3595_s13, 1  ;;  %s3595_s13 = sphi %s3655_s13, %s21_s13  }
   0x2   : > { %p325_p1 = scmp.lt.s32.totalorder %s3595_s13, 3 }
   0x4   : > { %p326_p2 = pnand %p3021_p0, %p325_p1 }
   0x5   : > { %p373_p3 = scmp.lt.s32.totalorder (!%p326_p2), %s3017_s14, 1  ;;  %v394_v0 = vld [vmem:[%s4903_s2 + $0x8] sm:$0xff] (!%p326_p2)  ;;  %vm507_vm0 = vcmask (!%p326_p2), 719872   ;;  %s3597_s21 = smov (!%p326_p2), 64   ;;  %vm1570_vm13 = vcmask (!%p326_p2), 195584  }
   0x6   : > { %329 = sbr.rel (%p326_p2) target bundleno = 2416 (0x970), region = 56  ;;  %3027 = vmatprep.mubr.msk.f32.mxu0 (!%p326_p2), %vm507_vm0, %v394_v0  ;;  %3030 = vmatprep.mubr.msk.f32.mxu1 (!%p326_p2), %vm507_vm0, %v394_v0 }
   0xd   : > { %s4913_s14 = smov (!%p373_p3, %s3017_s14), 1 }
   0xe   : > { %s3425_s17 = smul.u32 864, %s4913_s14  ;;  %s3079_s26 = sshll.u32 %s4913_s14, 4 }
   0xf   : > { %s392_s29 = scalar_lea.vmem %s4911_s10, %s3079_s26 }
  0x10   : > { %s3674_s20 = scalar_lea.vmem %s4902_s1, %s3425_s17 }
  0x11   : > { %v400_v1 = vld [vmem:[%s3674_s20 + $0x8] sm:$0xff]  ;;  %v399_v3 = vld [vmem:[%s3674_s20] sm:$0xff]  ;;  %v402_v6 = vld [vmem:[%s3674_s20 + $0x18] sm:$0xff] }
  0x12   : > { %v404_v2 = vld [vmem:[%s3674_s20 + $0x28] sm:$0xff]  ;;  %v403_v5 = vld [vmem:[%s3674_s20 + $0x20] sm:$0xff]  ;;  %v406_v7 = vld [vmem:[%s3674_s20 + $0x38] sm:$0xff] }
  0x13   : > { %v3679_v4 = vpack.c.bf16 %v404_v2, %v400_v1  ;;  %v3684_v8 = vpack.c.bf16 %v403_v5, %v399_v3  ;;  %v3686_v9 = vpack.c.bf16 %v406_v7, %v402_v6  ;;  %v401_v10 = vld [vmem:[%s3674_s20 + $0x10] sm:$0xff]  ;;  %v408_v12 = vld [vmem:[%s3674_s20 + $0x48] sm:$0xff]  ;;  %v407_v15 = vld [vmem:[%s3674_s20 + $0x40] sm:$0xff] }
  0x14   : > { %v405_v11 = vld [vmem:[%s3674_s20 + $0x30] sm:$0xff]  ;;  %v412_v14 = vld [vmem:[%s3674_s20 + $0x68] sm:$0xff]  ;;  %v411_v16 = vld [vmem:[%s3674_s20 + $0x60] sm:$0xff] }
  0x15   : > { %3081 = vmatprep.subr.bf16.mxu0 %v3679_v4  ;;  %v3692_v13 = vpack.c.bf16 %v405_v11, %v401_v10  ;;  %3133 = vmatprep.subr.bf16.mxu1 %v3686_v9  ;;  %v3699_v17 = vpack.c.bf16 %v412_v14, %v408_v12  ;;  %v3701_v18 = vpack.c.bf16 %v411_v16, %v407_v15  ;;  %v410_v19 = vld [vmem:[%s3674_s20 + $0x58] sm:$0xff]  ;;  %v409_v21 = vld [vmem:[%s3674_s20 + $0x50] sm:$0xff]  ;;  %v416_v24 = vld [vmem:[%s3674_s20 + $0x88] sm:$0xff] }
  0x16   : > { %3083 = vmatpush1.bf16.msra.mxu0 %v3684_v8  ;;  %v414_v20 = vld [vmem:[%s3674_s20 + $0x78] sm:$0xff]  ;;  %v413_v23 = vld [vmem:[%s3674_s20 + $0x70] sm:$0xff]  ;;  %v420_v25 = vld [vmem:[%s3674_s20 + $0xa8] sm:$0xff] }
  0x17   : > { %3135 = vmatpush1.bf16.msra.mxu1 %v3692_v13  ;;  %v3707_v22 = vpack.c.bf16 %v414_v20, %v410_v19  ;;  %3085 = vmatprep.subr.bf16.mxu0 %v3699_v17  ;;  %v3713_v26 = vpack.c.bf16 %v413_v23, %v409_v21  ;;  %v3715_v27 = vpack.c.bf16 %v420_v25, %v416_v24  ;;  %v415_v28 = vld [vmem:[%s3674_s20 + $0x80] sm:$0xff]  ;;  %v418_v30 = vld [vmem:[%s3674_s20 + $0x98] sm:$0xff]  ;;  %v417_v32 = vld [vmem:[%s3674_s20 + $0x90] sm:$0xff] }
  0x18   : > { %v419_v29 = vld [vmem:[%s3674_s20 + $0xa0] sm:$0xff]  ;;  %v422_v31 = vld [vmem:[%s3674_s20 + $0xb8] sm:$0xff]  ;;  %v421_v33 = vld [vmem:[%s3674_s20 + $0xb0] sm:$0xff] }
  0x19   : > { %3137 = vmatprep.subr.bf16.mxu1 %v3707_v22  ;;  %v3725_v34 = vpack.c.bf16 %v419_v29, %v415_v28  ;;  %v3727_v35 = vpack.c.bf16 %v422_v31, %v418_v30  ;;  %v424_v36 = vld [vmem:[%s3674_s20 + $0xc8] sm:$0xff]  ;;  %v423_v38 = vld [vmem:[%s3674_s20 + $0xc0] sm:$0xff]  ;;  %v3734_v39 = vpack.c.bf16 %v421_v33, %v417_v32  ;;  %v426_v42 = vld [vmem:[%s3674_s20 + $0xd8] sm:$0xff] }
  0x1a   : > { %3087 = vmatpush1.bf16.msra.mxu0 %v3701_v18  ;;  %v428_v37 = vld [vmem:[%s3674_s20 + $0xe8] sm:$0xff]  ;;  %v427_v41 = vld [vmem:[%s3674_s20 + $0xe0] sm:$0xff]  ;;  %v430_v43 = vld [vmem:[%s3674_s20 + $0xf8] sm:$0xff] }
  0x1b   : > { %3139 = vmatpush1.bf16.msra.mxu1 %v3713_v26  ;;  %3089 = vmatprep.subr.bf16.mxu0 %v3715_v27  ;;  %v3736_v40 = vpack.c.bf16 %v428_v37, %v424_v36  ;;  %v3742_v44 = vpack.c.bf16 %v430_v43, %v426_v42  ;;  %v425_v45 = vld [vmem:[%s3674_s20 + $0xd0] sm:$0xff]  ;;  %v432_v47 = vld [vmem:[%s3674_s20 + $0x108] sm:$0xff]  ;;  %v3749_v49 = vpack.c.bf16 %v427_v41, %v423_v38  ;;  %v434_v50 = vld [vmem:[%s3674_s20 + $0x118] sm:$0xff] }
  0x1c   : > { %3141 = vmatprep.subr.bf16.mxu1 %v3727_v35  ;;  %v429_v46 = vld [vmem:[%s3674_s20 + $0xf0] sm:$0xff]  ;;  %v436_v48 = vld [vmem:[%s3674_s20 + $0x128] sm:$0xff]  ;;  %v438_v51 = vld [vmem:[%s3674_s20 + $0x138] sm:$0xff] }
  0x1d   : > { %v3755_v52 = vpack.c.bf16 %v429_v46, %v425_v45  ;;  %v3757_v53 = vpack.c.bf16 %v436_v48, %v432_v47  ;;  %v431_v54 = vld [vmem:[%s3674_s20 + $0x100] sm:$0xff]  ;;  %v433_v56 = vld [vmem:[%s3674_s20 + $0x110] sm:$0xff]  ;;  %v3763_v57 = vpack.c.bf16 %v438_v51, %v434_v50  ;;  %v440_v59 = vld [vmem:[%s3674_s20 + $0x148] sm:$0xff] }
  0x1e   : > { %3091 = vmatpush1.bf16.msra.mxu0 %v3725_v34  ;;  %v435_v55 = vld [vmem:[%s3674_s20 + $0x120] sm:$0xff]  ;;  %v437_v58 = vld [vmem:[%s3674_s20 + $0x130] sm:$0xff]  ;;  %v444_v60 = vld [vmem:[%s3674_s20 + $0x168] sm:$0xff] }
  0x1f   : > { %3143 = vmatpush1.bf16.msra.mxu1 %v3734_v39  ;;  %3093 = vmatprep.subr.bf16.mxu0 %v3736_v40  ;;  %v442_v61 = vld [vmem:[%s3674_s20 + $0x158] sm:$0xff]  ;;  %v3771_v63 = vpack.c.bf16 %v435_v55, %v431_v54  ;;  %v3775_v0 = vpack.c.bf16 %v437_v58, %v433_v56  ;;  %v3777_v1 = vpack.c.bf16 %v444_v60, %v440_v59  ;;  %v439_v2 = vld [vmem:[%s3674_s20 + $0x140] sm:$0xff]  ;;  %v441_v5 = vld [vmem:[%s3674_s20 + $0x150] sm:$0xff] }
  0x20   : > { %3145 = vmatprep.subr.bf16.mxu1 %v3742_v44  ;;  %v446_v62 = vld [vmem:[%s3674_s20 + $0x178] sm:$0xff]  ;;  %v443_v3 = vld [vmem:[%s3674_s20 + $0x160] sm:$0xff]  ;;  %v445_v7 = vld [vmem:[%s3674_s20 + $0x170] sm:$0xff] }
  0x21   : > { %v3783_v6 = vpack.c.bf16 %v446_v62, %v442_v61  ;;  %v448_v10 = vld [vmem:[%s3674_s20 + $0x188] sm:$0xff]  ;;  %v450_v12 = vld [vmem:[%s3674_s20 + $0x198] sm:$0xff]  ;;  %v3791_v15 = vpack.c.bf16 %v443_v3, %v439_v2  ;;  %v3795_v16 = vpack.c.bf16 %v445_v7, %v441_v5  ;;  %v447_v20 = vld [vmem:[%s3674_s20 + $0x180] sm:$0xff] }
  0x22   : > { %3095 = vmatpush1.bf16.msra.mxu0 %v3749_v49  ;;  %v452_v11 = vld [vmem:[%s3674_s20 + $0x1a8] sm:$0xff]  ;;  %v454_v14 = vld [vmem:[%s3674_s20 + $0x1b8] sm:$0xff]  ;;  %v451_v21 = vld [vmem:[%s3674_s20 + $0x1a0] sm:$0xff] }
  0x23   : > { %3147 = vmatpush1.bf16.msra.mxu1 %v3755_v52  ;;  %3097 = vmatprep.subr.bf16.mxu0 %v3757_v53  ;;  %v3797_v19 = vpack.c.bf16 %v452_v11, %v448_v10  ;;  %v449_v23 = vld [vmem:[%s3674_s20 + $0x190] sm:$0xff]  ;;  %v3803_v24 = vpack.c.bf16 %v454_v14, %v450_v12  ;;  %v456_v28 = vld [vmem:[%s3674_s20 + $0x1c8] sm:$0xff]  ;;  %v458_v30 = vld [vmem:[%s3674_s20 + $0x1d8] sm:$0xff]  ;;  %v3811_v32 = vpack.c.bf16 %v451_v21, %v447_v20 }
  0x24   : > { %3149 = vmatprep.subr.bf16.mxu1 %v3763_v57  ;;  %v453_v25 = vld [vmem:[%s3674_s20 + $0x1b0] sm:$0xff]  ;;  %v460_v29 = vld [vmem:[%s3674_s20 + $0x1e8] sm:$0xff]  ;;  %v462_v31 = vld [vmem:[%s3674_s20 + $0x1f8] sm:$0xff] }
  0x25   : > { %v3815_v33 = vpack.c.bf16 %v453_v25, %v449_v23  ;;  %v3817_v36 = vpack.c.bf16 %v460_v29, %v456_v28  ;;  %v455_v37 = vld [vmem:[%s3674_s20 + $0x1c0] sm:$0xff]  ;;  %v457_v41 = vld [vmem:[%s3674_s20 + $0x1d0] sm:$0xff]  ;;  %v3823_v42 = vpack.c.bf16 %v462_v31, %v458_v30  ;;  %v464_v45 = vld [vmem:[%s3674_s20 + $0x208] sm:$0xff] }
  0x26   : > { %3099 = vmatpush1.bf16.msra.mxu0 %v3771_v63  ;;  %v459_v38 = vld [vmem:[%s3674_s20 + $0x1e0] sm:$0xff]  ;;  %v461_v43 = vld [vmem:[%s3674_s20 + $0x1f0] sm:$0xff]  ;;  %v468_v46 = vld [vmem:[%s3674_s20 + $0x228] sm:$0xff] }
  0x27   : > { %3151 = vmatpush1.bf16.msra.mxu1 %v3775_v0  ;;  %3101 = vmatprep.subr.bf16.mxu0 %v3777_v1  ;;  %v466_v47 = vld [vmem:[%s3674_s20 + $0x218] sm:$0xff]  ;;  %v3831_v50 = vpack.c.bf16 %v459_v38, %v455_v37  ;;  %v3835_v51 = vpack.c.bf16 %v461_v43, %v457_v41  ;;  %v3837_v54 = vpack.c.bf16 %v468_v46, %v464_v45  ;;  %v463_v55 = vld [vmem:[%s3674_s20 + $0x200] sm:$0xff]  ;;  %v465_v58 = vld [vmem:[%s3674_s20 + $0x210] sm:$0xff] }
  0x28   : > { %3153 = vmatprep.subr.bf16.mxu1 %v3783_v6  ;;  %v470_v48 = vld [vmem:[%s3674_s20 + $0x238] sm:$0xff]  ;;  %v467_v56 = vld [vmem:[%s3674_s20 + $0x220] sm:$0xff]  ;;  %v469_v60 = vld [vmem:[%s3674_s20 + $0x230] sm:$0xff] }
  0x29   : > { %v3843_v59 = vpack.c.bf16 %v470_v48, %v466_v47  ;;  %v472_v61 = vld [vmem:[%s3674_s20 + $0x248] sm:$0xff]  ;;  %v474_v2 = vld [vmem:[%s3674_s20 + $0x258] sm:$0xff]  ;;  %v3851_v5 = vpack.c.bf16 %v467_v56, %v463_v55  ;;  %v3855_v7 = vpack.c.bf16 %v469_v60, %v465_v58  ;;  %v471_v11 = vld [vmem:[%s3674_s20 + $0x240] sm:$0xff] }
  0x2a   : > { %3103 = vmatpush1.bf16.msra.mxu0 %v3791_v15  ;;  %v476_v62 = vld [vmem:[%s3674_s20 + $0x268] sm:$0xff]  ;;  %v478_v3 = vld [vmem:[%s3674_s20 + $0x278] sm:$0xff]  ;;  %v475_v12 = vld [vmem:[%s3674_s20 + $0x260] sm:$0xff] }
  0x2b   : > { %3155 = vmatpush1.bf16.msra.mxu1 %v3795_v16  ;;  %3105 = vmatprep.subr.bf16.mxu0 %v3797_v19  ;;  %v3857_v10 = vpack.c.bf16 %v476_v62, %v472_v61  ;;  %v473_v14 = vld [vmem:[%s3674_s20 + $0x250] sm:$0xff]  ;;  %v3863_v20 = vpack.c.bf16 %v478_v3, %v474_v2  ;;  %v480_v23 = vld [vmem:[%s3674_s20 + $0x288] sm:$0xff]  ;;  %v482_v28 = vld [vmem:[%s3674_s20 + $0x298] sm:$0xff]  ;;  %v3871_v30 = vpack.c.bf16 %v475_v12, %v471_v11 }
  0x2c   : > { %3157 = vmatprep.subr.bf16.mxu1 %v3803_v24  ;;  %v477_v21 = vld [vmem:[%s3674_s20 + $0x270] sm:$0xff]  ;;  %v484_v25 = vld [vmem:[%s3674_s20 + $0x2a8] sm:$0xff]  ;;  %v486_v29 = vld [vmem:[%s3674_s20 + $0x2b8] sm:$0xff] }
  0x2d   : > { %v3875_v31 = vpack.c.bf16 %v477_v21, %v473_v14  ;;  %v3877_v37 = vpack.c.bf16 %v484_v25, %v480_v23  ;;  %v479_v38 = vld [vmem:[%s3674_s20 + $0x280] sm:$0xff]  ;;  %v481_v43 = vld [vmem:[%s3674_s20 + $0x290] sm:$0xff]  ;;  %v3883_v45 = vpack.c.bf16 %v486_v29, %v482_v28  ;;  %v488_v47 = vld [vmem:[%s3674_s20 + $0x2c8] sm:$0xff] }
  0x2e   : > { %3107 = vmatpush1.bf16.msra.mxu0 %v3811_v32  ;;  %v483_v41 = vld [vmem:[%s3674_s20 + $0x2a0] sm:$0xff]  ;;  %v485_v46 = vld [vmem:[%s3674_s20 + $0x2b0] sm:$0xff]  ;;  %v492_v48 = vld [vmem:[%s3674_s20 + $0x2e8] sm:$0xff] }
  0x2f   : > { %3159 = vmatpush1.bf16.msra.mxu1 %v3815_v33  ;;  %3109 = vmatprep.subr.bf16.mxu0 %v3817_v36  ;;  %v490_v55 = vld [vmem:[%s3674_s20 + $0x2d8] sm:$0xff]  ;;  %v3891_v58 = vpack.c.bf16 %v483_v41, %v479_v38  ;;  %v3895_v60 = vpack.c.bf16 %v485_v46, %v481_v43  ;;  %v3897_v61 = vpack.c.bf16 %v492_v48, %v488_v47  ;;  %v487_v62 = vld [vmem:[%s3674_s20 + $0x2c0] sm:$0xff]  ;;  %v489_v3 = vld [vmem:[%s3674_s20 + $0x2d0] sm:$0xff] }
  0x30   : > { %3161 = vmatprep.subr.bf16.mxu1 %v3823_v42  ;;  %v494_v56 = vld [vmem:[%s3674_s20 + $0x2f8] sm:$0xff]  ;;  %v491_v2 = vld [vmem:[%s3674_s20 + $0x2e0] sm:$0xff]  ;;  %v493_v12 = vld [vmem:[%s3674_s20 + $0x2f0] sm:$0xff] }
  0x31   : > { %v3903_v11 = vpack.c.bf16 %v494_v56, %v490_v55  ;;  %v496_v14 = vld [vmem:[%s3674_s20 + $0x308] sm:$0xff]  ;;  %v498_v23 = vld [vmem:[%s3674_s20 + $0x318] sm:$0xff]  ;;  %v3911_v28 = vpack.c.bf16 %v491_v2, %v487_v62  ;;  %v3915_v29 = vpack.c.bf16 %v493_v12, %v489_v3  ;;  %v495_v41 = vld [vmem:[%s3674_s20 + $0x300] sm:$0xff] }
  0x32   : > { %3111 = vmatpush1.bf16.msra.mxu0 %v3831_v50  ;;  %v500_v21 = vld [vmem:[%s3674_s20 + $0x328] sm:$0xff]  ;;  %v502_v25 = vld [vmem:[%s3674_s20 + $0x338] sm:$0xff]  ;;  %v499_v43 = vld [vmem:[%s3674_s20 + $0x320] sm:$0xff] }
  0x33   : > { %3163 = vmatpush1.bf16.msra.mxu1 %v3835_v51  ;;  %3113 = vmatprep.subr.bf16.mxu0 %v3837_v54  ;;  %v3917_v38 = vpack.c.bf16 %v500_v21, %v496_v14  ;;  %v3922_v46 = vpack.c.bf16 %v502_v25, %v498_v23  ;;  %v497_v47 = vld [vmem:[%s3674_s20 + $0x310] sm:$0xff]  ;;  %v3927_v55 = vpack.c.bf16 %v499_v43, %v495_v41  ;;  %v3935_v62 = vld [vmem:[%s3674_s20 + $0x348] sm:$0xff]  ;;  %v3938_v2 = vld [vmem:[%s3674_s20 + $0x358] sm:$0xff] }
  0x34   : > { %3165 = vmatprep.subr.bf16.mxu1 %v3843_v59  ;;  %v501_v48 = vld [vmem:[%s3674_s20 + $0x330] sm:$0xff]  ;;  %v3944_v3 = vld [vmem:[%s3674_s20 + $0x340] sm:$0xff]  ;;  %v396_v21 = vld [vmem:[%s4903_s2 + $0x18] sm:$0xff] }
  0x35   : > { %v3931_v56 = vpack.c.bf16 %v501_v48, %v497_v47  ;;  %v393_v12 = vld [vmem:[%s4903_s2] sm:$0xff]  ;;  %v3951_v14 = vld [vmem:[%s3674_s20 + $0x350] sm:$0xff]  ;;  %v398_v25 = vld [vmem:[%s4903_s2 + $0x28] sm:$0xff] }
  0x36   : > { %3115 = vmatpush1.bf16.msra.mxu0 %v3851_v5  ;;  %v395_v23 = vld [vmem:[%s4903_s2 + $0x10] sm:$0xff]  ;;  %v397_v41 = vld [vmem:[%s4903_s2 + $0x20] sm:$0xff]  ;;  %v3034_v43 = vld [vmem:[%s4903_s2 + $0x38] sm:$0xff] }
  0x37   : > { %3167 = vmatpush1.bf16.msra.mxu1 %v3855_v7  ;;  %3117 = vmatprep.subr.bf16.mxu0 %v3857_v10  ;;  %v3033_v47 = vld [vmem:[%s4903_s2 + $0x30] sm:$0xff]  ;;  %v3036_v48 = vld [vmem:[%s4903_s2 + $0x48] sm:$0xff] }
  0x38   : > { %3169 = vmatprep.subr.bf16.mxu1 %v3863_v20 }
  0x3a   : > { %3119 = vmatpush1.bf16.msra.mxu0 %v3871_v30 }
  0x3b   : > { %3171 = vmatpush1.bf16.msra.mxu1 %v3875_v31  ;;  %3121 = vmatprep.subr.bf16.mxu0 %v3877_v37 }
  0x3c   : > { %3173 = vmatprep.subr.bf16.mxu1 %v3883_v45 }
  0x3e   : > { %3123 = vmatpush1.bf16.msra.mxu0 %v3891_v58 }
  0x3f   : > { %3175 = vmatpush1.bf16.msra.mxu1 %v3895_v60  ;;  %3125 = vmatprep.subr.bf16.mxu0 %v3897_v61 }
  0x40   : > { %3177 = vmatprep.subr.bf16.mxu1 %v3903_v11 }
  0x42   : > { %3127 = vmatpush1.bf16.msra.mxu0 %v3911_v28 }
  0x43   : > { %3179 = vmatpush1.bf16.msra.mxu1 %v3915_v29  ;;  %3129 = vmatprep.subr.bf16.mxu0 %v3917_v38 }
  0x44   : > { %3181 = vmatprep.subr.bf16.mxu1 %v3922_v46 }
  0x46   : > { %3131 = vmatpush1.bf16.msra.mxu0 %v3927_v55 }
  0x47   : > { %3183 = vmatpush1.bf16.msra.mxu1 %v3931_v56  ;;  %569 = vmatprep.subr.mxu0 %v3935_v62 }
  0x48   : > { %652 = vmatprep.subr.mxu1 %v3938_v2 }
  0x4a   : > { %570 = vmatpush1.msra.mxu0 %v3944_v3 }
  0x4b   : > { %582 = vmatmul.mubr.f32.vlgmr.msra.gmra.mrb[0].mxu0 %v393_v12  ;;  %653 = vmatpush1.msra.mxu1 %v3951_v14 }
  0x4c   : > { %3185 = vmatprep.subr.bf16.mxu0 %v3679_v4  ;;  %665 = vmatmul.mubr.f32.vlgmr.msra.gmra.mrb[0].mxu1 %v393_v12  ;;  %v3035_v12 = vld [vmem:[%s4903_s2 + $0x40] sm:$0xff] }
  0x4d   : > { %3187 = vmatpush1.bf16.msra.mxu0 %v3684_v8  ;;  %3237 = vmatprep.subr.bf16.mxu1 %v3686_v9 }
  0x4e   : > { %3031 = vmatprep.mubr.msk.f32.mxu1 %vm507_vm0, %v396_v21  ;;  %3189 = vmatprep.subr.bf16.mxu0 %v3699_v17 }
  0x4f   : > { %3239 = vmatpush1.bf16.msra.mxu1 %v3692_v13  ;;  %3028 = vmatprep.mubr.msk.f32.mxu0 %vm507_vm0, %v396_v21 }
  0x50   : > { %671 = vmatmul.mubr.f32.gmra.mrb[2].mxu1 %v395_v23  ;;  %3241 = vmatprep.subr.bf16.mxu1 %v3707_v22 }
  0x51   : > { %3191 = vmatpush1.bf16.msra.mxu0 %v3701_v18  ;;  %3032 = vmatprep.mubr.msk.f32.mxu1 %vm507_vm0, %v398_v25 }
  0x52   : > { %588 = vmatmul.mubr.f32.gmra.mrb[2].mxu0 %v395_v23  ;;  %3193 = vmatprep.subr.bf16.mxu0 %v3715_v27 }
  0x53   : > { %3243 = vmatpush1.bf16.msra.mxu1 %v3713_v26  ;;  %3029 = vmatprep.mubr.msk.f32.mxu0 %vm507_vm0, %v398_v25 }
  0x54   : > { %3245 = vmatprep.subr.bf16.mxu1 %v3727_v35  ;;  %677 = vmatmul.mubr.f32.gmra.mrb[4].mxu1 %v397_v41 }
  0x55   : > { %3195 = vmatpush1.bf16.msra.mxu0 %v3725_v34  ;;  %3042 = vmatprep.mubr.msk.f32.mxu1 %vm507_vm0, %v3034_v43 }
  0x56   : > { %3197 = vmatprep.subr.bf16.mxu0 %v3736_v40  ;;  %594 = vmatmul.mubr.f32.gmra.mrb[4].mxu0 %v397_v41 }
  0x57   : > { %3247 = vmatpush1.bf16.msra.mxu1 %v3734_v39  ;;  %3039 = vmatprep.mubr.msk.f32.mxu0 %vm507_vm0, %v3034_v43 }
  0x58   : > { %3249 = vmatprep.subr.bf16.mxu1 %v3742_v44 }
  0x59   : > { %3199 = vmatpush1.bf16.msra.mxu0 %v3749_v49 }
  0x5a   : > { %3201 = vmatprep.subr.bf16.mxu0 %v3757_v53 }
  0x5b   : > { %3251 = vmatpush1.bf16.msra.mxu1 %v3755_v52 }
  0x5c   : > { %3253 = vmatprep.subr.bf16.mxu1 %v3763_v57 }
  0x5d   : > { %3203 = vmatpush1.bf16.msra.mxu0 %v3771_v63 }
  0x5e   : > { %3205 = vmatprep.subr.bf16.mxu0 %v3777_v1 }
  0x5f   : > { %3255 = vmatpush1.bf16.msra.mxu1 %v3775_v0 }
  0x60   : > { %3257 = vmatprep.subr.bf16.mxu1 %v3783_v6 }
  0x61   : > { %3207 = vmatpush1.bf16.msra.mxu0 %v3791_v15 }
  0x62   : > { %3209 = vmatprep.subr.bf16.mxu0 %v3797_v19 }
  0x63   : > { %3259 = vmatpush1.bf16.msra.mxu1 %v3795_v16 }
  0x64   : > { %3261 = vmatprep.subr.bf16.mxu1 %v3803_v24 }
  0x65   : > { %3211 = vmatpush1.bf16.msra.mxu0 %v3811_v32 }
  0x66   : > { %3213 = vmatprep.subr.bf16.mxu0 %v3817_v36 }
  0x67   : > { %3263 = vmatpush1.bf16.msra.mxu1 %v3815_v33 }
  0x68   : > { %3265 = vmatprep.subr.bf16.mxu1 %v3823_v42 }
  0x69   : > { %3215 = vmatpush1.bf16.msra.mxu0 %v3831_v50 }
  0x6a   : > { %3217 = vmatprep.subr.bf16.mxu0 %v3837_v54 }
  0x6b   : > { %3267 = vmatpush1.bf16.msra.mxu1 %v3835_v51 }
  0x6c   : > { %3269 = vmatprep.subr.bf16.mxu1 %v3843_v59 }
  0x6d   : > { %3219 = vmatpush1.bf16.msra.mxu0 %v3851_v5 }
  0x6e   : > { %3221 = vmatprep.subr.bf16.mxu0 %v3857_v10 }
  0x6f   : > { %3271 = vmatpush1.bf16.msra.mxu1 %v3855_v7 }
  0x70   : > { %3273 = vmatprep.subr.bf16.mxu1 %v3863_v20 }
  0x71   : > { %3223 = vmatpush1.bf16.msra.mxu0 %v3871_v30 }
  0x72   : > { %3225 = vmatprep.subr.bf16.mxu0 %v3877_v37 }
  0x73   : > { %3275 = vmatpush1.bf16.msra.mxu1 %v3875_v31 }
  0x74   : > { %3277 = vmatprep.subr.bf16.mxu1 %v3883_v45 }
  0x75   : > { %3227 = vmatpush1.bf16.msra.mxu0 %v3891_v58 }
  0x76   : > { %3229 = vmatprep.subr.bf16.mxu0 %v3897_v61 }
  0x77   : > { %3279 = vmatpush1.bf16.msra.mxu1 %v3895_v60 }
  0x78   : > { %3281 = vmatprep.subr.bf16.mxu1 %v3903_v11 }
  0x79   : > { %3231 = vmatpush1.bf16.msra.mxu0 %v3911_v28 }
  0x7a   : > { %3233 = vmatprep.subr.bf16.mxu0 %v3917_v38 }
  0x7b   : > { %3283 = vmatpush1.bf16.msra.mxu1 %v3915_v29 }
  0x7c   : > { %3285 = vmatprep.subr.bf16.mxu1 %v3922_v46 }
  0x7d   : > { %3235 = vmatpush1.bf16.msra.mxu0 %v3927_v55 }
  0x7e   : > { %790 = vmatprep.subr.mxu0 %v3935_v62 }
  0x7f   : > { %3287 = vmatpush1.bf16.msra.mxu1 %v3931_v56 }
  0x80   : > { %873 = vmatprep.subr.mxu1 %v3938_v2 }
  0x81   : > { %791 = vmatpush1.msra.mxu0 %v3944_v3 }
  0x82   : > { %803 = vmatmul.mubr.f32.vlgmr.msra.gmra.mrb[6].mxu0 %v3033_v47  ;;  %3289 = vmatprep.subr.bf16.mxu0 %v3679_v4  ;;  %v3038_v4 = vld [vmem:[%s4903_s2 + $0x58] sm:$0xff] }
  0x83   : > { %3291 = vmatpush1.bf16.msra.mxu0 %v3684_v8  ;;  %874 = vmatpush1.msra.mxu1 %v3951_v14  ;;  %v3037_v8 = vld [vmem:[%s4903_s2 + $0x50] sm:$0xff] }
  0x84   : > { %3341 = vmatprep.subr.bf16.mxu1 %v3686_v9  ;;  %886 = vmatmul.mubr.f32.vlgmr.msra.gmra.mrb[6].mxu1 %v3033_v47  ;;  %v3046_v9 = vld [vmem:[%s4903_s2 + $0x68] sm:$0xff] }
  0x85   : > { %3293 = vmatprep.subr.bf16.mxu0 %v3699_v17  ;;  %3343 = vmatpush1.bf16.msra.mxu1 %v3692_v13  ;;  %v3045_v13 = vld [vmem:[%s4903_s2 + $0x60] sm:$0xff]  ;;  %v3048_v17 = vld [vmem:[%s4903_s2 + $0x78] sm:$0xff] }
  0x86   : > { %3345 = vmatprep.subr.bf16.mxu1 %v3707_v22  ;;  %3040 = vmatprep.mubr.msk.f32.mxu0 %vm507_vm0, %v3036_v48  ;;  %v3050_v22 = vld [vmem:[%s4903_s2 + $0x88] sm:$0xff] }
  0x87   : > { %3295 = vmatpush1.bf16.msra.mxu0 %v3701_v18  ;;  %3043 = vmatprep.mubr.msk.f32.mxu1 %vm507_vm0, %v3036_v48  ;;  %v3047_v18 = vld [vmem:[%s4903_s2 + $0x70] sm:$0xff] }
  0x88   : > { %3297 = vmatprep.subr.bf16.mxu0 %v3715_v27  ;;  %809 = vmatmul.mubr.f32.gmra.mrb[8].mxu0 %v3035_v12 }
  0x89   : > { %3347 = vmatpush1.bf16.msra.mxu1 %v3713_v26  ;;  %3041 = vmatprep.mubr.msk.f32.mxu0 %vm507_vm0, %v3038_v4  ;;  %v3049_v26 = vld [vmem:[%s4903_s2 + $0x80] sm:$0xff] }
  0x8a   : > { %3349 = vmatprep.subr.bf16.mxu1 %v3727_v35  ;;  %892 = vmatmul.mubr.f32.gmra.mrb[8].mxu1 %v3035_v12 }
  0x8b   : > { %3299 = vmatpush1.bf16.msra.mxu0 %v3725_v34  ;;  %3044 = vmatprep.mubr.msk.f32.mxu1 %vm507_vm0, %v3038_v4 }
  0x8c   : > { %3301 = vmatprep.subr.bf16.mxu0 %v3736_v40  ;;  %815 = vmatmul.mubr.f32.gmra.mrb[10].mxu0 %v3037_v8 }
  0x8d   : > { %3351 = vmatpush1.bf16.msra.mxu1 %v3734_v39  ;;  %3051 = vmatprep.mubr.msk.f32.mxu0 %vm507_vm0, %v3046_v9 }
  0x8e   : > { %3353 = vmatprep.subr.bf16.mxu1 %v3742_v44  ;;  %898 = vmatmul.mubr.f32.gmra.mrb[10].mxu1 %v3037_v8 }
  0x8f   : > { %3303 = vmatpush1.bf16.msra.mxu0 %v3749_v49  ;;  %3054 = vmatprep.mubr.msk.f32.mxu1 %vm507_vm0, %v3046_v9 }
  0x90   : > { %3305 = vmatprep.subr.bf16.mxu0 %v3757_v53 }
  0x91   : > { %3355 = vmatpush1.bf16.msra.mxu1 %v3755_v52 }
  0x92   : > { %3357 = vmatprep.subr.bf16.mxu1 %v3763_v57 }
  0x93   : > { %3307 = vmatpush1.bf16.msra.mxu0 %v3771_v63 }
  0x94   : > { %3309 = vmatprep.subr.bf16.mxu0 %v3777_v1 }
  0x95   : > { %3359 = vmatpush1.bf16.msra.mxu1 %v3775_v0 }
  0x96   : > { %3361 = vmatprep.subr.bf16.mxu1 %v3783_v6 }
  0x97   : > { %3311 = vmatpush1.bf16.msra.mxu0 %v3791_v15 }
  0x98   : > { %3313 = vmatprep.subr.bf16.mxu0 %v3797_v19 }
  0x99   : > { %3363 = vmatpush1.bf16.msra.mxu1 %v3795_v16 }
  0x9a   : > { %3365 = vmatprep.subr.bf16.mxu1 %v3803_v24 }
  0x9b   : > { %3315 = vmatpush1.bf16.msra.mxu0 %v3811_v32 }
  0x9c   : > { %3317 = vmatprep.subr.bf16.mxu0 %v3817_v36 }
  0x9d   : > { %3367 = vmatpush1.bf16.msra.mxu1 %v3815_v33 }
  0x9e   : > { %3369 = vmatprep.subr.bf16.mxu1 %v3823_v42 }
  0x9f   : > { %3319 = vmatpush1.bf16.msra.mxu0 %v3831_v50 }
  0xa0   : > { %3321 = vmatprep.subr.bf16.mxu0 %v3837_v54 }
  0xa1   : > { %3371 = vmatpush1.bf16.msra.mxu1 %v3835_v51 }
  0xa2   : > { %3373 = vmatprep.subr.bf16.mxu1 %v3843_v59 }
  0xa3   : > { %3323 = vmatpush1.bf16.msra.mxu0 %v3851_v5 }
  0xa4   : > { %3325 = vmatprep.subr.bf16.mxu0 %v3857_v10 }
  0xa5   : > { %3375 = vmatpush1.bf16.msra.mxu1 %v3855_v7 }
  0xa6   : > { %3377 = vmatprep.subr.bf16.mxu1 %v3863_v20 }
  0xa7   : > { %3327 = vmatpush1.bf16.msra.mxu0 %v3871_v30 }
  0xa8   : > { %3329 = vmatprep.subr.bf16.mxu0 %v3877_v37 }
  0xa9   : > { %3379 = vmatpush1.bf16.msra.mxu1 %v3875_v31 }
  0xaa   : > { %3381 = vmatprep.subr.bf16.mxu1 %v3883_v45 }
  0xab   : > { %3331 = vmatpush1.bf16.msra.mxu0 %v3891_v58 }
  0xac   : > { %3333 = vmatprep.subr.bf16.mxu0 %v3897_v61 }
  0xad   : > { %3383 = vmatpush1.bf16.msra.mxu1 %v3895_v60 }
  0xae   : > { %3385 = vmatprep.subr.bf16.mxu1 %v3903_v11 }
  0xaf   : > { %3335 = vmatpush1.bf16.msra.mxu0 %v3911_v28 }
  0xb0   : > { %3337 = vmatprep.subr.bf16.mxu0 %v3917_v38 }
  0xb1   : > { %3387 = vmatpush1.bf16.msra.mxu1 %v3915_v29 }
  0xb2   : > { %3389 = vmatprep.subr.bf16.mxu1 %v3922_v46 }
  0xb3   : > { %3339 = vmatpush1.bf16.msra.mxu0 %v3927_v55 }
  0xb4   : > { %984 = vmatprep.subr.mxu0 %v3935_v62 }
  0xb5   : > { %3391 = vmatpush1.bf16.msra.mxu1 %v3931_v56 }
  0xb6   : > { %1067 = vmatprep.subr.mxu1 %v3938_v2  ;;  %v707_v2 = vlaneseq }
  0xb7   : > { %985 = vmatpush1.msra.mxu0 %v3944_v3 }
  0xb8   : > { %997 = vmatmul.mubr.f32.vlgmr.msra.gmra.mrb[12].mxu0 %v3045_v13  ;;  %v4179_v21 = vand.u32 127, %v707_v2 }
  0xb9   : > { %1068 = vmatpush1.msra.mxu1 %v3951_v14  ;;  %3052 = vmatprep.mubr.msk.f32.mxu0 %vm507_vm0, %v3048_v17 }
  0xba   : > { %1080 = vmatmul.mubr.f32.vlgmr.msra.gmra.mrb[12].mxu1 %v3045_v13  ;;  %vm709_vm1 = vcmp.lt.s32.totalorder %v4179_v21, 64 }
  0xbb   : > { %3055 = vmatprep.mubr.msk.f32.mxu1 %vm507_vm0, %v3048_v17 }
  0xbc   : > { %1003 = vmatmul.mubr.f32.gmra.mrb[14].mxu0 %v3047_v18 }
  0xbd   : > { %3053 = vmatprep.mubr.msk.f32.mxu0 %vm507_vm0, %v3050_v22 }
  0xbe   : > { %1086 = vmatmul.mubr.f32.gmra.mrb[14].mxu1 %v3047_v18 }
  0xbf   : > { %3056 = vmatprep.mubr.msk.f32.mxu1 %vm507_vm0, %v3050_v22 }
  0xc0   : > { %1009 = vmatmul.mubr.f32.gmra.mrb[16].mxu0 %v3049_v26 }
  0xc2   : > { %1092 = vmatmul.mubr.f32.gmra.mrb[16].mxu1 %v3049_v26 }
 0x11e   : > { %v583_v27 = vpop.f32.mrb[0].mxu0 }
 0x11f   : > { %683 = vrot.lane.b32.xlu0 %v583_v27, %s3597_s21  ;;  %v585_v34 = vpop.f32.mrb[1].mxu0  ;;  %v666_v35 = vpop.f32.mrb[0].mxu1 }
 0x120   : > { %689 = vrot.lane.b32.xlu1 %v585_v34, %s3597_s21  ;;  %v668_v39 = vpop.f32.mrb[1].mxu1 }
 0x123   : > { %v672_v40 = vpop.f32.mrb[2].mxu1  ;;  %695 = vrot.lane.b32.xlu0 %v666_v35, %s3597_s21 }
 0x124   : > { %697 = vrot.lane.b32.xlu1 %v672_v40, %s3597_s21  ;;  %v674_v44 = vpop.f32.mrb[3].mxu1 }
 0x125   : > { %v589_v49 = vpop.f32.mrb[2].mxu0 }
 0x126   : > { %v591_v52 = vpop.f32.mrb[3].mxu0 }
 0x127   : > { %701 = vrot.lane.b32.xlu0 %v668_v39, %s3597_s21  ;;  %v678_v53 = vpop.f32.mrb[4].mxu1 }
 0x128   : > { %691 = vrot.lane.b32.xlu1 %v591_v52, %s3597_s21  ;;  %v680_v57 = vpop.f32.mrb[5].mxu1 }
 0x129   : > { %v595_v63 = vpop.f32.mrb[4].mxu0 }
 0x12a   : > { %v597_v0 = vpop.f32.mrb[5].mxu0 }
 0x12b   : > { %685 = vrot.lane.b32.xlu0 %v589_v49, %s3597_s21 }
 0x12c   : > { %703 = vrot.lane.b32.xlu1 %v674_v44, %s3597_s21 }
 0x12f   : > { %687 = vrot.lane.b32.xlu0 %v595_v63, %s3597_s21 }
 0x130   : > { %699 = vrot.lane.b32.xlu1 %v678_v53, %s3597_s21 }
 0x133   : > { %705 = vrot.lane.b32.xlu0 %v680_v57, %s3597_s21 }
 0x134   : > { %693 = vrot.lane.b32.xlu1 %v597_v0, %s3597_s21 }
 0x155   : > { %v804_v1 = vpop.f32.mrb[6].mxu0 }
 0x156   : > { %v806_v6 = vpop.f32.mrb[7].mxu0 }
 0x157   : > { %v4143_v15 = vpop.f32.mrb[6].mxu1 }
 0x158   : > { %v4145_v16 = vpop.f32.mrb[7].mxu1 }
 0x15b   : > { %v4147_v19 = vpop.f32.mrb[8].mxu0 }
 0x15c   : > { %v4149_v24 = vpop.f32.mrb[9].mxu0 }
 0x15d   : > { %v4151_v32 = vpop.f32.mrb[8].mxu1 }
 0x15e   : > { %v4153_v33 = vpop.f32.mrb[9].mxu1 }
 0x15f   : > { %v4155_v36 = vpop.f32.mrb[10].mxu0 }
 0x160   : > { %v4157_v42 = vpop.f32.mrb[11].mxu0 }
 0x161   : > { %v4159_v50 = vpop.f32.mrb[10].mxu1 }
 0x162   : > { %v4161_v51 = vpop.f32.mrb[11].mxu1 }
 0x18b   : > { %v998_v54 = vpop.f32.mrb[12].mxu0 }
 0x18c   : > { %1098 = vrot.lane.b32.xlu0 %v998_v54, %s3597_s21  ;;  %v1000_v59 = vpop.f32.mrb[13].mxu0 }
 0x18d   : > { %v1081_v5 = vpop.f32.mrb[12].mxu1 }
 0x18e   : > { %v1083_v7 = vpop.f32.mrb[13].mxu1 }
 0x18f   : > { %v1004_v10 = vpop.f32.mrb[14].mxu0 }
 0x190   : > { %1110 = vrot.lane.b32.xlu0 %v1081_v5, %s3597_s21  ;;  %1100 = vrot.lane.b32.xlu1 %v1004_v10, %s3597_s21  ;;  %v1006_v20 = vpop.f32.mrb[15].mxu0 }
 0x191   : > { %v1087_v30 = vpop.f32.mrb[14].mxu1  ;;  %v684_v61 = vpop.permute.xlu0 %683 }
 0x192   : > { %v1089_v31 = vpop.f32.mrb[15].mxu1  ;;  %v690_v11 = vpop.permute.xlu1 %689 }
 0x193   : > { %v1010_v37 = vpop.f32.mrb[16].mxu0  ;;  %v716_v47 = vsel %vm709_vm1, %v684_v61, %v690_v11 }
 0x194   : > { %1104 = vrot.lane.b32.xlu0 %v1000_v59, %s3597_s21  ;;  %1112 = vrot.lane.b32.xlu1 %v1087_v30, %s3597_s21  ;;  %v1012_v45 = vpop.f32.mrb[17].mxu0  ;;  %v905_v12 = vadd.f32 %v806_v6, %v716_v47 }
 0x195   : > { %v1093_v58 = vpop.f32.mrb[16].mxu1  ;;  %v696_v28 = vpop.permute.xlu0 %695 }
 0x196   : > { %v1095_v60 = vpop.f32.mrb[17].mxu1  ;;  %v698_v29 = vpop.permute.xlu1 %697  ;;  %v713_v4 = vsel %vm709_vm1, %v690_v11, %v696_v28 }
 0x197   : > { %v906_v39 = vadd.f32 %v4143_v15, %v713_v4 }
 0x198   : > { %1116 = vrot.lane.b32.xlu0 %v1083_v7, %s3597_s21  ;;  %1106 = vrot.lane.b32.xlu1 %v1006_v20, %s3597_s21 }
 0x199   : > { %v702_v38 = vpop.permute.xlu0 %701 }
 0x19a   : > { %v692_v46 = vpop.permute.xlu1 %691  ;;  %v719_v48 = vsel %vm709_vm1, %v702_v38, %v684_v61  ;;  %v710_v8 = vsel %vm709_vm1, %v696_v28, %v702_v38 }
 0x19b   : > { %v904_v9 = vadd.f32 %v804_v1, %v719_v48  ;;  %v907_v40 = vadd.f32 %v4145_v16, %v710_v8  ;;  %v714_v44 = vsel %vm709_vm1, %v692_v46, %v698_v29 }
 0x19c   : > { %1118 = vrot.lane.b32.xlu1 %v1089_v31, %s3597_s21  ;;  %1102 = vrot.lane.b32.xlu0 %v1010_v37, %s3597_s21  ;;  %v910_v59 = vadd.f32 %v4151_v32, %v714_v44 }
 0x19d   : > { %v686_v55 = vpop.permute.xlu0 %685 }
 0x19e   : > { %v704_v56 = vpop.permute.xlu1 %703  ;;  %v717_v18 = vsel %vm709_vm1, %v686_v55, %v692_v46 }
 0x19f   : > { %v720_v22 = vsel %vm709_vm1, %v704_v56, %v686_v55  ;;  %v909_v49 = vadd.f32 %v4149_v24, %v717_v18 }
 0x1a0   : > { %1114 = vrot.lane.b32.xlu0 %v1093_v58, %s3597_s21  ;;  %1108 = vrot.lane.b32.xlu1 %v1012_v45, %s3597_s21  ;;  %v908_v52 = vadd.f32 %v4147_v19, %v720_v22  ;;  %v711_v19 = vsel %vm709_vm1, %v698_v29, %v704_v56 }
 0x1a1   : > { %v688_v62 = vpop.permute.xlu0 %687  ;;  %v911_v58 = vadd.f32 %v4153_v33, %v711_v19 }
 0x1a2   : > { %v4175_v3 = vpop.permute.xlu1 %699 }
 0x1a4   : > { %1120 = vrot.lane.b32.xlu1 %v1095_v60, %s3597_s21 }
 0x1a5   : > { %v4177_v14 = vpop.permute.xlu0 %705 }
 0x1a6   : > { %v694_v23 = vpop.permute.xlu1 %693  ;;  %v721_v30 = vsel %vm709_vm1, %v4177_v14, %v688_v62 }
 0x1a7   : > { %v718_v31 = vsel %vm709_vm1, %v688_v62, %v694_v23  ;;  %v912_v11 = vadd.f32 %v4155_v36, %v721_v30  ;;  %v715_v56 = vsel %vm709_vm1, %v694_v23, %v4175_v3 }
 0x1a8   : > { %v913_v28 = vadd.f32 %v4157_v42, %v718_v31  ;;  %v712_v42 = vsel %vm709_vm1, %v4175_v3, %v4177_v14 }
 0x1a9   : > { %v915_v48 = vadd.f32 %v4161_v51, %v712_v42 }
 0x1fe   : > { %v1099_v25 = vpop.permute.xlu0 %1098 }
 0x202   : > { %v1111_v41 = vpop.permute.xlu0 %1110  ;;  %v1101_v43 = vpop.permute.xlu1 %1100 }
 0x206   : > { %v1105_v13 = vpop.permute.xlu0 %1104  ;;  %v1113_v17 = vpop.permute.xlu1 %1112 }
 0x207   : > { %v1125_v26 = vsel %vm709_vm1, %v1105_v13, %v1111_v41  ;;  %v1128_v27 = vsel %vm709_vm1, %v1099_v25, %v1105_v13 }
 0x208   : > { %v1134_v34 = vadd.f32 %v1128_v27, %v904_v9  ;;  %v1135_v35 = vadd.f32 %v1125_v26, %v905_v12 }
 0x20a   : > { %v1117_v53 = vpop.permute.xlu0 %1116  ;;  %v1107_v57 = vpop.permute.xlu1 %1106  ;;  %v1146_v15 = vadd.f32 %v1135_v35, %v1134_v34 }
 0x20b   : > { %v1122_v63 = vsel %vm709_vm1, %v1111_v41, %v1117_v53  ;;  %v1131_v0 = vsel %vm709_vm1, %v1117_v53, %v1099_v25  ;;  %v1126_v1 = vsel %vm709_vm1, %v1107_v57, %v1113_v17  ;;  %v1129_v6 = vsel %vm709_vm1, %v1101_v43, %v1107_v57 }
 0x20c   : > { %v1136_v16 = vadd.f32 %v1122_v63, %v906_v39  ;;  %v1138_v54 = vadd.f32 %v1129_v6, %v908_v52  ;;  %v1139_v24 = vadd.f32 %v1126_v1, %v909_v49  ;;  %v1137_v5 = vadd.f32 %v1131_v0, %v907_v40 }
 0x20d   : > { %v914_v41 = vadd.f32 %v4159_v50, %v715_v56  ;;  %v1553_v56 = vld [vmem:[%s4905_s4 + $0x8] sm:$0xff] }
 0x20e   : > { %v1119_v7 = vpop.permute.xlu1 %1118  ;;  %v1103_v10 = vpop.permute.xlu0 %1102  ;;  %v1147_v20 = vadd.f32 %v1146_v15, %v1136_v16  ;;  %v1151_v32 = vadd.f32 %v1139_v24, %v1138_v54 }
 0x20f   : > { %v1123_v37 = vsel %vm709_vm1, %v1113_v17, %v1119_v7  ;;  %v1132_v45 = vsel %vm709_vm1, %v1119_v7, %v1101_v43 }
 0x210   : > { %v1140_v60 = vadd.f32 %v1123_v37, %v910_v59  ;;  %v1148_v61 = vadd.f32 %v1147_v20, %v1137_v5  ;;  %v1141_v29 = vadd.f32 %v1132_v45, %v911_v58 }
 0x212   : > { %1149 = vadd.xlane.f32.xlu0 %v1148_v61  ;;  %v1115_v38 = vpop.permute.xlu0 %1114  ;;  %v1109_v46 = vpop.permute.xlu1 %1108  ;;  %v1152_v55 = vadd.f32 %v1151_v32, %v1140_v60 }
 0x213   : > { %v1127_v62 = vsel %vm709_vm1, %v1109_v46, %v1115_v38  ;;  %v1130_v33 = vsel %vm709_vm1, %v1103_v10, %v1109_v46 }
 0x214   : > { %v1142_v2 = vadd.f32 %v1130_v33, %v912_v11  ;;  %v1143_v25 = vadd.f32 %v1127_v62, %v913_v28  ;;  %v1153_v36 = vadd.f32 %v1152_v55, %v1141_v29  ;;  %v1552_v55 = vld [vmem:[%s4905_s4] sm:$0xff]  ;;  %v3599_v62 = vmov 0   ;;  %v1554_v33 = vld [vmem:[%s4905_s4 + $0x10] sm:$0xff] }
 0x215   : > { %3437 = vset.pattern.permute.xlu1 %v3599_v62  ;;  %3438 = vset.pattern.permute.xlu0 %v3599_v62 }
 0x216   : > { %1154 = vadd.xlane.f32.xlu1 %v1153_v36  ;;  %v1121_v43 = vpop.permute.xlu1 %1120  ;;  %v1156_v12 = vadd.f32 %v1143_v25, %v1142_v2 }
 0x217   : > { %v1124_v23 = vsel %vm709_vm1, %v1115_v38, %v1121_v43  ;;  %v1133_v47 = vsel %vm709_vm1, %v1121_v43, %v1103_v10 }
 0x218   : > { %v1144_v4 = vadd.f32 %v1124_v23, %v914_v41  ;;  %v1145_v8 = vadd.f32 %v1133_v47, %v915_v48 }
 0x21a   : > { %v1157_v9 = vadd.f32 %v1156_v12, %v1144_v4 }
 0x21c   : > { %v1158_v13 = vadd.f32 %v1157_v9, %v1145_v8 }
 0x21e   : > { %1159 = vadd.xlane.f32.xlu0 %v1158_v13 }
 0x29f   : > { %v1150_v17 = vpop.xlane.xlu0 %1149 }
 0x2a0   : > { %v1162_v3 = vmul.f32 0.001953125, %v1150_v17 }
 0x2a2   : > { %v4244_v14 = vsub.f32 %v1134_v34, %v1162_v3  ;;  %v1166_v50 = vsub.f32 %v1135_v35, %v1162_v3  ;;  %v4246_v18 = vsub.f32 %v1136_v16, %v1162_v3  ;;  %v1168_v26 = vsub.f32 %v1137_v5, %v1162_v3 }
 0x2a3   : > { %v1155_v22 = vpop.xlane.xlu1 %1154 }
 0x2a4   : > { %v1163_v27 = vmul.f32 0.001953125, %v1155_v22  ;;  %v1177_v21 = vmul.f32 %v4244_v14, %v4244_v14  ;;  %v1178_v51 = vmul.f32 %v1166_v50, %v1166_v50  ;;  %v1179_v39 = vmul.f32 %v4246_v18, %v4246_v18 }
 0x2a5   : > { %v1180_v34 = vmul.f32 %v1168_v26, %v1168_v26 }
 0x2a6   : > { %v4252_v40 = vsub.f32 %v1138_v54, %v1163_v27  ;;  %v1170_v44 = vsub.f32 %v1139_v24, %v1163_v27  ;;  %v1189_v49 = vadd.f32 %v1178_v51, %v1177_v21  ;;  %v4254_v52 = vsub.f32 %v1140_v60, %v1163_v27 }
 0x2a7   : > { %v1172_v53 = vsub.f32 %v1141_v29, %v1163_v27  ;;  %v3598_v60 = vmov 0.0  }
 0x2a8   : > { %v1190_v35 = vadd.f32 %v1189_v49, %v1179_v39  ;;  %v1181_v57 = vmul.f32 %v4252_v40, %v4252_v40  ;;  %v1182_v63 = vmul.f32 %v1170_v44, %v1170_v44  ;;  %v1183_v1 = vmul.f32 %v4254_v52, %v4254_v52  ;;  %1644 = vmatprep.mubr.f32.mxu0 %v3598_v60 }
 0x2a9   : > { %v1184_v54 = vmul.f32 %v1172_v53, %v1172_v53  ;;  %1727 = vmatprep.mubr.f32.mxu1 %v3598_v60 }
 0x2aa   : > { %v1191_v0 = vadd.f32 %v1190_v35, %v1180_v34  ;;  %v1194_v6 = vadd.f32 %v1182_v63, %v1181_v57 }
 0x2ab   : > { %v1160_v15 = vpop.xlane.xlu0 %1159 }
 0x2ac   : > { %v1164_v16 = vmul.f32 0.001953125, %v1160_v15  ;;  %1192 = vadd.xlane.f32.xlu0 %v1191_v0  ;;  %v1195_v24 = vadd.f32 %v1194_v6, %v1183_v1 }
 0x2ae   : > { %v4260_v19 = vsub.f32 %v1142_v2, %v1164_v16  ;;  %v4262_v59 = vsub.f32 %v1143_v25, %v1164_v16  ;;  %v1196_v5 = vadd.f32 %v1195_v24, %v1184_v54  ;;  %v4264_v7 = vsub.f32 %v1144_v4, %v1164_v16 }
 0x2af   : > { %v4266_v10 = vsub.f32 %v1145_v8, %v1164_v16 }
 0x2b0   : > { %1197 = vadd.xlane.f32.xlu1 %v1196_v5  ;;  %v1185_v20 = vmul.f32 %v4260_v19, %v4260_v19  ;;  %v1186_v30 = vmul.f32 %v4262_v59, %v4262_v59  ;;  %v1187_v31 = vmul.f32 %v4264_v7, %v4264_v7 }
 0x2b1   : > { %v1188_v45 = vmul.f32 %v4266_v10, %v4266_v10 }
 0x2b2   : > { %v1199_v37 = vadd.f32 %v1186_v30, %v1185_v20 }
 0x2b4   : > { %v1200_v58 = vadd.f32 %v1199_v37, %v1187_v31 }
 0x2b6   : > { %v1201_v32 = vadd.f32 %v1200_v58, %v1188_v45 }
 0x2b8   : > { %1202 = vadd.xlane.f32.xlu0 %v1201_v32 }
 0x2c1   : > { %1557 = vperm.xlu1 %3437, %v1552_v55  }
 0x2c5   : > { %1567 = vperm.xlu1 %3437, %v1554_v33  }
 0x2ce   : > { %1562 = vperm.xlu0 %3438, %v1553_v56  }
 0x339   : > { %v1193_v61 = vpop.xlane.xlu0 %1192 }
 0x33a   : > { %v1204_v11 = vmul.f32 0.001953125, %v1193_v61 }
 0x33c   : > { %v1207_v28 = vadd.f32 1e-05, %v1204_v11 }
 0x33d   : > { %v1198_v29 = vpop.xlane.xlu1 %1197 }
 0x33e   : > { %3439 = vrsqrt.f32 %v1207_v28  ;;  %v1205_v38 = vmul.f32 0.001953125, %v1198_v29 }
 0x340   : > { %v1208_v46 = vadd.f32 1e-05, %v1205_v38 }
 0x342   : > { %3441 = vrsqrt.f32 %v1208_v46 }
 0x345   : > { %v1203_v2 = vpop.xlane.xlu0 %1202 }
 0x346   : > { %v1206_v41 = vmul.f32 0.001953125, %v1203_v2 }
 0x348   : > { %v3440_v25 = vpop.eup %3439  ;;  %v1209_v9 = vadd.f32 1e-05, %v1206_v41 }
 0x349   : > { %v1214_v36 = vmul.f32 %v3440_v25, %v1166_v50  ;;  %v1216_v42 = vmul.f32 %v3440_v25, %v1168_v26  ;;  %v4292_v47 = vmul.f32 %v3440_v25, %v4244_v14 }
 0x34a   : > { %3443 = vrsqrt.f32 %v1209_v9 }
 0x34b   : > { %v4287_v43 = vmul.f32 0.70710677, %v1214_v36  ;;  %v4289_v23 = vmul.f32 0.70710677, %v1216_v42  ;;  %v4299_v22 = vmul.f32 0.70710677, %v4292_v47 }
 0x34c   : > { %v3442_v48 = vpop.eup %3441  ;;  %v4312_v54 = vmul.f32 0.5, %v1214_v36  ;;  %v4321_v32 = vmul.f32 0.5, %v1216_v42 }
 0x34d   : > { %v1218_v12 = vmul.f32 %v3442_v48, %v1170_v44  ;;  %v1250_v4 = vand.u32 2147483647, %v4287_v43  ;;  %v1220_v8 = vmul.f32 %v3442_v48, %v1172_v53  ;;  %v1252_v13 = vand.u32 2147483647, %v4289_v23 }
 0x34e   : > { %v4305_v44 = vmul.f32 %v3440_v25, %v4246_v18  ;;  %v4309_v35 = vmul.f32 %v3442_v48, %v4252_v40  ;;  %v1249_v63 = vand.u32 2147483647, %v4299_v22  ;;  %v4324_v38 = vmul.f32 %v3442_v48, %v4254_v52 }
 0x34f   : > { %v4296_v17 = vmul.f32 0.70710677, %v1218_v12  ;;  %v1262_v3 = vmul.f32 0.3275911, %v1250_v4  ;;  %v1418_v50 = vmul.f32 %v1250_v4, %v1250_v4  ;;  %v4301_v26 = vmul.f32 0.70710677, %v1220_v8 }
 0x350   : > { %v1264_v27 = vmul.f32 0.3275911, %v1252_v13  ;;  %v1420_v14 = vmul.f32 %v1252_v13, %v1252_v13  ;;  %v4315_v5 = vmul.f32 0.70710677, %v4309_v35  ;;  %v1261_v40 = vmul.f32 0.3275911, %v1249_v63 }
 0x351   : > { %v1254_v21 = vand.u32 2147483647, %v4296_v17  ;;  %v1274_v51 = vadd.f32 1.0, %v1262_v3  ;;  %v1430_v39 = vsub.f32 0.0, %v1418_v50  ;;  %v1256_v49 = vand.u32 2147483647, %v4301_v26 }
 0x352   : > { %v1276_v34 = vadd.f32 1.0, %v1264_v27  ;;  %v1432_v6 = vsub.f32 0.0, %v1420_v14  ;;  %v1417_v20 = vmul.f32 %v1249_v63, %v1249_v63  ;;  %v4318_v30 = vmul.f32 0.70710677, %v4305_v44 }
 0x353   : > { %v1266_v53 = vmul.f32 0.3275911, %v1254_v21  ;;  %3445 = vrcp.f32 %v1274_v51  ;;  %v1422_v57 = vmul.f32 %v1254_v21, %v1254_v21  ;;  %v1268_v0 = vmul.f32 0.3275911, %v1256_v49 }
 0x354   : > { %3447 = vrcp.f32 %v1276_v34  ;;  %v1424_v1 = vmul.f32 %v1256_v49, %v1256_v49  ;;  %v1443_v18 = vmul.f32 1.442695, %v1430_v39  ;;  %v1447_v37 = vmul.f32 1.442695, %v1432_v6  ;;  %v4331_v62 = vpop.eup %3443 }
 0x355   : > { %v1278_v15 = vadd.f32 1.0, %v1266_v53  ;;  %v1434_v16 = vsub.f32 0.0, %v1422_v57  ;;  %v1280_v24 = vadd.f32 1.0, %v1268_v0  ;;  %v1253_v45 = vand.u32 2147483647, %v4315_v5 }
 0x356   : > { %v1436_v31 = vsub.f32 0.0, %v1424_v1  ;;  %v1273_v61 = vadd.f32 1.0, %v1261_v40  ;;  %v1429_v29 = vsub.f32 0.0, %v1417_v20  ;;  %v4326_v46 = vmul.f32 0.5, %v1218_v12 }
 0x357   : > { %3449 = vrcp.f32 %v1278_v15  ;;  %v1451_v58 = vmul.f32 1.442695, %v1434_v16  ;;  %v1265_v11 = vmul.f32 0.3275911, %v1253_v45  ;;  %v1421_v28 = vmul.f32 %v1253_v45, %v1253_v45 }
 0x358   : > { %3451 = vrcp.f32 %v1280_v24  ;;  %v4328_v55 = vmul.f32 0.5, %v1220_v8  ;;  %v1251_v56 = vand.u32 2147483647, %v4318_v30  ;;  %v1455_v33 = vmul.f32 1.442695, %v1436_v31 }
 0x359   : > { %3453 = vpow2.f32 %v1443_v18  ;;  %v1277_v2 = vadd.f32 1.0, %v1265_v11  ;;  %v4334_v25 = vmul.f32 0.70710677, %v4324_v38  ;;  %v1433_v52 = vsub.f32 0.0, %v1421_v28 }
 0x35a   : > { %3455 = vrcp.f32 %v1273_v61  ;;  %v1263_v42 = vmul.f32 0.3275911, %v1251_v56  ;;  %v1419_v41 = vmul.f32 %v1251_v56, %v1251_v56  ;;  %v1441_v4 = vmul.f32 1.442695, %v1429_v29 }
 0x35b   : > { %3457 = vpow2.f32 %v1447_v37  ;;  %v1255_v8 = vand.u32 2147483647, %v4334_v25  ;;  %v4345_v50 = vmul.f32 %v4331_v62, %v4262_v59  ;;  %v1449_v49 = vmul.f32 1.442695, %v1433_v52 }
 0x35c   : > { %3459 = vpow2.f32 %v1451_v58  ;;  %v1275_v13 = vadd.f32 1.0, %v1263_v42  ;;  %v1431_v3 = vsub.f32 0.0, %v1419_v41  ;;  %vm1490_vm2 = vcmp.lt.f32.partialorder %v4287_v43, 0.0 }
 0x35d   : > { %v4336_v36 = vpop.eup %3445  ;;  %3461 = vrcp.f32 %v1277_v2  ;;  %v1267_v14 = vmul.f32 0.3275911, %v1255_v8  ;;  %v1423_v21 = vmul.f32 %v1255_v8, %v1255_v8  ;;  %v4358_v16 = vmul.f32 0.70710677, %v4345_v50 }
 0x35e   : > { %v4338_v48 = vpop.eup %3447  ;;  %v1310_v12 = vmul.f32 1.0614054, %v4336_v36  ;;  %3463 = vpow2.f32 %v1455_v33  ;;  %v1445_v34 = vmul.f32 1.442695, %v1431_v3  ;;  %v4376_v8 = vmul.f32 %v4331_v62, %v4266_v10 }
 0x35f   : > { %v1312_v9 = vmul.f32 1.0614054, %v4338_v48  ;;  %3465 = vrcp.f32 %v1275_v13  ;;  %v1279_v0 = vadd.f32 1.0, %v1267_v14  ;;  %v1435_v1 = vsub.f32 0.0, %v1423_v21 }
 0x360   : > { %v1322_v27 = vadd.f32 -1.4531521, %v1310_v12  ;;  %3467 = vpow2.f32 %v1441_v4  ;;  %v1258_v45 = vand.u32 2147483647, %v4358_v16  ;;  %vm1492_vm3 = vcmp.lt.f32.partialorder %v4289_v23, 0.0 }
 0x361   : > { %v4347_v51 = vpop.eup %3449  ;;  %v1324_v39 = vadd.f32 -1.4531521, %v1312_v9  ;;  %3469 = vrcp.f32 %v1279_v0  ;;  %v1453_v40 = vmul.f32 1.442695, %v1435_v1  ;;  %vm1494_vm4 = vcmp.lt.f32.partialorder %v4296_v17, 0.0 }
 0x362   : > { %v4349_v53 = vpop.eup %3451  ;;  %v1314_v57 = vmul.f32 1.0614054, %v4347_v51  ;;  %v1334_v63 = vmul.f32 %v4336_v36, %v1322_v27  ;;  %3471 = vpow2.f32 %v1449_v49  ;;  %v1270_v2 = vmul.f32 0.3275911, %v1258_v45 }
 0x363   : > { %v4353_v59 = vpop.eup %3453  ;;  %v1316_v6 = vmul.f32 1.0614054, %v4349_v53  ;;  %v1336_v15 = vmul.f32 %v4338_v48, %v1324_v39  ;;  %3473 = vpow2.f32 %v1445_v34  ;;  %v4370_v52 = vmul.f32 %v1258_v45, %v1258_v45 }
 0x364   : > { %v1326_v18 = vadd.f32 -1.4531521, %v1314_v57  ;;  %v1346_v24 = vadd.f32 1.4214138, %v1334_v63  ;;  %v4360_v20 = vpop.eup %3455  ;;  %3475 = vpow2.f32 %v1453_v40  ;;  %v1282_v49 = vadd.f32 1.0, %v1270_v2 }
 0x365   : > { %v1328_v31 = vadd.f32 -1.4531521, %v1316_v6  ;;  %v1348_v37 = vadd.f32 1.4214138, %v1336_v15  ;;  %v3458_v58 = vpop.eup %3457  ;;  %v1309_v28 = vmul.f32 1.0614054, %v4360_v20 }
 0x366   : > { %v1338_v61 = vmul.f32 %v4347_v51, %v1326_v18  ;;  %v1358_v11 = vmul.f32 %v4336_v36, %v1346_v24  ;;  %v4366_v29 = vpop.eup %3459  ;;  %v1438_v0 = vsub.f32 0.0, %v4370_v52  ;;  %v4389_v18 = vmul.f32 %v4331_v62, %v4260_v19 }
 0x367   : > { %v1340_v56 = vmul.f32 %v4349_v53, %v1328_v31  ;;  %v1360_v33 = vmul.f32 %v4338_v48, %v1348_v37  ;;  %v4372_v42 = vpop.eup %3461  ;;  %v1321_v4 = vadd.f32 -1.4531521, %v1309_v28  ;;  %3477 = vrcp.f32 %v1282_v49 }
 0x368   : > { %v1350_v41 = vadd.f32 1.4214138, %v1338_v61  ;;  %v1370_v12 = vadd.f32 -0.28449672, %v1358_v11  ;;  %v1313_v3 = vmul.f32 1.0614054, %v4372_v42  ;;  %v3464_v27 = vpop.eup %3463 }
 0x369   : > { %v1352_v9 = vadd.f32 1.4214138, %v1340_v56  ;;  %v1372_v13 = vadd.f32 -0.28449672, %v1360_v33  ;;  %v1333_v39 = vmul.f32 %v4360_v20, %v1321_v4  ;;  %v4382_v34 = vpop.eup %3465  ;;  %vm1496_vm5 = vcmp.lt.f32.partialorder %v4301_v26, 0.0 }
 0x36a   : > { %v1362_v14 = vmul.f32 %v4347_v51, %v1350_v41  ;;  %v1382_v21 = vmul.f32 %v4336_v36, %v1370_v12  ;;  %v1325_v63 = vadd.f32 -1.4531521, %v1313_v3  ;;  %v3468_v24 = vpop.eup %3467  ;;  %v1311_v45 = vmul.f32 1.0614054, %v4382_v34 }
 0x36b   : > { %v1364_v57 = vmul.f32 %v4349_v53, %v1352_v9  ;;  %v1384_v10 = vmul.f32 %v4338_v48, %v1372_v13  ;;  %v1345_v15 = vadd.f32 1.4214138, %v1333_v39  ;;  %v4394_v61 = vpop.eup %3469  ;;  %vm1489_vm6 = vcmp.lt.f32.partialorder %v4299_v22, 0.0 }
 0x36c   : > { %v1374_v1 = vadd.f32 -0.28449672, %v1362_v14  ;;  %v1394_v6 = vadd.f32 0.2548296, %v1382_v21  ;;  %v1337_v37 = vmul.f32 %v4372_v42, %v1325_v63  ;;  %v3472_v56 = vpop.eup %3471  ;;  %v1315_v12 = vmul.f32 1.0614054, %v4394_v61 }
 0x36d   : > { %v1376_v40 = vadd.f32 -0.28449672, %v1364_v57  ;;  %v1396_v31 = vadd.f32 0.2548296, %v1384_v10  ;;  %v1357_v19 = vmul.f32 %v4360_v20, %v1345_v15  ;;  %v4403_v4 = vpop.eup %3473  ;;  %v1459_v43 = vmul.f32 1.442695, %v1438_v0 }
 0x36e   : > { %v1386_v11 = vmul.f32 %v4347_v51, %v1374_v1  ;;  %v1406_v28 = vmul.f32 %v4336_v36, %v1394_v6  ;;  %v1349_v41 = vadd.f32 1.4214138, %v1337_v37  ;;  %v1323_v36 = vadd.f32 -1.4531521, %v1311_v45  ;;  %v4412_v1 = vpop.eup %3475 }
 0x36f   : > { %v1388_v33 = vmul.f32 %v4349_v53, %v1376_v40  ;;  %v1408_v2 = vmul.f32 %v4338_v48, %v1396_v31  ;;  %v1369_v3 = vadd.f32 -0.28449672, %v1357_v19  ;;  %v1327_v49 = vadd.f32 -1.4531521, %v1315_v12 }
 0x370   : > { %v1398_v9 = vadd.f32 0.2548296, %v1386_v11  ;;  %v1466_v13 = vmul.f32 %v4353_v59, %v1406_v28  ;;  %v1361_v39 = vmul.f32 %v4372_v42, %v1349_v41  ;;  %v1335_v63 = vmul.f32 %v4382_v34, %v1323_v36 }
 0x371   : > { %v1400_v14 = vadd.f32 0.2548296, %v1388_v33  ;;  %v1468_v21 = vmul.f32 %v3458_v58, %v1408_v2  ;;  %v1381_v10 = vmul.f32 %v4360_v20, %v1369_v3  ;;  %v1339_v58 = vmul.f32 %v4394_v61, %v1327_v49 }
 0x372   : > { %v1410_v57 = vmul.f32 %v4347_v51, %v1398_v9  ;;  %v1478_v48 = vsub.f32 1.0, %v1466_v13  ;;  %v1373_v15 = vadd.f32 -0.28449672, %v1361_v39  ;;  %v1347_v51 = vadd.f32 1.4214138, %v1335_v63  ;;  %v4425_v13 = vpop.eup %3477 }
 0x373   : > { %v1412_v59 = vmul.f32 %v4349_v53, %v1400_v14  ;;  %v1480_v6 = vsub.f32 1.0, %v1468_v21  ;;  %v1393_v37 = vadd.f32 0.2548296, %v1381_v10  ;;  %v1351_v19 = vadd.f32 1.4214138, %v1339_v58 }
 0x374   : > { %v1470_v40 = vmul.f32 %v4366_v29, %v1410_v57  ;;  %v1502_v31 = vsub.f32 0.0, %v1478_v48  ;;  %v1385_v28 = vmul.f32 %v4372_v42, %v1373_v15  ;;  %v1359_v41 = vmul.f32 %v4382_v34, %v1347_v51 }
 0x375   : > { %v1472_v45 = vmul.f32 %v3464_v27, %v1412_v59  ;;  %v1504_v11 = vsub.f32 0.0, %v1480_v6  ;;  %v1405_v2 = vmul.f32 %v4360_v20, %v1393_v37  ;;  %v1363_v14 = vmul.f32 %v4394_v61, %v1351_v19 }
 0x376   : > { %v1482_v33 = vsub.f32 1.0, %v1470_v40  ;;  %v1514_v53 = vsel %vm1490_vm2, %v1502_v31, %v1478_v48  ;;  %v1397_v27 = vadd.f32 0.2548296, %v1385_v28  ;;  %v1371_v49 = vadd.f32 -0.28449672, %v1359_v41 }
 0x377   : > { %v1526_v12 = vadd.f32 1.0, %v1514_v53  ;;  %v1484_v29 = vsub.f32 1.0, %v1472_v45  ;;  %v1516_v9 = vsel %vm1492_vm3, %v1504_v11, %v1480_v6  ;;  %v1465_v36 = vmul.f32 %v3468_v24, %v1405_v2 }
 0x378   : > { %v1506_v3 = vsub.f32 0.0, %v1482_v33  ;;  %v1528_v39 = vadd.f32 1.0, %v1516_v9  ;;  %v1409_v20 = vmul.f32 %v4372_v42, %v1397_v27  ;;  %v1375_v10 = vadd.f32 -0.28449672, %v1363_v14 }
 0x379   : > { %v1508_v21 = vsub.f32 0.0, %v1484_v29  ;;  %v1538_v23 = vmul.f32 %v1526_v12, %v4312_v54  ;;  %v1477_v48 = vsub.f32 1.0, %v1465_v36  ;;  %v1383_v52 = vmul.f32 %v4382_v34, %v1371_v49 }
 0x37a   : > { %v1518_v57 = vsel %vm1494_vm4, %v1506_v3, %v1482_v33  ;;  %v1469_v59 = vmul.f32 %v3472_v56, %v1409_v20  ;;  %v1387_v15 = vmul.f32 %v4394_v61, %v1375_v10  ;;  %v1318_v42 = vmul.f32 1.0614054, %v4425_v13 }
 0x37b   : > { %v1530_v63 = vadd.f32 1.0, %v1518_v57  ;;  %v1520_v24 = vsel %vm1496_vm5, %v1508_v21, %v1484_v29  ;;  %v1501_v6 = vsub.f32 0.0, %v1477_v48  ;;  %v1540_v58 = vmul.f32 %v1528_v39, %v4321_v32 }
 0x37c   : > { %v1532_v0 = vadd.f32 1.0, %v1520_v24  ;;  %v1481_v54 = vsub.f32 1.0, %v1469_v59  ;;  %v1395_v40 = vadd.f32 0.2548296, %v1383_v52  ;;  %v1399_v56 = vadd.f32 0.2548296, %v1387_v15 }
 0x37d   : > { %v1542_v17 = vmul.f32 %v1530_v63, %v4326_v46  ;;  %v1513_v26 = vsel %vm1489_vm6, %v1501_v6, %v1477_v48  ;;  %v1330_v37 = vadd.f32 -1.4531521, %v1318_v42  ;;  %vm1493_vm7 = vcmp.lt.f32.partialorder %v4315_v5, 0.0 }
 0x37e   : > { %v1544_v31 = vmul.f32 %v1532_v0, %v4328_v55  ;;  %v1505_v45 = vsub.f32 0.0, %v1481_v54  ;;  %v1525_v11 = vadd.f32 1.0, %v1513_v26  ;;  %v1407_v28 = vmul.f32 %v4382_v34, %v1395_v40 }
 0x37f   : > { %v3392_v51 = vpack.c.bf16 %v1542_v17, %v1538_v23  ;;  %v1411_v46 = vmul.f32 %v4394_v61, %v1399_v56  ;;  %v1342_v32 = vmul.f32 %v4425_v13, %v1330_v37  ;;  %v1225_v55 = vmul.f32 0.5, %v4292_v47 }
 0x380   : > { %v3396_v19 = vpack.c.bf16 %v1544_v31, %v1540_v58  ;;  %v1229_v22 = vmul.f32 0.5, %v4309_v35  ;;  %v1517_v33 = vsel %vm1493_vm7, %v1505_v45, %v1481_v54  ;;  %v1467_v53 = vmul.f32 %v4403_v4, %v1407_v28 }
 0x381   : > { %3393 = vmatprep.subr.bf16.mxu0 %v3392_v51  ;;  %v1529_v2 = vadd.f32 1.0, %v1517_v33  ;;  %v1471_v41 = vmul.f32 %v4412_v1, %v1411_v46  ;;  %v1354_v34 = vadd.f32 1.4214138, %v1342_v32  ;;  %v4453_v12 = vmul.f32 0.70710677, %v4376_v8 }
 0x382   : > { %3397 = vmatprep.subr.bf16.mxu1 %v3396_v19  ;;  %v1537_v5 = vmul.f32 %v1525_v11, %v1225_v55  ;;  %v1479_v61 = vsub.f32 1.0, %v1467_v53  ;;  %3479 = vpow2.f32 %v1459_v43  ;;  %v4456_v29 = vmul.f32 0.70710677, %v4389_v18 }
 0x383   : > { %v1541_v47 = vmul.f32 %v1529_v2, %v1229_v22  ;;  %v1483_v9 = vsub.f32 1.0, %v1471_v41  ;;  %v1366_v35 = vmul.f32 %v4425_v13, %v1354_v34  ;;  %v1260_v4 = vand.u32 2147483647, %v4453_v12 }
 0x384   : > { %vm1491_vm8 = vcmp.lt.f32.partialorder %v4318_v30, 0.0  ;;  %v1503_v27 = vsub.f32 0.0, %v1479_v61  ;;  %v1257_v1 = vand.u32 2147483647, %v4456_v29  ;;  %v4464_v3 = vmul.f32 %v4331_v62, %v4264_v7 }
 0x385   : > { %v3394_v36 = vpack.c.bf16 %v1541_v47, %v1537_v5  ;;  %v1507_v14 = vsub.f32 0.0, %v1483_v9  ;;  %v1378_v43 = vadd.f32 -0.28449672, %v1366_v35  ;;  %v1272_v21 = vmul.f32 0.3275911, %v1260_v4 }
 0x386   : > { %vm1495_vm9 = vcmp.lt.f32.partialorder %v4334_v25, 0.0  ;;  %v1515_v39 = vsel %vm1491_vm8, %v1503_v27, %v1479_v61  ;;  %v1269_v20 = vmul.f32 0.3275911, %v1257_v1  ;;  %v1227_v48 = vmul.f32 0.5, %v4305_v44 }
 0x387   : > { %3395 = vmatpush1.bf16.msra.mxu0 %v3394_v36  ;;  %v1519_v49 = vsel %vm1495_vm9, %v1507_v14, %v1483_v9  ;;  %v1527_v57 = vadd.f32 1.0, %v1515_v39  ;;  %v1390_v30 = vmul.f32 %v4425_v13, %v1378_v43  ;;  %v1284_v23 = vadd.f32 1.0, %v1272_v21 }
 0x388   : > { %v1231_v10 = vmul.f32 0.5, %v4324_v38  ;;  %v1531_v7 = vadd.f32 1.0, %v1519_v49  ;;  %v1281_v62 = vadd.f32 1.0, %v1269_v20  ;;  %v4471_v24 = vmul.f32 0.70710677, %v4464_v3 }
 0x389   : > { %v1402_v63 = vadd.f32 0.2548296, %v1390_v30  ;;  %3481 = vrcp.f32 %v1284_v23  ;;  %v1539_v25 = vmul.f32 %v1527_v57, %v1227_v48  ;;  %v1428_v17 = vmul.f32 %v1260_v4, %v1260_v4 }
 0x38a   : > { %v1543_v59 = vmul.f32 %v1531_v7, %v1231_v10  ;;  %3483 = vrcp.f32 %v1281_v62  ;;  %v1259_v0 = vand.u32 2147483647, %v4471_v24  ;;  %v1425_v54 = vmul.f32 %v1257_v1, %v1257_v1 }
 0x38b   : > { %v1414_v52 = vmul.f32 %v4425_v13, %v1402_v63  ;;  %vm1498_vm10 = vcmp.lt.f32.partialorder %v4358_v16, 0.0  ;;  %v1440_v56 = vsub.f32 0.0, %v1428_v17  ;;  %v1234_v13 = vmul.f32 0.5, %v4345_v50 }
 0x38c   : > { %v3480_v6 = vpop.eup %3479  ;;  %v3398_v15 = vpack.c.bf16 %v1543_v59, %v1539_v25  ;;  %v1271_v44 = vmul.f32 0.3275911, %v1259_v0  ;;  %v1437_v11 = vsub.f32 0.0, %v1425_v54  ;;  %v1427_v22 = vmul.f32 %v1259_v0, %v1259_v0 }
 0x38d   : > { %v1474_v42 = vmul.f32 %v3480_v6, %v1414_v52  ;;  %v1463_v32 = vmul.f32 1.442695, %v1440_v56  ;;  %vm1500_vm11 = vcmp.lt.f32.partialorder %v4453_v12, 0.0  ;;  %vm1497_vm12 = vcmp.lt.f32.partialorder %v4456_v29, 0.0  ;;  %v1549_v12 = vld [vmem:[%s4904_s3] sm:$0xff] }
 0x38e   : > { %3399 = vmatpush1.bf16.msra.mxu1 %v3398_v15  ;;  %v1283_v58 = vadd.f32 1.0, %v1271_v44  ;;  %v1457_v53 = vmul.f32 1.442695, %v1437_v11  ;;  %v1439_v5 = vsub.f32 0.0, %v1427_v22  ;;  %v1236_v44 = vmul.f32 0.5, %v4376_v8  ;;  %v1558_v11 = vpop.permute.xlu1 %1557 }
 0x38f   : > { %v1486_v38 = vsub.f32 1.0, %v1474_v42  ;;  %vm1499_vm14 = vcmp.lt.f32.partialorder %v4471_v24, 0.0  ;;  %v1551_v24 = vld [vmem:[%s4904_s3 + $0x10] sm:$0xff] }
 0x390   : > { %3485 = vrcp.f32 %v1283_v58  ;;  %v1461_v27 = vmul.f32 1.442695, %v1439_v5  ;;  %v1233_v58 = vmul.f32 0.5, %v4389_v18  ;;  %v1550_v18 = vld [vmem:[%s4904_s3 + $0x8] sm:$0xff] }
 0x391   : > { %v1510_v40 = vsub.f32 0.0, %v1486_v38  ;;  %3487 = vpow2.f32 %v1463_v32 }
 0x392   : > { %3489 = vpow2.f32 %v1457_v53  ;;  %v1568_v5 = vpop.permute.xlu1 %1567 }
 0x393   : > { %v3482_v31 = vpop.eup %3481  ;;  %v1522_v26 = vsel %vm1498_vm10, %v1510_v40, %v1486_v38  ;;  %3491 = vpow2.f32 %v1461_v27 }
 0x394   : > { %v3484_v37 = vpop.eup %3483  ;;  %v1534_v51 = vadd.f32 1.0, %v1522_v26  ;;  %v1320_v45 = vmul.f32 1.0614054, %v3482_v31 }
 0x395   : > { %v1317_v28 = vmul.f32 1.0614054, %v3484_v37 }
 0x396   : > { %v1546_v19 = vmul.f32 %v1534_v51, %v1234_v13  ;;  %v1332_v46 = vadd.f32 -1.4531521, %v1320_v45 }
 0x397   : > { %v1329_v55 = vadd.f32 -1.4531521, %v1317_v28  ;;  %v1563_v28 = vpop.permute.xlu0 %1562 }
 0x398   : > { %1584 = vmatprep.subr.mxu0 %v1546_v19  ;;  %v1344_v33 = vmul.f32 %v3482_v31, %v1332_v46 }
 0x399   : > { %v1341_v2 = vmul.f32 %v3484_v37, %v1329_v55 }
 0x39a   : > { %v1356_v16 = vadd.f32 1.4214138, %v1344_v33  ;;  %v3486_v41 = vpop.eup %3485 }
 0x39b   : > { %v1353_v34 = vadd.f32 1.4214138, %v1341_v2  ;;  %v1319_v50 = vmul.f32 1.0614054, %v3486_v41  ;;  %v3488_v57 = vpop.eup %3487 }
 0x39c   : > { %v1368_v61 = vmul.f32 %v3482_v31, %v1356_v16  ;;  %v3490_v23 = vpop.eup %3489 }
 0x39d   : > { %v1365_v47 = vmul.f32 %v3484_v37, %v1353_v34  ;;  %v1331_v35 = vadd.f32 -1.4531521, %v1319_v50  ;;  %v3492_v42 = vpop.eup %3491 }
 0x39e   : > { %v1380_v9 = vadd.f32 -0.28449672, %v1368_v61 }
 0x39f   : > { %v1377_v4 = vadd.f32 -0.28449672, %v1365_v47  ;;  %v1343_v36 = vmul.f32 %v3486_v41, %v1331_v35 }
 0x3a0   : > { %v1392_v1 = vmul.f32 %v3482_v31, %v1380_v9 }
 0x3a1   : > { %v1389_v14 = vmul.f32 %v3484_v37, %v1377_v4  ;;  %v1355_v21 = vadd.f32 1.4214138, %v1343_v36 }
 0x3a2   : > { %v1404_v43 = vadd.f32 0.2548296, %v1392_v1 }
 0x3a3   : > { %v1401_v39 = vadd.f32 0.2548296, %v1389_v14  ;;  %v1367_v49 = vmul.f32 %v3486_v41, %v1355_v21  ;;  %v1746_v14 = vld [vmem:[%s4906_s5] sm:$0xff] }
 0x3a4   : > { %v1416_v20 = vmul.f32 %v3482_v31, %v1404_v43 }
 0x3a5   : > { %v1413_v30 = vmul.f32 %v3484_v37, %v1401_v39  ;;  %v1379_v10 = vadd.f32 -0.28449672, %v1367_v49  ;;  %v1235_v37 = vmul.f32 0.5, %v4464_v3 }
 0x3a6   : > { %v1476_v48 = vmul.f32 %v3488_v57, %v1416_v20  ;;  %v1747_v57 = vld [vmem:[%s4906_s5 + $0x8] sm:$0xff] }
 0x3a7   : > { %v1473_v7 = vmul.f32 %v3490_v23, %v1413_v30  ;;  %v1391_v63 = vmul.f32 %v3486_v41, %v1379_v10  ;;  %v1748_v23 = vld [vmem:[%s4906_s5 + $0x10] sm:$0xff] }
 0x3a8   : > { %v1488_v62 = vsub.f32 1.0, %v1476_v48 }
 0x3a9   : > { %v1485_v25 = vsub.f32 1.0, %v1473_v7  ;;  %v1403_v52 = vadd.f32 0.2548296, %v1391_v63 }
 0x3aa   : > { %v1512_v59 = vsub.f32 0.0, %v1488_v62 }
 0x3ab   : > { %v1509_v0 = vsub.f32 0.0, %v1485_v25  ;;  %v1415_v15 = vmul.f32 %v3486_v41, %v1403_v52 }
 0x3ac   : > { %v1524_v6 = vsel %vm1500_vm11, %v1512_v59, %v1488_v62  ;;  %vm2764_vm11 = vcmask 1043456  }
 0x3ad   : > { %v1536_v38 = vadd.f32 1.0, %v1524_v6  ;;  %v1521_v17 = vsel %vm1497_vm12, %v1509_v0, %v1485_v25  ;;  %v1475_v40 = vmul.f32 %v3492_v42, %v1415_v15 }
 0x3ae   : > { %v1533_v54 = vadd.f32 1.0, %v1521_v17 }
 0x3af   : > { %v1548_v31 = vmul.f32 %v1536_v38, %v1236_v44  ;;  %v1487_v56 = vsub.f32 1.0, %v1475_v40 }
 0x3b0   : > { %v1545_v26 = vmul.f32 %v1533_v54, %v1233_v58 }
 0x3b1   : > { %1667 = vmatprep.subr.mxu1 %v1548_v31  ;;  %v1511_v29 = vsub.f32 0.0, %v1487_v56 }
 0x3b2   : > { %1585 = vmatpush1.msra.mxu0 %v1545_v26 }
 0x3b3   : > { %3057 = vmatmul.mubr.msk.f32.vlgmr.msra.gmra.mrb[18].mxu0 %vm1570_vm13, %v1549_v12  ;;  %v1523_v8 = vsel %vm1499_vm14, %v1511_v29, %v1487_v56 }
 0x3b4   : > { %1650 = vmatprep.mubr.f32.mxu0 %v3598_v60  ;;  %v1535_v13 = vadd.f32 1.0, %v1523_v8 }
 0x3b6   : > { %v1547_v51 = vmul.f32 %v1535_v13, %v1235_v37 }
 0x3b7   : > { %3058 = vmatmul.mubr.msk.f32.gmra.mrb[20].mxu0 %vm1570_vm13, %v1550_v18 }
 0x3b8   : > { %1656 = vmatprep.mubr.f32.mxu0 %v3598_v60  ;;  %1668 = vmatpush1.msra.mxu1 %v1547_v51 }
 0x3b9   : > { %3060 = vmatmul.mubr.msk.f32.vlgmr.msra.gmra.mrb[18].mxu1 %vm1570_vm13, %v1549_v12  ;;  %v2329_v12 = vld [vmem:[%s4908_s7] sm:$0xff] }
 0x3ba   : > { %1733 = vmatprep.mubr.f32.mxu1 %v3598_v60 }
 0x3bb   : > { %3059 = vmatmul.mubr.msk.f32.gmra.mrb[22].mxu0 %vm1570_vm13, %v1551_v24 }
 0x3bc   : > { %1822 = vmatprep.mubr.f32.mxu0 %v3598_v60 }
 0x3bd   : > { %3061 = vmatmul.mubr.msk.f32.gmra.mrb[20].mxu1 %vm1570_vm13, %v1550_v18 }
 0x3be   : > { %1739 = vmatprep.mubr.f32.mxu1 %v3598_v60 }
 0x3c1   : > { %3062 = vmatmul.mubr.msk.f32.gmra.mrb[22].mxu1 %vm1570_vm13, %v1551_v24 }
 0x3c2   : > { %1905 = vmatprep.mubr.f32.mxu1 %v3598_v60 }
 0x486   : > { %v1646_v3 = vpop.f32.mrb[18].mxu0 }
 0x487   : > { %v1648_v45 = vpop.f32.mrb[19].mxu0  ;;  %v1647_v46 = vadd.f32 %v1646_v3, %v1558_v11 }
 0x488   : > { %v1649_v22 = vadd.f32 %v1648_v45, %v1558_v11 }
 0x48a   : > { %v1652_v19 = vpop.f32.mrb[20].mxu0 }
 0x48b   : > { %v1653_v32 = vadd.f32 %v1652_v19, %v1563_v28  ;;  %v1654_v55 = vpop.f32.mrb[21].mxu0 }
 0x48c   : > { %v1655_v33 = vadd.f32 %v1654_v55, %v1563_v28  ;;  %v1729_v53 = vpop.f32.mrb[18].mxu1 }
 0x48d   : > { %v3402_v2 = vpack.c.bf16 %v1653_v32, %v1647_v46  ;;  %v1731_v16 = vpop.f32.mrb[19].mxu1  ;;  %v1730_v50 = vadd.f32 %v1729_v53, %v1558_v11 }
 0x48e   : > { %v3400_v41 = vpack.c.bf16 %v1655_v33, %v1649_v22  ;;  %v1658_v34 = vpop.f32.mrb[22].mxu0  ;;  %v1732_v27 = vadd.f32 %v1731_v16, %v1558_v11 }
 0x48f   : > { %v1660_v61 = vpop.f32.mrb[23].mxu0  ;;  %v1659_v36 = vadd.f32 %v1658_v34, %v1568_v5 }
 0x490   : > { %v1661_v47 = vadd.f32 %v1660_v61, %v1568_v5  ;;  %3401 = vmatprep.subr.bf16.mxu0 %v3400_v41  ;;  %v1735_v9 = vpop.f32.mrb[20].mxu1 }
 0x491   : > { %3403 = vmatpush1.bf16.msra.mxu0 %v3402_v2  ;;  %v1736_v35 = vadd.f32 %v1735_v9, %v1563_v28  ;;  %v1737_v4 = vpop.f32.mrb[21].mxu1 }
 0x492   : > { %1762 = vmatprep.subr.mxu0 %v1661_v47  ;;  %v1738_v1 = vadd.f32 %v1737_v4, %v1563_v28 }
 0x493   : > { %v3406_v43 = vpack.c.bf16 %v1736_v35, %v1730_v50 }
 0x494   : > { %v3404_v21 = vpack.c.bf16 %v1738_v1, %v1732_v27  ;;  %v1741_v39 = vpop.f32.mrb[22].mxu1 }
 0x495   : > { %1763 = vmatpush1.msra.mxu0 %v1659_v36  ;;  %v1743_v20 = vpop.f32.mrb[23].mxu1  ;;  %v1742_v30 = vadd.f32 %v1741_v39, %v1568_v5 }
 0x496   : > { %3063 = vmatmul.mubr.msk.f32.vlgmr.msra.gmra.mrb[24].mxu0 %vm1570_vm13, %v1746_v14  ;;  %v1744_v49 = vadd.f32 %v1743_v20, %v1568_v5  ;;  %3405 = vmatprep.subr.bf16.mxu1 %v3404_v21 }
 0x497   : > { %1828 = vmatprep.mubr.f32.mxu0 %v3598_v60  ;;  %3407 = vmatpush1.bf16.msra.mxu1 %v3406_v43 }
 0x498   : > { %1845 = vmatprep.subr.mxu1 %v1744_v49 }
 0x49a   : > { %3064 = vmatmul.mubr.msk.f32.gmra.mrb[26].mxu0 %vm1570_vm13, %v1747_v57 }
 0x49b   : > { %1834 = vmatprep.mubr.f32.mxu0 %v3598_v60  ;;  %1846 = vmatpush1.msra.mxu1 %v1742_v30 }
 0x49c   : > { %3066 = vmatmul.mubr.msk.f32.vlgmr.msra.gmra.mrb[24].mxu1 %vm1570_vm13, %v1746_v14 }
 0x49d   : > { %1911 = vmatprep.mubr.f32.mxu1 %v3598_v60 }
 0x49e   : > { %3065 = vmatmul.mubr.msk.f32.gmra.mrb[28].mxu0 %vm1570_vm13, %v1748_v23 }
 0x49f   : > { %2420 = vmatprep.mubr.f32.mxu0 %v3598_v60 }
 0x4a0   : > { %3067 = vmatmul.mubr.msk.f32.gmra.mrb[26].mxu1 %vm1570_vm13, %v1747_v57 }
 0x4a1   : > { %1917 = vmatprep.mubr.f32.mxu1 %v3598_v60 }
 0x4a4   : > { %3068 = vmatmul.mubr.msk.f32.gmra.mrb[28].mxu1 %vm1570_vm13, %v1748_v23 }
 0x4a5   : > { %2503 = vmatprep.mubr.f32.mxu1 %v3598_v60 }
 0x569   : > { %v1824_v48 = vpop.f32.mrb[24].mxu0 }
 0x56a   : > { %v1826_v10 = vpop.f32.mrb[25].mxu0 }
 0x56b   : > { %v1924_v7 = vadd.f32 %v1826_v10, %v1824_v48 }
 0x56d   : > { %v1830_v62 = vpop.f32.mrb[26].mxu0 }
 0x56e   : > { %v1832_v63 = vpop.f32.mrb[27].mxu0 }
 0x56f   : > { %v1929_v25 = vadd.f32 %v1832_v63, %v1830_v62  ;;  %v1907_v59 = vpop.f32.mrb[24].mxu1 }
 0x570   : > { %v1925_v52 = vadd.f32 %v1924_v7, %v1907_v59  ;;  %v1909_v0 = vpop.f32.mrb[25].mxu1 }
 0x571   : > { %v1836_v6 = vpop.f32.mrb[28].mxu0 }
 0x572   : > { %v1838_v15 = vpop.f32.mrb[29].mxu0  ;;  %v1926_v42 = vadd.f32 %v1925_v52, %v1909_v0 }
 0x573   : > { %v1934_v44 = vadd.f32 %v1838_v15, %v1836_v6  ;;  %v1913_v38 = vpop.f32.mrb[26].mxu1 }
 0x574   : > { %v1930_v17 = vadd.f32 %v1929_v25, %v1913_v38  ;;  %v1915_v58 = vpop.f32.mrb[27].mxu1  ;;  %1927 = vadd.xlane.f32.xlu1 %v1926_v42 }
 0x576   : > { %v1931_v54 = vadd.f32 %v1930_v17, %v1915_v58 }
 0x577   : > { %v1919_v40 = vpop.f32.mrb[28].mxu1 }
 0x578   : > { %v1935_v31 = vadd.f32 %v1934_v44, %v1919_v40  ;;  %1932 = vadd.xlane.f32.xlu0 %v1931_v54  ;;  %v1921_v26 = vpop.f32.mrb[29].mxu1 }
 0x57a   : > { %v1936_v56 = vadd.f32 %v1935_v31, %v1921_v26 }
 0x57c   : > { %1937 = vadd.xlane.f32.xlu1 %v1936_v56 }
 0x58e   : > { %2334 = vperm.xlu0 %3438, %v2329_v12  }
 0x601   : > { %v1928_v29 = vpop.xlane.xlu1 %1927 }
 0x602   : > { %v1939_v8 = vmul.f32 0.001953125, %v1928_v29 }
 0x604   : > { %v1942_v18 = vsub.f32 %v1824_v48, %v1939_v8  ;;  %v1943_v37 = vsub.f32 %v1826_v10, %v1939_v8  ;;  %v4528_v13 = vsub.f32 %v1907_v59, %v1939_v8  ;;  %v1945_v24 = vsub.f32 %v1909_v0, %v1939_v8 }
 0x605   : > { %v1933_v51 = vpop.xlane.xlu0 %1932 }
 0x606   : > { %v1940_v3 = vmul.f32 0.001953125, %v1933_v51  ;;  %v1954_v45 = vmul.f32 %v1942_v18, %v1942_v18  ;;  %v1955_v11 = vmul.f32 %v1943_v37, %v1943_v37  ;;  %v1956_v28 = vmul.f32 %v4528_v13, %v4528_v13 }
 0x607   : > { %v1957_v33 = vmul.f32 %v1945_v24, %v1945_v24 }
 0x608   : > { %v4532_v19 = vsub.f32 %v1830_v62, %v1940_v3  ;;  %v1947_v46 = vsub.f32 %v1832_v63, %v1940_v3  ;;  %v1966_v32 = vadd.f32 %v1955_v11, %v1954_v45  ;;  %v4534_v55 = vsub.f32 %v1913_v38, %v1940_v3 }
 0x609   : > { %v1938_v22 = vpop.xlane.xlu1 %1937  ;;  %v1949_v53 = vsub.f32 %v1915_v58, %v1940_v3 }
 0x60a   : > { %v1941_v2 = vmul.f32 0.001953125, %v1938_v22  ;;  %v1967_v16 = vadd.f32 %v1966_v32, %v1956_v28  ;;  %v1958_v41 = vmul.f32 %v4532_v19, %v4532_v19  ;;  %v1959_v34 = vmul.f32 %v1947_v46, %v1947_v46 }
 0x60b   : > { %v1960_v5 = vmul.f32 %v4534_v55, %v4534_v55  ;;  %v1961_v35 = vmul.f32 %v1949_v53, %v1949_v53 }
 0x60c   : > { %v4540_v61 = vsub.f32 %v1836_v6, %v1941_v2  ;;  %v4542_v50 = vsub.f32 %v1838_v15, %v1941_v2  ;;  %v1968_v47 = vadd.f32 %v1967_v16, %v1957_v33  ;;  %v1971_v9 = vadd.f32 %v1959_v34, %v1958_v41 }
 0x60d   : > { %v4544_v4 = vsub.f32 %v1919_v40, %v1941_v2  ;;  %v4546_v1 = vsub.f32 %v1921_v26, %v1941_v2 }
 0x60e   : > { %1969 = vadd.xlane.f32.xlu1 %v1968_v47  ;;  %v1972_v27 = vadd.f32 %v1971_v9, %v1960_v5  ;;  %v1962_v36 = vmul.f32 %v4540_v61, %v4540_v61  ;;  %v1963_v14 = vmul.f32 %v4542_v50, %v4542_v50 }
 0x60f   : > { %v1964_v21 = vmul.f32 %v4544_v4, %v4544_v4  ;;  %v1965_v20 = vmul.f32 %v4546_v1, %v4546_v1 }
 0x610   : > { %v1973_v43 = vadd.f32 %v1972_v27, %v1961_v35  ;;  %v1976_v39 = vadd.f32 %v1963_v14, %v1962_v36 }
 0x612   : > { %1974 = vadd.xlane.f32.xlu1 %v1973_v43  ;;  %v1977_v49 = vadd.f32 %v1976_v39, %v1964_v21 }
 0x614   : > { %v1978_v57 = vadd.f32 %v1977_v49, %v1965_v20 }
 0x616   : > { %1979 = vadd.xlane.f32.xlu1 %v1978_v57 }
 0x69b   : > { %v1970_v30 = vpop.xlane.xlu1 %1969 }
 0x69c   : > { %v1981_v23 = vmul.f32 0.001953125, %v1970_v30 }
 0x69e   : > { %v1984_v48 = vadd.f32 1e-05, %v1981_v23 }
 0x69f   : > { %v1975_v10 = vpop.xlane.xlu1 %1974 }
 0x6a0   : > { %3493 = vrsqrt.f32 %v1984_v48  ;;  %v1982_v7 = vmul.f32 0.001953125, %v1975_v10 }
 0x6a2   : > { %v1985_v62 = vadd.f32 1e-05, %v1982_v7 }
 0x6a3   : > { %v1980_v63 = vpop.xlane.xlu1 %1979 }
 0x6a4   : > { %3495 = vrsqrt.f32 %v1985_v62  ;;  %v1983_v59 = vmul.f32 0.001953125, %v1980_v63 }
 0x6a6   : > { %v1986_v38 = vadd.f32 1e-05, %v1983_v59 }
 0x6a8   : > { %3497 = vrsqrt.f32 %v1986_v38 }
 0x6aa   : > { %v3494_v25 = vpop.eup %3493 }
 0x6ab   : > { %v1991_v52 = vmul.f32 %v3494_v25, %v1943_v37  ;;  %v1993_v0 = vmul.f32 %v3494_v25, %v1945_v24  ;;  %v4560_v42 = vmul.f32 %v3494_v25, %v1942_v18  ;;  %v4577_v28 = vmul.f32 %v3494_v25, %v4528_v13 }
 0x6ad   : > { %v4556_v6 = vmul.f32 0.70710677, %v1991_v52  ;;  %v4558_v15 = vmul.f32 0.70710677, %v1993_v0  ;;  %v4567_v12 = vmul.f32 0.70710677, %v4560_v42 }
 0x6ae   : > { %v3496_v44 = vpop.eup %3495  ;;  %v4580_v5 = vmul.f32 0.5, %v1991_v52  ;;  %v4586_v35 = vmul.f32 0.70710677, %v4577_v28  ;;  %v4589_v21 = vmul.f32 0.5, %v1993_v0 }
 0x6af   : > { %v1995_v17 = vmul.f32 %v3496_v44, %v1947_v46  ;;  %v2027_v58 = vand.u32 2147483647, %v4556_v6  ;;  %v1997_v54 = vmul.f32 %v3496_v44, %v1949_v53  ;;  %v2029_v40 = vand.u32 2147483647, %v4558_v15 }
 0x6b0   : > { %v4574_v11 = vmul.f32 %v3496_v44, %v4532_v19  ;;  %v2026_v22 = vand.u32 2147483647, %v4567_v12  ;;  %v4592_v30 = vmul.f32 %v3496_v44, %v4534_v55  ;;  %v2028_v7 = vand.u32 2147483647, %v4586_v35 }
 0x6b1   : > { %v4564_v31 = vmul.f32 0.70710677, %v1995_v17  ;;  %v2039_v26 = vmul.f32 0.3275911, %v2027_v58  ;;  %v2195_v56 = vmul.f32 %v2027_v58, %v2027_v58  ;;  %v4569_v29 = vmul.f32 0.70710677, %v1997_v54 }
 0x6b2   : > { %v2041_v8 = vmul.f32 0.3275911, %v2029_v40  ;;  %v2197_v18 = vmul.f32 %v2029_v40, %v2029_v40  ;;  %v4583_v19 = vmul.f32 0.70710677, %v4574_v11  ;;  %v2038_v13 = vmul.f32 0.3275911, %v2026_v22  ;;  %v4594_v23 = vpop.eup %3497 }
 0x6b3   : > { %v2031_v37 = vand.u32 2147483647, %v4564_v31  ;;  %v2051_v51 = vadd.f32 1.0, %v2039_v26  ;;  %v2207_v24 = vsub.f32 0.0, %v2195_v56  ;;  %v2033_v3 = vand.u32 2147483647, %v4569_v29 }
 0x6b4   : > { %v2053_v45 = vadd.f32 1.0, %v2041_v8  ;;  %v2209_v2 = vsub.f32 0.0, %v2197_v18  ;;  %v2194_v9 = vmul.f32 %v2026_v22, %v2026_v22  ;;  %v2030_v14 = vand.u32 2147483647, %v4583_v19 }
 0x6b5   : > { %v2043_v46 = vmul.f32 0.3275911, %v2031_v37  ;;  %3499 = vrcp.f32 %v2051_v51  ;;  %v2199_v32 = vmul.f32 %v2031_v37, %v2031_v37  ;;  %v2045_v33 = vmul.f32 0.3275911, %v2033_v3 }
 0x6b6   : > { %3501 = vrcp.f32 %v2053_v45  ;;  %v2201_v53 = vmul.f32 %v2033_v3, %v2033_v3  ;;  %v2220_v34 = vmul.f32 1.442695, %v2207_v24  ;;  %v2224_v36 = vmul.f32 1.442695, %v2209_v2 }
 0x6b7   : > { %v2055_v16 = vadd.f32 1.0, %v2043_v46  ;;  %v2211_v41 = vsub.f32 0.0, %v2199_v32  ;;  %v2057_v47 = vadd.f32 1.0, %v2045_v33  ;;  %v2050_v39 = vadd.f32 1.0, %v2038_v13 }
 0x6b8   : > { %v2213_v27 = vsub.f32 0.0, %v2201_v53  ;;  %v2042_v20 = vmul.f32 0.3275911, %v2030_v14  ;;  %v2198_v49 = vmul.f32 %v2030_v14, %v2030_v14  ;;  %v2206_v57 = vsub.f32 0.0, %v2194_v9 }
 0x6b9   : > { %3503 = vrcp.f32 %v2055_v16  ;;  %v2228_v43 = vmul.f32 1.442695, %v2211_v41  ;;  %v4596_v48 = vmul.f32 0.5, %v1995_v17  ;;  %v4598_v10 = vmul.f32 0.5, %v1997_v54 }
 0x6ba   : > { %3505 = vrcp.f32 %v2057_v47  ;;  %v2232_v62 = vmul.f32 1.442695, %v2213_v27  ;;  %v2054_v63 = vadd.f32 1.0, %v2042_v20  ;;  %v4602_v25 = vmul.f32 0.70710677, %v4592_v30 }
 0x6bb   : > { %3507 = vpow2.f32 %v2220_v34  ;;  %v2210_v55 = vsub.f32 0.0, %v2198_v49  ;;  %v2040_v52 = vmul.f32 0.3275911, %v2028_v7  ;;  %v2196_v0 = vmul.f32 %v2028_v7, %v2028_v7 }
 0x6bc   : > { %3509 = vrcp.f32 %v2050_v39  ;;  %v2218_v17 = vmul.f32 1.442695, %v2206_v57  ;;  %v2032_v58 = vand.u32 2147483647, %v4602_v25  ;;  %v4613_v56 = vmul.f32 %v4594_v23, %v4542_v50 }
 0x6bd   : > { %3511 = vpow2.f32 %v2224_v36  ;;  %v2052_v40 = vadd.f32 1.0, %v2040_v52  ;;  %v2208_v26 = vsub.f32 0.0, %v2196_v0  ;;  %v2226_v3 = vmul.f32 1.442695, %v2210_v55 }
 0x6be   : > { %3513 = vpow2.f32 %v2228_v43  ;;  %v2044_v18 = vmul.f32 0.3275911, %v2032_v58  ;;  %v2200_v37 = vmul.f32 %v2032_v58, %v2032_v58  ;;  %v4626_v41 = vmul.f32 0.70710677, %v4613_v56 }
 0x6bf   : > { %v4604_v59 = vpop.eup %3499  ;;  %3515 = vrcp.f32 %v2054_v63  ;;  %v2222_v45 = vmul.f32 1.442695, %v2208_v26  ;;  %v4644_v58 = vmul.f32 %v4594_v23, %v4546_v1  ;;  %vm2267_vm15 = vcmp.lt.f32.partialorder %v4556_v6, 0.0 }
 0x6c0   : > { %v4606_v44 = vpop.eup %3501  ;;  %v2087_v38 = vmul.f32 1.0614054, %v4604_v59  ;;  %3517 = vpow2.f32 %v2232_v62  ;;  %v2056_v33 = vadd.f32 1.0, %v2044_v18  ;;  %v2212_v53 = vsub.f32 0.0, %v2200_v37 }
 0x6c1   : > { %v2089_v54 = vmul.f32 1.0614054, %v4606_v44  ;;  %3519 = vrcp.f32 %v2052_v40  ;;  %v2035_v14 = vand.u32 2147483647, %v4626_v41  ;;  %vm2269_vm0 = vcmp.lt.f32.partialorder %v4558_v15, 0.0 }
 0x6c2   : > { %v2099_v8 = vadd.f32 -1.4531521, %v2087_v38  ;;  %3521 = vpow2.f32 %v2218_v17  ;;  %v2230_v13 = vmul.f32 1.442695, %v2212_v53  ;;  %vm2271_vm1 = vcmp.lt.f32.partialorder %v4564_v31, 0.0 }
 0x6c3   : > { %v4615_v51 = vpop.eup %3503  ;;  %v2101_v24 = vadd.f32 -1.4531521, %v2089_v54  ;;  %3523 = vrcp.f32 %v2056_v33  ;;  %v2047_v63 = vmul.f32 0.3275911, %v2035_v14  ;;  %v4638_v55 = vmul.f32 %v2035_v14, %v2035_v14 }
 0x6c4   : > { %v4617_v46 = vpop.eup %3505  ;;  %v2091_v32 = vmul.f32 1.0614054, %v4615_v51  ;;  %v2111_v22 = vmul.f32 %v4604_v59, %v2099_v8  ;;  %3525 = vpow2.f32 %v2226_v3  ;;  %vm2273_vm2 = vcmp.lt.f32.partialorder %v4569_v29, 0.0 }
 0x6c5   : > { %v4621_v50 = vpop.eup %3507  ;;  %v2093_v2 = vmul.f32 1.0614054, %v4617_v46  ;;  %v2113_v16 = vmul.f32 %v4606_v44, %v2101_v24  ;;  %3527 = vpow2.f32 %v2222_v45  ;;  %v2059_v3 = vadd.f32 1.0, %v2047_v63 }
 0x6c6   : > { %v2103_v34 = vadd.f32 -1.4531521, %v2091_v32  ;;  %v2123_v47 = vadd.f32 1.4214138, %v2111_v22  ;;  %v4628_v9 = vpop.eup %3509  ;;  %3529 = vpow2.f32 %v2230_v13  ;;  %v2215_v33 = vsub.f32 0.0, %v4638_v55 }
 0x6c7   : > { %v2105_v27 = vadd.f32 -1.4531521, %v2093_v2  ;;  %v2125_v36 = vadd.f32 1.4214138, %v2113_v16  ;;  %v3512_v43 = vpop.eup %3511  ;;  %v2086_v49 = vmul.f32 1.0614054, %v4628_v9  ;;  %3531 = vrcp.f32 %v2059_v3 }
 0x6c8   : > { %v2115_v39 = vmul.f32 %v4615_v51, %v2103_v34  ;;  %v2135_v20 = vmul.f32 %v4604_v59, %v2123_v47  ;;  %v4634_v57 = vpop.eup %3513  ;;  %v4657_v34 = vmul.f32 %v4594_v23, %v4540_v61  ;;  %vm2266_vm3 = vcmp.lt.f32.partialorder %v4567_v12, 0.0 }
 0x6c9   : > { %v2117_v7 = vmul.f32 %v4617_v46, %v2105_v27  ;;  %v2137_v62 = vmul.f32 %v4606_v44, %v2125_v36  ;;  %v4640_v52 = vpop.eup %3515  ;;  %v2098_v17 = vadd.f32 -1.4531521, %v2086_v49  ;;  %v2236_v6 = vmul.f32 1.442695, %v2215_v33 }
 0x6ca   : > { %v2127_v0 = vadd.f32 1.4214138, %v2115_v39  ;;  %v2147_v38 = vadd.f32 -0.28449672, %v2135_v20  ;;  %v2090_v26 = vmul.f32 1.0614054, %v4640_v52  ;;  %v3518_v8 = vpop.eup %3517 }
 0x6cb   : > { %v2129_v54 = vadd.f32 1.4214138, %v2117_v7  ;;  %v2149_v40 = vadd.f32 -0.28449672, %v2137_v62  ;;  %v2110_v24 = vmul.f32 %v4628_v9, %v2098_v17  ;;  %v4650_v45 = vpop.eup %3519  ;;  %vm2270_vm4 = vcmp.lt.f32.partialorder %v4583_v19, 0.0 }
 0x6cc   : > { %v2139_v18 = vmul.f32 %v4615_v51, %v2127_v0  ;;  %v2159_v37 = vmul.f32 %v4604_v59, %v2147_v38  ;;  %v2102_v22 = vadd.f32 -1.4531521, %v2090_v26  ;;  %v3522_v47 = vpop.eup %3521  ;;  %v2088_v14 = vmul.f32 1.0614054, %v4650_v45 }
 0x6cd   : > { %v2141_v32 = vmul.f32 %v4617_v46, %v2129_v54  ;;  %v2161_v1 = vmul.f32 %v4606_v44, %v2149_v40  ;;  %v2122_v16 = vadd.f32 1.4214138, %v2110_v24  ;;  %v4662_v39 = vpop.eup %3523  ;;  %v2006_v12 = vmul.f32 0.5, %v4574_v11 }
 0x6ce   : > { %v2151_v53 = vadd.f32 -0.28449672, %v2139_v18  ;;  %v2171_v2 = vadd.f32 0.2548296, %v2159_v37  ;;  %v2114_v36 = vmul.f32 %v4640_v52, %v2102_v22  ;;  %v3526_v7 = vpop.eup %3525  ;;  %v2092_v38 = vmul.f32 1.0614054, %v4662_v39 }
 0x6cf   : > { %v2153_v13 = vadd.f32 -0.28449672, %v2141_v32  ;;  %v2173_v27 = vadd.f32 0.2548296, %v2161_v1  ;;  %v2134_v61 = vmul.f32 %v4628_v9, %v2122_v16  ;;  %v4671_v17 = vpop.eup %3527  ;;  %3533 = vpow2.f32 %v2236_v6 }
 0x6d0   : > { %v2163_v20 = vmul.f32 %v4615_v51, %v2151_v53  ;;  %v2183_v49 = vmul.f32 %v4604_v59, %v2171_v2  ;;  %v2126_v0 = vadd.f32 1.4214138, %v2114_v36  ;;  %v2100_v59 = vadd.f32 -1.4531521, %v2088_v14  ;;  %v4680_v53 = vpop.eup %3529 }
 0x6d1   : > { %v2165_v62 = vmul.f32 %v4617_v46, %v2153_v13  ;;  %v2185_v63 = vmul.f32 %v4606_v44, %v2173_v27  ;;  %v2146_v26 = vadd.f32 -0.28449672, %v2134_v61  ;;  %v2104_v3 = vadd.f32 -1.4531521, %v2092_v38 }
 0x6d2   : > { %v2175_v54 = vadd.f32 0.2548296, %v2163_v20  ;;  %v2243_v40 = vmul.f32 %v4621_v50, %v2183_v49  ;;  %v2138_v24 = vmul.f32 %v4640_v52, %v2126_v0  ;;  %v2112_v22 = vmul.f32 %v4650_v45, %v2100_v59 }
 0x6d3   : > { %v2177_v18 = vadd.f32 0.2548296, %v2165_v62  ;;  %v2245_v37 = vmul.f32 %v3512_v43, %v2185_v63  ;;  %v2158_v1 = vmul.f32 %v4628_v9, %v2146_v26  ;;  %v2116_v43 = vmul.f32 %v4662_v39, %v2104_v3 }
 0x6d4   : > { %v2187_v32 = vmul.f32 %v4615_v51, %v2175_v54  ;;  %v2255_v44 = vsub.f32 1.0, %v2243_v40  ;;  %v2150_v16 = vadd.f32 -0.28449672, %v2138_v24  ;;  %v2124_v51 = vadd.f32 1.4214138, %v2112_v22  ;;  %v4693_v40 = vpop.eup %3531 }
 0x6d5   : > { %v2189_v50 = vmul.f32 %v4617_v46, %v2177_v18  ;;  %v2257_v2 = vsub.f32 1.0, %v2245_v37  ;;  %v2170_v36 = vadd.f32 0.2548296, %v2158_v1  ;;  %v2128_v61 = vadd.f32 1.4214138, %v2116_v43 }
 0x6d6   : > { %v2247_v13 = vmul.f32 %v4634_v57, %v2187_v32  ;;  %v2279_v27 = vsub.f32 0.0, %v2255_v44  ;;  %v2162_v49 = vmul.f32 %v4640_v52, %v2150_v16  ;;  %v2136_v0 = vmul.f32 %v4650_v45, %v2124_v51 }
 0x6d7   : > { %v2249_v14 = vmul.f32 %v3518_v8, %v2189_v50  ;;  %v2281_v20 = vsub.f32 0.0, %v2257_v2  ;;  %v2182_v63 = vmul.f32 %v4628_v9, %v2170_v36  ;;  %v2140_v18 = vmul.f32 %v4662_v39, %v2128_v61 }
 0x6d8   : > { %v2259_v62 = vsub.f32 1.0, %v2247_v13  ;;  %v2291_v46 = vsel %vm2267_vm15, %v2279_v27, %v2255_v44  ;;  %v2174_v8 = vadd.f32 0.2548296, %v2162_v49  ;;  %v2148_v3 = vadd.f32 -0.28449672, %v2136_v0 }
 0x6d9   : > { %v2303_v38 = vadd.f32 1.0, %v2291_v46  ;;  %v2261_v57 = vsub.f32 1.0, %v2249_v14  ;;  %v2293_v54 = vsel %vm2269_vm0, %v2281_v20, %v2257_v2  ;;  %v2242_v59 = vmul.f32 %v3522_v47, %v2182_v63 }
 0x6da   : > { %v2283_v26 = vsub.f32 0.0, %v2259_v62  ;;  %v2305_v24 = vadd.f32 1.0, %v2293_v54  ;;  %v2186_v9 = vmul.f32 %v4640_v52, %v2174_v8  ;;  %v2152_v1 = vadd.f32 -0.28449672, %v2140_v18 }
 0x6db   : > { %v2285_v37 = vsub.f32 0.0, %v2261_v57  ;;  %v2315_v15 = vmul.f32 %v2303_v38, %v4580_v5  ;;  %v2254_v44 = vsub.f32 1.0, %v2242_v59  ;;  %v2160_v55 = vmul.f32 %v4650_v45, %v2148_v3 }
 0x6dc   : > { %v2295_v32 = vsel %vm2271_vm1, %v2283_v26, %v2259_v62  ;;  %v2246_v50 = vmul.f32 %v3526_v7, %v2186_v9  ;;  %v2164_v16 = vmul.f32 %v4662_v39, %v2152_v1  ;;  %v2095_v52 = vmul.f32 1.0614054, %v4693_v40 }
 0x6dd   : > { %v2307_v22 = vadd.f32 1.0, %v2295_v32  ;;  %v2297_v47 = vsel %vm2273_vm2, %v2285_v37, %v2261_v57  ;;  %v2278_v2 = vsub.f32 0.0, %v2254_v44  ;;  %v2317_v43 = vmul.f32 %v2305_v24, %v4589_v21 }
 0x6de   : > { %v2309_v33 = vadd.f32 1.0, %v2297_v47  ;;  %v2258_v5 = vsub.f32 1.0, %v2246_v50  ;;  %v2172_v13 = vadd.f32 0.2548296, %v2160_v55  ;;  %v2176_v7 = vadd.f32 0.2548296, %v2164_v16 }
 0x6df   : > { %v2319_v31 = vmul.f32 %v2307_v22, %v4596_v48  ;;  %v2290_v29 = vsel %vm2266_vm3, %v2278_v2, %v2254_v44  ;;  %v2107_v36 = vadd.f32 -1.4531521, %v2095_v52  ;;  %v4721_v38 = vmul.f32 0.70710677, %v4644_v58  ;;  %v3534_v2 = vpop.eup %3533 }
 0x6e0   : > { %v2321_v27 = vmul.f32 %v2309_v33, %v4598_v10  ;;  %v2282_v14 = vsub.f32 0.0, %v2258_v5  ;;  %v2302_v20 = vadd.f32 1.0, %v2290_v29  ;;  %v2184_v49 = vmul.f32 %v4650_v45, %v2172_v13 }
 0x6e1   : > { %v3408_v51 = vpack.c.bf16 %v2319_v31, %v2315_v15  ;;  %v2188_v48 = vmul.f32 %v4662_v39, %v2176_v7  ;;  %v2119_v21 = vmul.f32 %v4693_v40, %v2107_v36  ;;  %v2002_v10 = vmul.f32 0.5, %v4560_v42 }
 0x6e2   : > { %v3412_v61 = vpack.c.bf16 %v2321_v27, %v2317_v43  ;;  %v2294_v62 = vsel %vm2270_vm4, %v2282_v14, %v2258_v5  ;;  %v2244_v46 = vmul.f32 %v4671_v17, %v2184_v49  ;;  %v4724_v57 = vmul.f32 0.70710677, %v4657_v34 }
 0x6e3   : > { %3409 = vmatprep.subr.bf16.mxu0 %v3408_v51  ;;  %v2306_v63 = vadd.f32 1.0, %v2294_v62  ;;  %v2248_v0 = vmul.f32 %v4680_v53, %v2188_v48  ;;  %v2131_v45 = vadd.f32 1.4214138, %v2119_v21  ;;  %v2314_v19 = vmul.f32 %v2302_v20, %v2002_v10 }
 0x6e4   : > { %3413 = vmatprep.subr.bf16.mxu1 %v3412_v61  ;;  %v2256_v39 = vsub.f32 1.0, %v2244_v46  ;;  %v2037_v17 = vand.u32 2147483647, %v4721_v38  ;;  %vm2268_vm5 = vcmp.lt.f32.partialorder %v4586_v35, 0.0  ;;  %v2034_v53 = vand.u32 2147483647, %v4724_v57 }
 0x6e5   : > { %v2318_v42 = vmul.f32 %v2306_v63, %v2006_v12  ;;  %v2260_v54 = vsub.f32 1.0, %v2248_v0  ;;  %v2143_v11 = vmul.f32 %v4693_v40, %v2131_v45  ;;  %v4732_v26 = vmul.f32 %v4594_v23, %v4544_v4 }
 0x6e6   : > { %v2280_v8 = vsub.f32 0.0, %v2256_v39  ;;  %v2049_v37 = vmul.f32 0.3275911, %v2037_v17  ;;  %vm2272_vm6 = vcmp.lt.f32.partialorder %v4602_v25, 0.0  ;;  %v2046_v9 = vmul.f32 0.3275911, %v2034_v53 }
 0x6e7   : > { %v3410_v59 = vpack.c.bf16 %v2318_v42, %v2314_v19  ;;  %v2284_v18 = vsub.f32 0.0, %v2260_v54  ;;  %v2155_v6 = vadd.f32 -0.28449672, %v2143_v11  ;;  %v2004_v44 = vmul.f32 0.5, %v4577_v28 }
 0x6e8   : > { %v2292_v24 = vsel %vm2268_vm5, %v2280_v8, %v2256_v39  ;;  %v2061_v15 = vadd.f32 1.0, %v2049_v37  ;;  %v2008_v1 = vmul.f32 0.5, %v4592_v30  ;;  %v2058_v23 = vadd.f32 1.0, %v2046_v9 }
 0x6e9   : > { %3411 = vmatpush1.bf16.msra.mxu0 %v3410_v59  ;;  %v2296_v3 = vsel %vm2272_vm6, %v2284_v18, %v2260_v54  ;;  %v2304_v32 = vadd.f32 1.0, %v2292_v24  ;;  %v2167_v35 = vmul.f32 %v4693_v40, %v2155_v6  ;;  %v4739_v47 = vmul.f32 0.70710677, %v4732_v26 }
 0x6ea   : > { %v2308_v4 = vadd.f32 1.0, %v2296_v3  ;;  %3535 = vrcp.f32 %v2061_v15  ;;  %v2205_v31 = vmul.f32 %v2037_v17, %v2037_v17  ;;  %v2202_v5 = vmul.f32 %v2034_v53, %v2034_v53 }
 0x6eb   : > { %v2179_v22 = vadd.f32 0.2548296, %v2167_v35  ;;  %v2316_v25 = vmul.f32 %v2304_v32, %v2004_v44  ;;  %3537 = vrcp.f32 %v2058_v23  ;;  %v2036_v33 = vand.u32 2147483647, %v4739_v47 }
 0x6ec   : > { %v2320_v50 = vmul.f32 %v2308_v4, %v2008_v1  ;;  %vm2275_vm7 = vcmp.lt.f32.partialorder %v4626_v41, 0.0  ;;  %v2217_v7 = vsub.f32 0.0, %v2205_v31  ;;  %v2214_v20 = vsub.f32 0.0, %v2202_v5 }
 0x6ed   : > { %v2191_v55 = vmul.f32 %v4693_v40, %v2179_v22  ;;  %v2048_v28 = vmul.f32 0.3275911, %v2036_v33  ;;  %v2011_v40 = vmul.f32 0.5, %v4613_v56  ;;  %v2204_v12 = vmul.f32 %v2036_v33, %v2036_v33 }
 0x6ee   : > { %v3414_v16 = vpack.c.bf16 %v2320_v50, %v2316_v25  ;;  %v2240_v21 = vmul.f32 1.442695, %v2217_v7  ;;  %v2234_v46 = vmul.f32 1.442695, %v2214_v20  ;;  %vm2277_vm8 = vcmp.lt.f32.partialorder %v4721_v38, 0.0 }
 0x6ef   : > { %v2251_v52 = vmul.f32 %v3534_v2, %v2191_v55  ;;  %v2060_v43 = vadd.f32 1.0, %v2048_v28  ;;  %v2216_v19 = vsub.f32 0.0, %v2204_v12  ;;  %vm2274_vm9 = vcmp.lt.f32.partialorder %v4724_v57, 0.0  ;;  %v2611_v28 = vld [vmem:[%s3674_s20 + $0x1a8] sm:$0xff] }
 0x6f0   : > { %3415 = vmatpush1.bf16.msra.mxu1 %v3414_v16  ;;  %v2013_v31 = vmul.f32 0.5, %v4644_v58  ;;  %vm2276_vm10 = vcmp.lt.f32.partialorder %v4739_v47, 0.0  ;;  %v2612_v47 = vld [vmem:[%s3674_s20 + $0x1b0] sm:$0xff] }
 0x6f1   : > { %v2263_v30 = vsub.f32 1.0, %v2251_v52  ;;  %3539 = vrcp.f32 %v2060_v43  ;;  %v2238_v8 = vmul.f32 1.442695, %v2216_v19  ;;  %v2607_v52 = vld [vmem:[%s3674_s20 + $0x188] sm:$0xff]  ;;  %v2618_v19 = vld [vmem:[%s4909_s8] sm:$0xf] }
 0x6f2   : > { %3541 = vpow2.f32 %v2240_v21  ;;  %v2327_v21 = vld [vmem:[%s4907_s6 + $0x8] sm:$0xff] }
 0x6f3   : > { %v2287_v13 = vsub.f32 0.0, %v2263_v30  ;;  %3543 = vpow2.f32 %v2234_v46  ;;  %v2614_v46 = vld [vmem:[%s3674_s20 + $0x1c0] sm:$0xff] }
 0x6f4   : > { %v3536_v27 = vpop.eup %3535  ;;  %3545 = vpow2.f32 %v2238_v8 }
 0x6f5   : > { %v2299_v29 = vsel %vm2275_vm7, %v2287_v13, %v2263_v30  ;;  %v3538_v36 = vpop.eup %3537  ;;  %v2097_v14 = vmul.f32 1.0614054, %v3536_v27  ;;  %v2606_v13 = vld [vmem:[%s3674_s20 + $0x180] sm:$0xff] }
 0x6f6   : > { %v2311_v51 = vadd.f32 1.0, %v2299_v29  ;;  %v2094_v49 = vmul.f32 1.0614054, %v3538_v36  ;;  %v2010_v29 = vmul.f32 0.5, %v4657_v34  ;;  %v2615_v34 = vld [vmem:[%s3674_s20 + $0x1c8] sm:$0xff] }
 0x6f7   : > { %v2109_v48 = vadd.f32 -1.4531521, %v2097_v14  ;;  %v2326_v14 = vld [vmem:[%s4907_s6] sm:$0xff] }
 0x6f8   : > { %v2323_v61 = vmul.f32 %v2311_v51, %v2011_v40  ;;  %v2106_v10 = vadd.f32 -1.4531521, %v2094_v49  ;;  %v3416_v40 = vpack.c.bf16 %v2611_v28, %v2607_v52  ;;  %v2609_v49 = vld [vmem:[%s3674_s20 + $0x198] sm:$0xff] }
 0x6f9   : > { %v2121_v62 = vmul.f32 %v3536_v27, %v2109_v48 }
 0x6fa   : > { %2360 = vmatprep.subr.mxu0 %v2323_v61  ;;  %v2118_v63 = vmul.f32 %v3538_v36, %v2106_v10  ;;  %v2613_v61 = vld [vmem:[%s3674_s20 + $0x1b8] sm:$0xff]  ;;  %v2012_v10 = vmul.f32 0.5, %v4732_v26 }
 0x6fb   : > { %v2133_v41 = vadd.f32 1.4214138, %v2121_v62  ;;  %v3540_v0 = vpop.eup %3539  ;;  %v2608_v62 = vld [vmem:[%s3674_s20 + $0x190] sm:$0xff]  ;;  %v2617_v26 = vld [vmem:[%s3674_s20 + $0x1d8] sm:$0xff] }
 0x6fc   : > { %v2130_v45 = vadd.f32 1.4214138, %v2118_v63  ;;  %v2096_v56 = vmul.f32 1.0614054, %v3540_v0  ;;  %v3542_v32 = vpop.eup %3541  ;;  %v3420_v63 = vpack.c.bf16 %v2613_v61, %v2609_v49 }
 0x6fd   : > { %v2145_v39 = vmul.f32 %v3536_v27, %v2133_v41  ;;  %v3544_v15 = vpop.eup %3543 }
 0x6fe   : > { %v2142_v42 = vmul.f32 %v3538_v36, %v2130_v45  ;;  %v2108_v11 = vadd.f32 -1.4531521, %v2096_v56  ;;  %v3546_v30 = vpop.eup %3545  ;;  %v3422_v45 = vpack.c.bf16 %v2612_v47, %v2608_v62  ;;  %v2335_v56 = vpop.permute.xlu0 %2334 }
 0x6ff   : > { %v2157_v54 = vadd.f32 -0.28449672, %v2145_v39  ;;  %v2616_v39 = vld [vmem:[%s3674_s20 + $0x1d0] sm:$0xff] }
 0x700   : > { %v2154_v17 = vadd.f32 -0.28449672, %v2142_v42  ;;  %v2120_v59 = vmul.f32 %v3540_v0, %v2108_v11 }
 0x701   : > { %v2169_v53 = vmul.f32 %v3536_v27, %v2157_v54 }
 0x702   : > { %v2166_v18 = vmul.f32 %v3538_v36, %v2154_v17  ;;  %v2132_v37 = vadd.f32 1.4214138, %v2120_v59 }
 0x703   : > { %v2181_v6 = vadd.f32 0.2548296, %v2169_v53 }
 0x704   : > { %v2178_v24 = vadd.f32 0.2548296, %v2166_v18  ;;  %v2144_v3 = vmul.f32 %v3540_v0, %v2132_v37 }
 0x705   : > { %v2193_v9 = vmul.f32 %v3536_v27, %v2181_v6  ;;  %v2610_v27 = vld [vmem:[%s3674_s20 + $0x1a0] sm:$0xff]  ;;  %s3424_s20 = smul.u32 96, %s4913_s14 }
 0x706   : > { %v2190_v35 = vmul.f32 %v3538_v36, %v2178_v24  ;;  %v2156_v1 = vadd.f32 -0.28449672, %v2144_v3  ;;  %v3418_v58 = vpack.c.bf16 %v2610_v27, %v2606_v13 }
 0x707   : > { %v2253_v44 = vmul.f32 %v3542_v32, %v2193_v9  ;;  %s4806_s17 = scalar_lea.vmem %s4901_s0, %s3424_s20  ;;  %s4818_s21 = scalar_lea.vmem %s4910_s9, %s3424_s20 }
 0x708   : > { %v2250_v4 = vmul.f32 %v3544_v15, %v2190_v35  ;;  %v2168_v22 = vmul.f32 %v3540_v0, %v2156_v1  ;;  %v2570_v52 = vld [vmem:[%s4806_s17] sm:$0xff]  ;;  %v2573_v49 = vld [vmem:[%s4806_s17 + $0x18] sm:$0xff] }
 0x709   : > { %v2265_v23 = vsub.f32 1.0, %v2253_v44 }
 0x70a   : > { %v2262_v25 = vsub.f32 1.0, %v2250_v4  ;;  %v2180_v55 = vadd.f32 0.2548296, %v2168_v22 }
 0x70b   : > { %v2289_v50 = vsub.f32 0.0, %v2265_v23 }
 0x70c   : > { %v2286_v33 = vsub.f32 0.0, %v2262_v25  ;;  %v2192_v16 = vmul.f32 %v3540_v0, %v2180_v55  ;;  %v2328_v0 = vld [vmem:[%s4907_s6 + $0x10] sm:$0xff] }
 0x70d   : > { %v2301_v2 = vsel %vm2277_vm8, %v2289_v50, %v2265_v23 }
 0x70e   : > { %v2313_v43 = vadd.f32 1.0, %v2301_v2  ;;  %v2298_v5 = vsel %vm2274_vm9, %v2286_v33, %v2262_v25  ;;  %v2252_v38 = vmul.f32 %v3546_v30, %v2192_v16 }
 0x70f   : > { %v2310_v7 = vadd.f32 1.0, %v2298_v5 }
 0x710   : > { %v2325_v36 = vmul.f32 %v2313_v43, %v2013_v31  ;;  %v2264_v51 = vsub.f32 1.0, %v2252_v38  ;;  %v2571_v31 = vld [vmem:[%s4806_s17 + $0x8] sm:$0xff] }
 0x711   : > { %v2322_v57 = vmul.f32 %v2310_v7, %v2010_v29 }
 0x712   : > { %2443 = vmatprep.subr.mxu1 %v2325_v36  ;;  %v2288_v20 = vsub.f32 0.0, %v2264_v51 }
 0x713   : > { %2361 = vmatpush1.msra.mxu0 %v2322_v57 }
 0x714   : > { %3069 = vmatmul.mubr.msk.f32.vlgmr.msra.gmra.mrb[30].mxu0 %vm1570_vm13, %v2326_v14  ;;  %3417 = vmatprep.subr.bf16.mxu0 %v3416_v40  ;;  %v2300_v48 = vsel %vm2276_vm10, %v2288_v20, %v2264_v51 }
 0x715   : > { %2426 = vmatprep.mubr.f32.mxu0 %v3598_v60  ;;  %3419 = vmatpush1.bf16.msra.mxu0 %v3418_v58  ;;  %v2312_v12 = vadd.f32 1.0, %v2300_v48  ;;  %v2572_v58 = vld [vmem:[%s4806_s17 + $0x10] sm:$0xff] }
 0x716   : > { %2626 = vmatprep.subr.mxu0 %v2615_v34 }
 0x717   : > { %v2324_v41 = vmul.f32 %v2312_v12, %v2012_v10 }
 0x718   : > { %3070 = vmatmul.mubr.msk.f32.gmra.mrb[32].mxu0 %vm1570_vm13, %v2327_v21 }
 0x719   : > { %2432 = vmatprep.mubr.f32.mxu0 %v3598_v60  ;;  %2627 = vmatpush1.msra.mxu0 %v2614_v46 }
 0x71a   : > { %2444 = vmatpush1.msra.mxu1 %v2324_v41 }
 0x71b   : > { %3072 = vmatmul.mubr.msk.f32.vlgmr.msra.gmra.mrb[30].mxu1 %vm1570_vm13, %v2326_v14  ;;  %3421 = vmatprep.subr.bf16.mxu1 %v3420_v63 }
 0x71c   : > { %2509 = vmatprep.mubr.f32.mxu1 %v3598_v60  ;;  %3071 = vmatmul.mubr.msk.f32.gmra.mrb[34].mxu0 %vm1570_vm13, %v2328_v0 }
 0x71d   : > { %3423 = vmatpush1.bf16.msra.mxu1 %v3422_v45  ;;  %2686 = vmatprep.mubr.f32.mxu0 %v3598_v60 }
 0x71e   : > { %2697 = vmatprep.subr.mxu1 %v2617_v26 }
 0x71f   : > { %3073 = vmatmul.mubr.msk.f32.gmra.mrb[32].mxu1 %vm1570_vm13, %v2327_v21 }
 0x720   : > { %2515 = vmatprep.mubr.f32.mxu1 %v3598_v60  ;;  %3075 = vmatmul.mubr.msk.f32.vlgmr.msra.gmra.mrb[36].mxu0 %vm1570_vm13, %v2618_v19 }
 0x721   : > { %2698 = vmatpush1.msra.mxu1 %v2616_v39 }
 0x723   : > { %3074 = vmatmul.mubr.msk.f32.gmra.mrb[34].mxu1 %vm1570_vm13, %v2328_v0 }
 0x724   : > { %2757 = vmatprep.mubr.f32.mxu1 %v3598_v60 }
 0x727   : > { %3076 = vmatmul.mubr.msk.f32.vlgmr.msra.gmra.mrb[36].mxu1 %vm1570_vm13, %v2618_v19 }
 0x7e7   : > { %v2422_v42 = vpop.f32.mrb[30].mxu0 }
 0x7e8   : > { %v2423_v54 = vadd.f32 %v2422_v42, %v2335_v56  ;;  %v2424_v11 = vpop.f32.mrb[31].mxu0 }
 0x7e9   : > { %v2425_v17 = vadd.f32 %v2424_v11, %v2335_v56 }
 0x7ea   : > { %v2522_v8 = vmul.f32 0.5, %v2423_v54 }
 0x7eb   : > { %v2523_v53 = vmul.f32 0.5, %v2425_v17  ;;  %v4789_v59 = vpop.f32.mrb[32].mxu0 }
 0x7ec   : > { %3547 = vtanh.f32 %v2522_v8  ;;  %v4791_v18 = vpop.f32.mrb[33].mxu0  ;;  %v2330_v8 = vld [vmem:[%s4908_s7 + $0x8] sm:$0xff] }
 0x7ed   : > { %3549 = vtanh.f32 %v2523_v53  ;;  %v2331_v53 = vld [vmem:[%s4908_s7 + $0x10] sm:$0xff] }
 0x7ee   : > { %v2505_v6 = vpop.f32.mrb[30].mxu1 }
 0x7ef   : > { %v2506_v37 = vadd.f32 %v2505_v6, %v2335_v56  ;;  %v2507_v24 = vpop.f32.mrb[31].mxu1  ;;  %v4793_v60 = vpop.f32.mrb[34].mxu0 }
 0x7f0   : > { %v2508_v9 = vadd.f32 %v2507_v24, %v2335_v56  ;;  %v4795_v3 = vpop.f32.mrb[35].mxu0 }
 0x7f1   : > { %v2524_v32 = vmul.f32 0.5, %v2506_v37 }
 0x7f2   : > { %v2525_v35 = vmul.f32 0.5, %v2508_v9  ;;  %v4798_v15 = vpop.f32.mrb[32].mxu1 }
 0x7f3   : > { %3551 = vtanh.f32 %v2524_v32  ;;  %v4800_v44 = vpop.f32.mrb[33].mxu1  ;;  %v2688_v1 = vpop.f32.mrb[36].mxu0 }
 0x7f4   : > { %3553 = vtanh.f32 %v2525_v35  ;;  %v2765_v4 = vsel %vm2764_vm11, %v2688_v1, 0.0  ;;  %v2690_v23 = vpop.f32.mrb[37].mxu0 }
 0x7f5   : > { %v2766_v22 = vsel %vm2764_vm11, %v2690_v23, 0.0 }
 0x7f6   : > { %v3548_v25 = vpop.eup %3547  ;;  %v4809_v50 = vpop.f32.mrb[34].mxu1  ;;  %v2767_v55 = vadd.f32 %v2766_v22, %v2765_v4 }
 0x7f7   : > { %v3550_v33 = vpop.eup %3549  ;;  %v2546_v2 = vadd.f32 1.0, %v3548_v25  ;;  %v4811_v16 = vpop.f32.mrb[35].mxu1 }
 0x7f8   : > { %v2547_v28 = vadd.f32 1.0, %v3550_v33 }
 0x7f9   : > { %v2558_v30 = vmul.f32 0.5, %v2546_v2 }
 0x7fa   : > { %v2559_v43 = vmul.f32 0.5, %v2547_v28  ;;  %v2759_v5 = vpop.f32.mrb[36].mxu1 }
 0x7fb   : > { %v2582_v13 = vmul.f32 %v2570_v52, %v2558_v30  ;;  %v2768_v27 = vsel %vm2764_vm11, %v2759_v5, 0.0  ;;  %v2761_v29 = vpop.f32.mrb[37].mxu1 }
 0x7fc   : > { %v2583_v7 = vmul.f32 %v2571_v31, %v2559_v43  ;;  %v2769_v38 = vadd.f32 %v2768_v27, %v2767_v55  ;;  %v2770_v40 = vsel %vm2764_vm11, %v2761_v29, 0.0 }
 0x7fd   : > { %v3552_v36 = vpop.eup %3551  ;;  %2594 = vst [vmem:[%s4818_s21] sm:$0xff] %v2582_v13 }
 0x7fe   : > { %v3554_v57 = vpop.eup %3553  ;;  %v2548_v51 = vadd.f32 1.0, %v3552_v36  ;;  %2595 = vst [vmem:[%s4818_s21 + $0x8] sm:$0xff] %v2583_v7  ;;  %v2771_v14 = vadd.f32 %v2770_v40, %v2769_v38 }
 0x7ff   : > { %v2549_v20 = vadd.f32 1.0, %v3554_v57 }
 0x800   : > { %v2560_v34 = vmul.f32 0.5, %v2548_v51  ;;  %2772 = vadd.xlane.f32.xlu1 %v2771_v14 }
 0x801   : > { %v2561_v61 = vmul.f32 0.5, %v2549_v20 }
 0x802   : > { %v2584_v48 = vmul.f32 %v2572_v58, %v2560_v34 }
 0x803   : > { %v2585_v21 = vmul.f32 %v2573_v49, %v2561_v61 }
 0x804   : > { %2596 = vst [vmem:[%s4818_s21 + $0x10] sm:$0xff] %v2584_v48 }
 0x805   : > { %2597 = vst [vmem:[%s4818_s21 + $0x18] sm:$0xff] %v2585_v21 }
 0x88d   : > { %v2773_v10 = vpop.xlane.xlu1 %2772 }
 0x88e   : > { %v2774_v12 = vmul.f32 0.001953125, %v2773_v10 }
 0x890   : > { %v2775_v62 = vsub.f32 %v2688_v1, %v2774_v12  ;;  %v2776_v47 = vsub.f32 %v2690_v23, %v2774_v12  ;;  %v2777_v46 = vsub.f32 %v2759_v5, %v2774_v12  ;;  %v2778_v63 = vsub.f32 %v2761_v29, %v2774_v12 }
 0x892   : > { %v2779_v41 = vmul.f32 %v2775_v62, %v2775_v62  ;;  %v2780_v0 = vmul.f32 %v2776_v47, %v2776_v47  ;;  %v2781_v45 = vmul.f32 %v2777_v46, %v2777_v46  ;;  %v2782_v26 = vmul.f32 %v2778_v63, %v2778_v63 }
 0x894   : > { %v2783_v19 = vsel %vm2764_vm11, %v2779_v41, 0.0  ;;  %v2784_v39 = vsel %vm2764_vm11, %v2780_v0, 0.0  ;;  %v2786_v42 = vsel %vm2764_vm11, %v2781_v45, 0.0  ;;  %v2788_v11 = vsel %vm2764_vm11, %v2782_v26, 0.0  ;;  %v2574_v41 = vld [vmem:[%s4806_s17 + $0x20] sm:$0xff] }
 0x895   : > { %v2785_v56 = vadd.f32 %v2784_v39, %v2783_v19  ;;  %v2575_v39 = vld [vmem:[%s4806_s17 + $0x28] sm:$0xff] }
 0x897   : > { %v2787_v54 = vadd.f32 %v2786_v42, %v2785_v56  ;;  %v2576_v42 = vld [vmem:[%s4806_s17 + $0x30] sm:$0xff] }
 0x899   : > { %v2789_v17 = vadd.f32 %v2788_v11, %v2787_v54  ;;  %v2577_v54 = vld [vmem:[%s4806_s17 + $0x38] sm:$0xff] }
 0x89b   : > { %2790 = vadd.xlane.f32.xlu1 %v2789_v17 }
 0x8ac   : > { %2339 = vperm.xlu1 %3437, %v2330_v8  }
 0x8b0   : > { %2344 = vperm.xlu1 %3437, %v2331_v53  }
 0x928   : > { %v2791_v6 = vpop.xlane.xlu1 %2790 }
 0x929   : > { %v2792_v37 = vmul.f32 0.001953125, %v2791_v6 }
 0x92b   : > { %v2793_v24 = vadd.f32 1e-05, %v2792_v37 }
 0x92c   : > { %v2340_v9 = vpop.permute.xlu1 %2339 }
 0x92d   : > { %3555 = vrsqrt.f32 %v2793_v24  ;;  %v2429_v32 = vadd.f32 %v4789_v59, %v2340_v9  ;;  %v2431_v35 = vadd.f32 %v4791_v18, %v2340_v9  ;;  %v2512_v1 = vadd.f32 %v4798_v15, %v2340_v9 }
 0x92e   : > { %v2514_v4 = vadd.f32 %v4800_v44, %v2340_v9 }
 0x92f   : > { %v2526_v23 = vmul.f32 0.5, %v2429_v32  ;;  %v2527_v22 = vmul.f32 0.5, %v2431_v35  ;;  %v2528_v55 = vmul.f32 0.5, %v2512_v1  ;;  %v2578_v32 = vld [vmem:[%s4806_s17 + $0x40] sm:$0xff] }
 0x930   : > { %v2345_v25 = vpop.permute.xlu1 %2344  ;;  %v2529_v52 = vmul.f32 0.5, %v2514_v4 }
 0x931   : > { %v2435_v33 = vadd.f32 %v4793_v60, %v2345_v25  ;;  %v2437_v2 = vadd.f32 %v4795_v3, %v2345_v25  ;;  %v2518_v28 = vadd.f32 %v4809_v50, %v2345_v25  ;;  %3557 = vtanh.f32 %v2526_v23 }
 0x932   : > { %v2520_v59 = vadd.f32 %v4811_v16, %v2345_v25  ;;  %3559 = vtanh.f32 %v2527_v22  ;;  %v2579_v22 = vld [vmem:[%s4806_s17 + $0x48] sm:$0xff]  ;;  %v2580_v25 = vld [vmem:[%s4806_s17 + $0x50] sm:$0xff] }
 0x933   : > { %v2530_v30 = vmul.f32 0.5, %v2435_v33  ;;  %3561 = vtanh.f32 %v2528_v55  ;;  %v2531_v18 = vmul.f32 0.5, %v2437_v2  ;;  %v2532_v15 = vmul.f32 0.5, %v2518_v28  ;;  %v2581_v55 = vld [vmem:[%s4806_s17 + $0x58] sm:$0xff] }
 0x934   : > { %3563 = vtanh.f32 %v2529_v52  ;;  %v2533_v31 = vmul.f32 0.5, %v2520_v59 }
 0x935   : > { %3565 = vtanh.f32 %v2530_v30 }
 0x936   : > { %3567 = vtanh.f32 %v2531_v18 }
 0x937   : > { %v3556_v44 = vpop.eup %3555  ;;  %3569 = vtanh.f32 %v2532_v15 }
 0x938   : > { %v4846_v43 = vmul.f32 %v3556_v44, %v2775_v62  ;;  %v4848_v60 = vmul.f32 %v3556_v44, %v2776_v47  ;;  %v4850_v3 = vmul.f32 %v3556_v44, %v2777_v46  ;;  %v4852_v5 = vmul.f32 %v3556_v44, %v2778_v63 }
 0x939   : > { %3571 = vtanh.f32 %v2533_v31 }
 0x93a   : > { %v4855_v50 = vmul.f32 0.70710677, %v4846_v43  ;;  %v4858_v16 = vmul.f32 0.70710677, %v4848_v60  ;;  %v4861_v13 = vmul.f32 0.70710677, %v4850_v3 }
 0x93b   : > { %v4864_v27 = vmul.f32 0.70710677, %v4852_v5  ;;  %v3558_v29 = vpop.eup %3557 }
 0x93c   : > { %v2807_v7 = vand.u32 2147483647, %v4855_v50  ;;  %v2808_v38 = vand.u32 2147483647, %v4858_v16  ;;  %v2809_v36 = vand.u32 2147483647, %v4861_v13  ;;  %v3560_v40 = vpop.eup %3559 }
 0x93d   : > { %v2810_v57 = vand.u32 2147483647, %v4864_v27  ;;  %v3562_v51 = vpop.eup %3561  ;;  %v2550_v12 = vadd.f32 1.0, %v3558_v29  ;;  %v2551_v46 = vadd.f32 1.0, %v3560_v40  ;;  %vm2887_vm12 = vcmp.lt.f32.partialorder %v4855_v50, 0.0 }
 0x93e   : > { %v2811_v14 = vmul.f32 0.3275911, %v2807_v7  ;;  %v2812_v58 = vmul.f32 0.3275911, %v2808_v38  ;;  %v2813_v20 = vmul.f32 0.3275911, %v2809_v36  ;;  %v3564_v34 = vpop.eup %3563  ;;  %v2863_v35 = vmul.f32 %v2807_v7, %v2807_v7 }
 0x93f   : > { %v2814_v49 = vmul.f32 0.3275911, %v2810_v57  ;;  %v3566_v61 = vpop.eup %3565  ;;  %v2552_v45 = vadd.f32 1.0, %v3562_v51  ;;  %v2553_v26 = vadd.f32 1.0, %v3564_v34  ;;  %v2562_v19 = vmul.f32 0.5, %v2550_v12 }
 0x940   : > { %v2815_v48 = vadd.f32 1.0, %v2811_v14  ;;  %v2816_v21 = vadd.f32 1.0, %v2812_v58  ;;  %v2817_v10 = vadd.f32 1.0, %v2813_v20  ;;  %v3568_v47 = vpop.eup %3567  ;;  %v2563_v56 = vmul.f32 0.5, %v2551_v46 }
 0x941   : > { %v2818_v62 = vadd.f32 1.0, %v2814_v49  ;;  %v3570_v63 = vpop.eup %3569  ;;  %v2554_v11 = vadd.f32 1.0, %v3566_v61  ;;  %v2555_v17 = vadd.f32 1.0, %v3568_v47  ;;  %v2564_v8 = vmul.f32 0.5, %v2552_v45 }
 0x942   : > { %3573 = vrcp.f32 %v2815_v48  ;;  %v2565_v53 = vmul.f32 0.5, %v2553_v26  ;;  %v2586_v6 = vmul.f32 %v2574_v41, %v2562_v19  ;;  %v2587_v37 = vmul.f32 %v2575_v39, %v2563_v56 }
 0x943   : > { %3575 = vrcp.f32 %v2816_v21  ;;  %v3572_v0 = vpop.eup %3571  ;;  %v2556_v24 = vadd.f32 1.0, %v3570_v63  ;;  %v2588_v1 = vmul.f32 %v2576_v42, %v2564_v8  ;;  %v2566_v23 = vmul.f32 0.5, %v2554_v11 }
 0x944   : > { %3577 = vrcp.f32 %v2817_v10  ;;  %v2557_v9 = vadd.f32 1.0, %v3572_v0  ;;  %v2589_v4 = vmul.f32 %v2577_v54, %v2565_v53  ;;  %2598 = vst [vmem:[%s4818_s21 + $0x20] sm:$0xff] %v2586_v6  ;;  %v2864_v33 = vmul.f32 %v2808_v38, %v2808_v38  ;;  %2599 = vst [vmem:[%s4818_s21 + $0x28] sm:$0xff] %v2587_v37 }
 0x945   : > { %3579 = vrcp.f32 %v2818_v62  ;;  %v2567_v2 = vmul.f32 0.5, %v2555_v17  ;;  %v2568_v52 = vmul.f32 0.5, %v2556_v24  ;;  %v2865_v59 = vmul.f32 %v2809_v36, %v2809_v36  ;;  %2600 = vst [vmem:[%s4818_s21 + $0x30] sm:$0xff] %v2588_v1 }
 0x946   : > { %v2569_v28 = vmul.f32 0.5, %v2557_v9  ;;  %2601 = vst [vmem:[%s4818_s21 + $0x38] sm:$0xff] %v2589_v4  ;;  %v2590_v30 = vmul.f32 %v2578_v32, %v2566_v23  ;;  %v2866_v18 = vmul.f32 %v2810_v57, %v2810_v57  ;;  %v2867_v7 = vsub.f32 0.0, %v2863_v35 }
 0x947   : > { %v2591_v15 = vmul.f32 %v2579_v22, %v2567_v2  ;;  %v2592_v44 = vmul.f32 %v2580_v25, %v2568_v52  ;;  %v2868_v51 = vsub.f32 0.0, %v2864_v33  ;;  %v2869_v36 = vsub.f32 0.0, %v2865_v59 }
 0x948   : > { %v2593_v31 = vmul.f32 %v2581_v55, %v2569_v28  ;;  %2602 = vst [vmem:[%s4818_s21 + $0x40] sm:$0xff] %v2590_v30  ;;  %v2870_v61 = vsub.f32 0.0, %v2866_v18  ;;  %v2871_v21 = vmul.f32 1.442695, %v2867_v7  ;;  %vm2888_vm13 = vcmp.lt.f32.partialorder %v4858_v16, 0.0 }
 0x949   : > { %2603 = vst [vmem:[%s4818_s21 + $0x48] sm:$0xff] %v2591_v15  ;;  %2604 = vst [vmem:[%s4818_s21 + $0x50] sm:$0xff] %v2592_v44  ;;  %v2873_v62 = vmul.f32 1.442695, %v2868_v51  ;;  %v2875_v63 = vmul.f32 1.442695, %v2869_v36 }
 0x94a   : > { %2605 = vst [vmem:[%s4818_s21 + $0x58] sm:$0xff] %v2593_v31  ;;  %v2877_v45 = vmul.f32 1.442695, %v2870_v61  ;;  %3581 = vpow2.f32 %v2871_v21  ;;  %vm2889_vm14 = vcmp.lt.f32.partialorder %v4861_v13, 0.0  ;;  %vm2890_vm15 = vcmp.lt.f32.partialorder %v4864_v27, 0.0 }
 0x94b   : > { %3583 = vpow2.f32 %v2873_v62  ;;  %v2801_v50 = vmul.f32 0.5, %v4850_v3  ;;  %v2802_v16 = vmul.f32 0.5, %v4852_v5 }
 0x94c   : > { %v3574_v29 = vpop.eup %3573  ;;  %3585 = vpow2.f32 %v2875_v63 }
 0x94d   : > { %v3576_v40 = vpop.eup %3575  ;;  %v2827_v38 = vmul.f32 1.0614054, %v3574_v29  ;;  %3587 = vpow2.f32 %v2877_v45 }
 0x94e   : > { %v3578_v14 = vpop.eup %3577  ;;  %v2828_v58 = vmul.f32 1.0614054, %v3576_v40 }
 0x94f   : > { %v3580_v20 = vpop.eup %3579  ;;  %v2829_v34 = vmul.f32 1.0614054, %v3578_v14  ;;  %v2831_v49 = vadd.f32 -1.4531521, %v2827_v38 }
 0x950   : > { %v2830_v57 = vmul.f32 1.0614054, %v3580_v20  ;;  %v2832_v48 = vadd.f32 -1.4531521, %v2828_v58 }
 0x951   : > { %v2833_v10 = vadd.f32 -1.4531521, %v2829_v34  ;;  %v2835_v12 = vmul.f32 %v3574_v29, %v2831_v49 }
 0x952   : > { %v2834_v47 = vadd.f32 -1.4531521, %v2830_v57  ;;  %v2836_v46 = vmul.f32 %v3576_v40, %v2832_v48  ;;  %v2800_v57 = vmul.f32 0.5, %v4848_v60 }
 0x953   : > { %v2837_v41 = vmul.f32 %v3578_v14, %v2833_v10  ;;  %v2839_v0 = vadd.f32 1.4214138, %v2835_v12 }
 0x954   : > { %v2838_v26 = vmul.f32 %v3580_v20, %v2834_v47  ;;  %v2840_v19 = vadd.f32 1.4214138, %v2836_v46  ;;  %v3582_v25 = vpop.eup %3581 }
 0x955   : > { %v2841_v39 = vadd.f32 1.4214138, %v2837_v41  ;;  %v2843_v56 = vmul.f32 %v3574_v29, %v2839_v0  ;;  %v3584_v2 = vpop.eup %3583 }
 0x956   : > { %v2842_v42 = vadd.f32 1.4214138, %v2838_v26  ;;  %v2844_v54 = vmul.f32 %v3576_v40, %v2840_v19  ;;  %v3586_v59 = vpop.eup %3585 }
 0x957   : > { %v2845_v11 = vmul.f32 %v3578_v14, %v2841_v39  ;;  %v2847_v17 = vadd.f32 -0.28449672, %v2843_v56  ;;  %v3588_v15 = vpop.eup %3587 }
 0x958   : > { %v2846_v8 = vmul.f32 %v3580_v20, %v2842_v42  ;;  %v2848_v53 = vadd.f32 -0.28449672, %v2844_v54 }
 0x959   : > { %v2849_v6 = vadd.f32 -0.28449672, %v2845_v11  ;;  %v2851_v37 = vmul.f32 %v3574_v29, %v2847_v17 }
 0x95a   : > { %v2850_v24 = vadd.f32 -0.28449672, %v2846_v8  ;;  %v2852_v9 = vmul.f32 %v3576_v40, %v2848_v53 }
 0x95b   : > { %v2853_v32 = vmul.f32 %v3578_v14, %v2849_v6  ;;  %v2855_v35 = vadd.f32 0.2548296, %v2851_v37 }
 0x95c   : > { %v2854_v1 = vmul.f32 %v3580_v20, %v2850_v24  ;;  %v2856_v4 = vadd.f32 0.2548296, %v2852_v9 }
 0x95d   : > { %v2857_v23 = vadd.f32 0.2548296, %v2853_v32  ;;  %v2859_v22 = vmul.f32 %v3574_v29, %v2855_v35 }
 0x95e   : > { %v2858_v55 = vadd.f32 0.2548296, %v2854_v1  ;;  %v2860_v33 = vmul.f32 %v3576_v40, %v2856_v4  ;;  %v2799_v40 = vmul.f32 0.5, %v4846_v43 }
 0x95f   : > { %v2861_v52 = vmul.f32 %v3578_v14, %v2857_v23  ;;  %v2879_v28 = vmul.f32 %v3582_v25, %v2859_v22 }
 0x960   : > { %v2862_v30 = vmul.f32 %v3580_v20, %v2858_v55  ;;  %v2880_v18 = vmul.f32 %v3584_v2, %v2860_v33 }
 0x961   : > { %v2881_v44 = vmul.f32 %v3586_v59, %v2861_v52  ;;  %v2883_v31 = vsub.f32 1.0, %v2879_v28 }
 0x962   : > { %v2882_v7 = vmul.f32 %v3588_v15, %v2862_v30  ;;  %v2884_v38 = vsub.f32 1.0, %v2880_v18 }
 0x963   : > { %v2885_v51 = vsub.f32 1.0, %v2881_v44  ;;  %v2891_v58 = vsub.f32 0.0, %v2883_v31 }
 0x964   : > { %v2886_v36 = vsub.f32 1.0, %v2882_v7  ;;  %v2892_v29 = vsub.f32 0.0, %v2884_v38 }
 0x965   : > { %v2893_v14 = vsub.f32 0.0, %v2885_v51  ;;  %v2895_v34 = vsel %vm2887_vm12, %v2891_v58, %v2883_v31 }
 0x966   : > { %v2894_v20 = vsub.f32 0.0, %v2886_v36  ;;  %v2896_v49 = vsel %vm2888_vm13, %v2892_v29, %v2884_v38  ;;  %v2899_v61 = vadd.f32 1.0, %v2895_v34 }
 0x967   : > { %v2897_v48 = vsel %vm2889_vm14, %v2893_v14, %v2885_v51  ;;  %v2900_v21 = vadd.f32 1.0, %v2896_v49 }
 0x968   : > { %v2898_v10 = vsel %vm2890_vm15, %v2894_v20, %v2886_v36  ;;  %v2901_v43 = vadd.f32 1.0, %v2897_v48  ;;  %v2903_v12 = vmul.f32 %v2899_v61, %v2799_v40 }
 0x969   : > { %v2902_v62 = vadd.f32 1.0, %v2898_v10  ;;  %v2904_v47 = vmul.f32 %v2900_v21, %v2800_v57 }
 0x96a   : > { %v2905_v13 = vmul.f32 %v2901_v43, %v2801_v50 }
 0x96b   : > { %v2906_v46 = vmul.f32 %v2902_v62, %v2802_v16  ;;  %v2911_v60 = vcombine.low %v2903_v12, %v2904_v47 }
 0x96d   : > { %v2912_v63 = vcombine.low %v2905_v13, %v2906_v46  ;;  %2915 = vst [vmem:[%s392_s29] sm:$0xff] %v2911_v60 }
 0x96f   : > { %2916 = vst [vmem:[%s392_s29 + $0x8] sm:$0xff] %v2912_v63 }
 0x970 PF: > { %s21_s13 = sadd.s32 1, %s3595_s13  }
 0x971   : > { %p18_p4 = scmp.ge.s32.totalorder %s21_s13, 4  }
 0x973   :  { %20 = sbr.rel (!%p18_p4) target bundleno = 1 (0x1), region = 103 }

</bundles_post_ra>
